<compile_context>
chip_gen: v7x
topology: tpu7x:2x2x1
jax: 0.10.0
libtpu: 0.0.40
codegen_flags: <defaults>
</compile_context>

<pallas_src>
import functools
import math

import jax
import jax.numpy as jnp
from jax.experimental import pallas as pl
from jax.experimental.pallas import tpu as pltpu

# Make the pure-JAX reference matmuls use full f32 precision so they match the
# in-kernel MXU matmuls closely.
jax.config.update("jax_default_matmul_precision", "highest")


# ----------------------------- math helpers (shared by kernel & reference) ---

def _sigmoid(x):
    # numerically stable (tanh form); identical to 1/(1+exp(-x))
    return 0.5 * (jnp.tanh(0.5 * x) + 1.0)


def _silu(x):
    return x * _sigmoid(x)


def _softplus(x):
    return jnp.maximum(x, 0.0) + jnp.log(1.0 + jnp.exp(-jnp.abs(x)))


def _erf(x):
    # Abramowitz & Stegun 7.1.26 polynomial approximation (|err| < 1.5e-7),
    # uses only exp/mul/add so it lowers cleanly on the TPU VPU/EUP.
    a1, a2, a3, a4, a5 = 0.254829592, -0.284496736, 1.421413741, -1.453152027, 1.061405429
    p = 0.3275911
    sgn = jnp.where(x >= 0.0, 1.0, -1.0)
    ax = jnp.abs(x)
    t = 1.0 / (1.0 + p * ax)
    poly = ((((a5 * t + a4) * t + a3) * t + a2) * t + a1) * t
    return sgn * (1.0 - poly * jnp.exp(-ax * ax))


def _gelu(x):
    # exact (erf-based) GELU, matching torch.nn.GELU() default.
    return 0.5 * x * (1.0 + _erf(x * 0.7071067811865475))


def _layer_norm(s, g, b, eps=1e-5):
    mu = jnp.mean(s, axis=-1, keepdims=True)
    var = jnp.mean((s - mu) ** 2, axis=-1, keepdims=True)
    return (s - mu) * jax.lax.rsqrt(var + eps) * g + b


# ----------------------------------------------------------- Pallas kernel ---

def ssm_fused_kernel(x_ref, in_wT_ref, conv_wT_ref, conv_b_ref, wdt_ref, dt_b_ref,
                     wbc_ref, negA_T_ref, D_ref, out_wT_ref,
                     fc1_wT_ref, fc1_b_ref, fc2_wT_ref, fc2_b_ref,
                     ln1_g_ref, ln1_b_ref, ln2_g_ref, ln2_b_ref,
                     o_ref, xpad_ref, yscr_ref, *, depth):
    """Full SSM forward (depth x MambaBlock) for one batch element per grid step."""
    L = x_ref.shape[1]
    d_inner = D_ref.shape[1]
    d_state = negA_T_ref.shape[0]
    d_conv = conv_wT_ref.shape[0]

    # constants hoisted out of the depth loop
    conv_w = conv_wT_ref[...]                                  # (d_conv, d_inner)
    conv_b = conv_b_ref[...]                                   # (1, d_inner)
    negA = negA_T_ref[...]                                     # (d_state, d_inner) = -exp(A_log).T
    Dvec = D_ref[...]                                          # (1, d_inner)
    # zero the causal-pad rows of the conv scratch once (never overwritten)
    xpad_ref[0:d_conv - 1, :] = jnp.zeros((d_conv - 1, d_inner), jnp.float32)

    xc = x_ref[0]                                              # (L, D)

    # clones() deep-copies the SAME initialized block -> identical params reused.
    for _ in range(depth):
        # -------------------------------- Mamba ------------------------------
        xz = jnp.dot(xc, in_wT_ref[...], preferred_element_type=jnp.float32)  # (L, 2*d_inner)
        xs = xz[:, :d_inner]
        z = xz[:, d_inner:]

        # depthwise causal conv: shifted reads from the padded VMEM scratch
        xpad_ref[d_conv - 1:, :] = xs
        acc = jnp.zeros((L, d_inner), jnp.float32)
        for k in range(d_conv):
            acc = acc + conv_w[k:k + 1, :] * xpad_ref[k:k + L, :]
        u = _silu(acc + conv_b)                                # (L, d_inner)

        # data-dependent SSM params; dt_proj folded into x_proj at trace time
        dt = _softplus(jnp.dot(u, wdt_ref[...], preferred_element_type=jnp.float32)
                       + dt_b_ref[...])                        # (L, d_inner)
        bc = jnp.dot(u, wbc_ref[...], preferred_element_type=jnp.float32)  # (L, 2*d_state)
        B_T = bc[:, :d_state].T                                # (d_state, L)
        C_T = bc[:, d_state:].T                                # (d_state, L)

        # selective scan; state h kept as (d_state, d_inner) so d_inner stays
        # on lanes.  L is small and static -> unrolled loop, rows written into
        # a VMEM scratch (no concatenate relayout).
        h = jnp.zeros((d_state, d_inner), jnp.float32)
        for t in range(L):
            dt_t = dt[t:t + 1, :]                              # (1, d_inner)
            u_t = u[t:t + 1, :]                                # (1, d_inner)
            h = jnp.exp(dt_t * negA) * h + (dt_t * u_t) * B_T[:, t:t + 1]
            yscr_ref[t:t + 1, :] = jnp.sum(h * C_T[:, t:t + 1], axis=0, keepdims=True)

        y = (yscr_ref[...] + u * Dvec) * _silu(z)              # (L, d_inner)
        m_out = jnp.dot(y, out_wT_ref[...], preferred_element_type=jnp.float32)  # (L, D)

        # ---------------- SubLayerConnect 1: LayerNorm(x + mamba(x)) ---------
        xc = _layer_norm(xc + m_out, ln1_g_ref[...], ln1_b_ref[...])

        # -------------------------------- FFN --------------------------------
        h1 = _gelu(jnp.dot(xc, fc1_wT_ref[...], preferred_element_type=jnp.float32)
                   + fc1_b_ref[...])
        f_out = _gelu(jnp.dot(h1, fc2_wT_ref[...], preferred_element_type=jnp.float32)
                      + fc2_b_ref[...])

        # ---------------- SubLayerConnect 2: LayerNorm(y + ffn(y)) -----------
        xc = _layer_norm(xc + f_out, ln2_g_ref[...], ln2_b_ref[...])

    o_ref[0] = xc


# ------------------------------------------------------------ Pallas wrapper -

@functools.partial(jax.jit, static_argnames=("depth",))
def ssm_forward(x, params, depth=2):
    p = params
    B, L, D = x.shape
    d_inner = p["D"].shape[0]
    d_state = p["A_log"].shape[1]
    dt_rank = p["dt_proj_w"].shape[1]
    d_conv = p["conv_w"].shape[1]
    d_hidden = p["fc1_b"].shape[0]

    # trace-time weight folding / precompute (constant across batch & depth)
    w_dt = p["x_proj_w"][:dt_rank, :].T @ p["dt_proj_w"].T     # (d_inner, d_inner)
    w_bc = p["x_proj_w"][dt_rank:, :].T                        # (d_inner, 2*d_state)
    neg_A_T = -jnp.exp(p["A_log"]).T                           # (d_state, d_inner)

    args = (
        x,
        p["in_proj_w"].T,                                      # (D, 2*d_inner)
        p["conv_w"].T,                                         # (d_conv, d_inner)
        p["conv_b"].reshape(1, d_inner),
        w_dt,
        p["dt_proj_b"].reshape(1, d_inner),
        w_bc,
        neg_A_T,
        p["D"].reshape(1, d_inner),
        p["out_proj_w"].T,                                     # (d_inner, D)
        p["fc1_w"].T,                                          # (D, 4*D)
        p["fc1_b"].reshape(1, d_hidden),
        p["fc2_w"].T,                                          # (4*D, D)
        p["fc2_b"].reshape(1, D),
        p["ln1_g"].reshape(1, D), p["ln1_b"].reshape(1, D),
        p["ln2_g"].reshape(1, D), p["ln2_b"].reshape(1, D),
    )

    x_spec = pl.BlockSpec((1, L, D), lambda b: (b, 0, 0))
    # constant index_map -> weights stay resident in VMEM across grid steps
    w_specs = [pl.BlockSpec(a.shape, lambda b, nd=a.ndim: (0,) * nd) for a in args[1:]]

    kernel = functools.partial(ssm_fused_kernel, depth=depth)
    return pl.pallas_call(
        kernel,
        grid=(B,),
        in_specs=[x_spec] + w_specs,
        out_specs=pl.BlockSpec((1, L, D), lambda b: (b, 0, 0)),
        out_shape=jax.ShapeDtypeStruct((B, L, D), jnp.float32),
        scratch_shapes=[
            pltpu.VMEM((L + d_conv - 1, d_inner), jnp.float32),  # padded conv input
            pltpu.VMEM((L, d_inner), jnp.float32),               # scan output rows
        ],
        compiler_params=pltpu.CompilerParams(dimension_semantics=("parallel",)),
    )(*args)


# ----------------------------------------------------- pure-JAX reference ----

def mamba_ref(x, p):
    B, L, D = x.shape
    d_inner = p["D"].shape[0]
    d_state = p["A_log"].shape[1]
    dt_rank = p["dt_proj_w"].shape[1]
    d_conv = p["conv_w"].shape[1]

    xz = jnp.einsum("bld,ed->ble", x, p["in_proj_w"])
    xs, z = xz[..., :d_inner], xz[..., d_inner:]
    xp = jnp.pad(xs, ((0, 0), (d_conv - 1, 0), (0, 0)))
    conv = jnp.zeros((B, L, d_inner)) + p["conv_b"][None, None, :]
    for k in range(d_conv):
        conv = conv + p["conv_w"][:, k][None, None, :] * xp[:, k:k + L, :]
    u = _silu(conv)

    x_dbl = jnp.einsum("bln,en->ble", u, p["x_proj_w"])
    dt = _softplus(jnp.einsum("blr,nr->bln", x_dbl[..., :dt_rank], p["dt_proj_w"])
                   + p["dt_proj_b"])
    Bm = x_dbl[..., dt_rank:dt_rank + d_state]
    Cm = x_dbl[..., dt_rank + d_state:]
    A = -jnp.exp(p["A_log"])

    h = jnp.zeros((B, d_inner, d_state))
    ys = []
    for t in range(L):
        dA = jnp.exp(dt[:, t, :, None] * A[None])
        dBu = (dt[:, t] * u[:, t])[:, :, None] * Bm[:, t, None, :]
        h = dA * h + dBu
        ys.append(jnp.sum(h * Cm[:, t, None, :], axis=-1))
    y = jnp.stack(ys, axis=1)
    y = y + u * p["D"][None, None, :]
    y = y * _silu(z)
    return jnp.einsum("bln,dn->bld", y, p["out_proj_w"])


def ffn_ref(x, p):
    h = _gelu(x @ p["fc1_w"].T + p["fc1_b"])
    return _gelu(h @ p["fc2_w"].T + p["fc2_b"])


def ssm_ref(x, p, depth=2):
    for _ in range(depth):
        y = _layer_norm(x + mamba_ref(x, p), p["ln1_g"], p["ln1_b"])
        x = _layer_norm(y + ffn_ref(y, p), p["ln2_g"], p["ln2_b"])
    return x


# ------------------------------------------------------------ parameters -----

def init_params(key, d_model=32, exp_factor=4, d_state=16, d_conv=4, expand=2):
    d_inner = expand * d_model
    dt_rank = math.ceil(d_model / 16)
    ks = jax.random.split(key, 11)

    def rnd(k, shape, scale=0.1):
        return scale * jax.random.normal(k, shape, jnp.float32)

    return dict(
        # Mamba (mamba_ssm defaults)
        in_proj_w=rnd(ks[0], (2 * d_inner, d_model)),
        conv_w=rnd(ks[1], (d_inner, d_conv)),
        conv_b=rnd(ks[2], (d_inner,)),
        x_proj_w=rnd(ks[3], (dt_rank + 2 * d_state, d_inner)),
        dt_proj_w=rnd(ks[4], (d_inner, dt_rank)),
        dt_proj_b=rnd(ks[5], (d_inner,)),
        A_log=jnp.log(jnp.tile(jnp.arange(1, d_state + 1, dtype=jnp.float32)[None, :],
                               (d_inner, 1))),
        D=jnp.ones((d_inner,), jnp.float32),
        out_proj_w=rnd(ks[6], (d_model, d_inner)),
        # FFN
        fc1_w=rnd(ks[7], (exp_factor * d_model, d_model)),
        fc1_b=rnd(ks[8], (exp_factor * d_model,)),
        fc2_w=rnd(ks[9], (d_model, exp_factor * d_model)),
        fc2_b=rnd(ks[10], (d_model,)),
        # LayerNorms (PyTorch default init)
        ln1_g=jnp.ones((d_model,), jnp.float32), ln1_b=jnp.zeros((d_model,), jnp.float32),
        ln2_g=jnp.ones((d_model,), jnp.float32), ln2_b=jnp.zeros((d_model,), jnp.float32),
    )


# ------------------------------------------------------------------- main ----

if __name__ == "__main__":
    BATCH, SEQ, D_MODEL, DEPTH = 2, 8, 32, 2
    key = jax.random.PRNGKey(0)
    kp, kx = jax.random.split(key)

    params = init_params(kp, d_model=D_MODEL, exp_factor=4)
    x = jax.random.normal(kx, (BATCH, SEQ, D_MODEL), jnp.float32)

    out = jax.block_until_ready(ssm_forward(x, params, depth=DEPTH))
    ref = jax.block_until_ready(ssm_ref(x, params, depth=DEPTH))

    assert out.shape == (BATCH, SEQ, D_MODEL)
    assert bool(jnp.all(jnp.isfinite(out)))
    max_err = float(jnp.max(jnp.abs(out - ref)))
    assert jnp.allclose(out, ref, atol=1e-2, rtol=1e-2), max_err
    print("KERNEL_OK")
</pallas_src>

<mosaic_0001>
module attributes {stable_mosaic.version = 11 : i64} {
  func.func @ssm_fused_kernel(%arg0: i32, %arg1: memref<1x8x32xf32, #tpu.memory_space<vmem>>, %arg2: memref<32x128xf32, #tpu.memory_space<vmem>>, %arg3: memref<4x64xf32, #tpu.memory_space<vmem>>, %arg4: memref<1x64xf32, #tpu.memory_space<vmem>>, %arg5: memref<64x64xf32, #tpu.memory_space<vmem>>, %arg6: memref<1x64xf32, #tpu.memory_space<vmem>>, %arg7: memref<64x32xf32, #tpu.memory_space<vmem>>, %arg8: memref<16x64xf32, #tpu.memory_space<vmem>>, %arg9: memref<1x64xf32, #tpu.memory_space<vmem>>, %arg10: memref<64x32xf32, #tpu.memory_space<vmem>>, %arg11: memref<32x128xf32, #tpu.memory_space<vmem>>, %arg12: memref<1x128xf32, #tpu.memory_space<vmem>>, %arg13: memref<128x32xf32, #tpu.memory_space<vmem>>, %arg14: memref<1x32xf32, #tpu.memory_space<vmem>>, %arg15: memref<1x32xf32, #tpu.memory_space<vmem>>, %arg16: memref<1x32xf32, #tpu.memory_space<vmem>>, %arg17: memref<1x32xf32, #tpu.memory_space<vmem>>, %arg18: memref<1x32xf32, #tpu.memory_space<vmem>>, %arg19: memref<1x8x32xf32, #tpu.memory_space<vmem>>, %arg20: memref<11x64xf32, #tpu.memory_space<vmem>>, %arg21: memref<8x64xf32, #tpu.memory_space<vmem>>) attributes {dimension_semantics = [#tpu.dimension_semantics<parallel>], iteration_bounds = array<i64: 2>, scalar_prefetch = 0 : i64, scratch_operands = 2 : i64, tpu.core_type = #tpu.core_type<tc>, window_params = [{transform_indices = @transform_0, window_bounds = array<i64: 1, 8, 32>}, {pipeline_mode = #tpu.pipeline_mode<synchronous>, transform_indices = @transform_1, window_bounds = array<i64: 32, 128>}, {pipeline_mode = #tpu.pipeline_mode<synchronous>, transform_indices = @transform_2, window_bounds = array<i64: 4, 64>}, {pipeline_mode = #tpu.pipeline_mode<synchronous>, transform_indices = @transform_3, window_bounds = array<i64: 1, 64>}, {pipeline_mode = #tpu.pipeline_mode<synchronous>, transform_indices = @transform_4, window_bounds = array<i64: 64, 64>}, {pipeline_mode = #tpu.pipeline_mode<synchronous>, transform_indices = @transform_5, window_bounds = array<i64: 1, 64>}, {pipeline_mode = #tpu.pipeline_mode<synchronous>, transform_indices = @transform_6, window_bounds = array<i64: 64, 32>}, {pipeline_mode = #tpu.pipeline_mode<synchronous>, transform_indices = @transform_7, window_bounds = array<i64: 16, 64>}, {pipeline_mode = #tpu.pipeline_mode<synchronous>, transform_indices = @transform_8, window_bounds = array<i64: 1, 64>}, {pipeline_mode = #tpu.pipeline_mode<synchronous>, transform_indices = @transform_9, window_bounds = array<i64: 64, 32>}, {pipeline_mode = #tpu.pipeline_mode<synchronous>, transform_indices = @transform_10, window_bounds = array<i64: 32, 128>}, {pipeline_mode = #tpu.pipeline_mode<synchronous>, transform_indices = @transform_11, window_bounds = array<i64: 1, 128>}, {pipeline_mode = #tpu.pipeline_mode<synchronous>, transform_indices = @transform_12, window_bounds = array<i64: 128, 32>}, {pipeline_mode = #tpu.pipeline_mode<synchronous>, transform_indices = @transform_13, window_bounds = array<i64: 1, 32>}, {pipeline_mode = #tpu.pipeline_mode<synchronous>, transform_indices = @transform_14, window_bounds = array<i64: 1, 32>}, {pipeline_mode = #tpu.pipeline_mode<synchronous>, transform_indices = @transform_15, window_bounds = array<i64: 1, 32>}, {pipeline_mode = #tpu.pipeline_mode<synchronous>, transform_indices = @transform_16, window_bounds = array<i64: 1, 32>}, {pipeline_mode = #tpu.pipeline_mode<synchronous>, transform_indices = @transform_17, window_bounds = array<i64: 1, 32>}, {transform_indices = @transform_18, window_bounds = array<i64: 1, 8, 32>}]} {
    %c0 = arith.constant 0 : index
    %c0_0 = arith.constant 0 : index
    %0 = vector.load %arg3[%c0, %c0_0] : memref<4x64xf32, #tpu.memory_space<vmem>>, vector<4x64xf32>
    %c0_1 = arith.constant 0 : index
    %c0_2 = arith.constant 0 : index
    %1 = vector.load %arg4[%c0_1, %c0_2] : memref<1x64xf32, #tpu.memory_space<vmem>>, vector<1x64xf32>
    %c0_3 = arith.constant 0 : index
    %c0_4 = arith.constant 0 : index
    %2 = vector.load %arg8[%c0_3, %c0_4] : memref<16x64xf32, #tpu.memory_space<vmem>>, vector<16x64xf32>
    %c0_5 = arith.constant 0 : index
    %c0_6 = arith.constant 0 : index
    %3 = vector.load %arg9[%c0_5, %c0_6] : memref<1x64xf32, #tpu.memory_space<vmem>>, vector<1x64xf32>
    %cst = arith.constant 0.000000e+00 : f32
    %4 = vector.broadcast %cst : f32 to vector<3x64xf32>
    %c0_7 = arith.constant 0 : index
    %c0_8 = arith.constant 0 : index
    %5 = vector.load %arg20[%c0_7, %c0_8] : memref<11x64xf32, #tpu.memory_space<vmem>>, vector<3x64xf32>
    tpu.vector_store %arg20[%c0_7, %c0_8], %4 {strides = array<i32>} : memref<11x64xf32, #tpu.memory_space<vmem>>, vector<3x64xf32>,
    %c0_9 = arith.constant 0 : index
    %c0_10 = arith.constant 0 : index
    %c0_11 = arith.constant 0 : index
    %6 = vector.load %arg1[%c0_9, %c0_10, %c0_11] : memref<1x8x32xf32, #tpu.memory_space<vmem>>, vector<1x8x32xf32>
    %7 = vector.shape_cast %6 : vector<1x8x32xf32> to vector<8x32xf32>
    %c0_12 = arith.constant 0 : index
    %c0_13 = arith.constant 0 : index
    %8 = vector.load %arg2[%c0_12, %c0_13] : memref<32x128xf32, #tpu.memory_space<vmem>>, vector<32x128xf32>
    %cst_14 = arith.constant dense<0.000000e+00> : vector<8x128xf32>
    %9 = tpu.matmul %7, %8, %cst_14 {dimension_numbers = #tpu.dot_dimension_numbers<[1], [0], [0], [1], [0, 0, 1, 1], [], []>, precision = #tpu.contract_precision<fp32>} : vector<8x32xf32>, vector<32x128xf32>, vector<8x128xf32> -> vector<8x128xf32>
    %10 = vector.extract_strided_slice %9 {offsets = [0, 0], sizes = [8, 64], strides = [1, 1]} : vector<8x128xf32> to vector<8x64xf32>
    %11 = vector.extract_strided_slice %9 {offsets = [0, 64], sizes = [8, 64], strides = [1, 1]} : vector<8x128xf32> to vector<8x64xf32>
    %c3 = arith.constant 3 : index
    %c0_15 = arith.constant 0 : index
    %12 = vector.load %arg20[%c3, %c0_15] : memref<11x64xf32, #tpu.memory_space<vmem>>, vector<8x64xf32>
    tpu.vector_store %arg20[%c3, %c0_15], %10 {strides = array<i32>} : memref<11x64xf32, #tpu.memory_space<vmem>>, vector<8x64xf32>,
    %cst_16 = arith.constant 0.000000e+00 : f32
    %13 = vector.broadcast %cst_16 : f32 to vector<8x64xf32>
    %14 = vector.extract_strided_slice %0 {offsets = [0, 0], sizes = [1, 64], strides = [1, 1]} : vector<4x64xf32> to vector<1x64xf32>
    %c0_17 = arith.constant 0 : index
    %c0_18 = arith.constant 0 : index
    %15 = vector.load %arg20[%c0_17, %c0_18] : memref<11x64xf32, #tpu.memory_space<vmem>>, vector<8x64xf32>
    %16 = vector.broadcast %14 : vector<1x64xf32> to vector<8x64xf32>
    %17 = arith.mulf %16, %15 : vector<8x64xf32>
    %18 = arith.addf %13, %17 : vector<8x64xf32>
    %19 = vector.extract_strided_slice %0 {offsets = [1, 0], sizes = [1, 64], strides = [1, 1]} : vector<4x64xf32> to vector<1x64xf32>
    %c1 = arith.constant 1 : index
    %c0_19 = arith.constant 0 : index
    %20 = vector.load %arg20[%c1, %c0_19] : memref<11x64xf32, #tpu.memory_space<vmem>>, vector<8x64xf32>
    %21 = vector.broadcast %19 : vector<1x64xf32> to vector<8x64xf32>
    %22 = arith.mulf %21, %20 : vector<8x64xf32>
    %23 = arith.addf %18, %22 : vector<8x64xf32>
    %24 = vector.extract_strided_slice %0 {offsets = [2, 0], sizes = [1, 64], strides = [1, 1]} : vector<4x64xf32> to vector<1x64xf32>
    %c2 = arith.constant 2 : index
    %c0_20 = arith.constant 0 : index
    %25 = vector.load %arg20[%c2, %c0_20] : memref<11x64xf32, #tpu.memory_space<vmem>>, vector<8x64xf32>
    %26 = vector.broadcast %24 : vector<1x64xf32> to vector<8x64xf32>
    %27 = arith.mulf %26, %25 : vector<8x64xf32>
    %28 = arith.addf %23, %27 : vector<8x64xf32>
    %29 = vector.extract_strided_slice %0 {offsets = [3, 0], sizes = [1, 64], strides = [1, 1]} : vector<4x64xf32> to vector<1x64xf32>
    %c3_21 = arith.constant 3 : index
    %c0_22 = arith.constant 0 : index
    %30 = vector.load %arg20[%c3_21, %c0_22] : memref<11x64xf32, #tpu.memory_space<vmem>>, vector<8x64xf32>
    %31 = vector.broadcast %29 : vector<1x64xf32> to vector<8x64xf32>
    %32 = arith.mulf %31, %30 : vector<8x64xf32>
    %33 = arith.addf %28, %32 : vector<8x64xf32>
    %34 = vector.broadcast %1 : vector<1x64xf32> to vector<8x64xf32>
    %35 = arith.addf %33, %34 : vector<8x64xf32>
    %cst_23 = arith.constant 5.000000e-01 : f32
    %36 = vector.broadcast %cst_23 : f32 to vector<8x64xf32>
    %37 = arith.mulf %36, %35 : vector<8x64xf32>
    %38 = math.tanh %37 : vector<8x64xf32>
    %cst_24 = arith.constant 1.000000e+00 : f32
    %39 = vector.broadcast %cst_24 : f32 to vector<8x64xf32>
    %40 = arith.addf %38, %39 : vector<8x64xf32>
    %cst_25 = arith.constant 5.000000e-01 : f32
    %41 = vector.broadcast %cst_25 : f32 to vector<8x64xf32>
    %42 = arith.mulf %41, %40 : vector<8x64xf32>
    %43 = arith.mulf %35, %42 : vector<8x64xf32>
    %c0_26 = arith.constant 0 : index
    %c0_27 = arith.constant 0 : index
    %44 = vector.load %arg5[%c0_26, %c0_27] : memref<64x64xf32, #tpu.memory_space<vmem>>, vector<64x64xf32>
    %cst_28 = arith.constant dense<0.000000e+00> : vector<8x64xf32>
    %45 = tpu.matmul %43, %44, %cst_28 {dimension_numbers = #tpu.dot_dimension_numbers<[1], [0], [0], [1], [0, 0, 1, 1], [], []>, precision = #tpu.contract_precision<fp32>} : vector<8x64xf32>, vector<64x64xf32>, vector<8x64xf32> -> vector<8x64xf32>
    %c0_29 = arith.constant 0 : index
    %c0_30 = arith.constant 0 : index
    %46 = vector.load %arg6[%c0_29, %c0_30] : memref<1x64xf32, #tpu.memory_space<vmem>>, vector<1x64xf32>
    %47 = vector.broadcast %46 : vector<1x64xf32> to vector<8x64xf32>
    %48 = arith.addf %45, %47 : vector<8x64xf32>
    %cst_31 = arith.constant 0.000000e+00 : f32
    %49 = vector.broadcast %cst_31 : f32 to vector<8x64xf32>
    %50 = arith.maximumf %48, %49 : vector<8x64xf32>
    %51 = math.absf %48 : vector<8x64xf32>
    %cst_32 = arith.constant 0.000000e+00 : f32
    %52 = vector.broadcast %cst_32 : f32 to vector<8x64xf32>
    %53 = arith.subf %52, %51 : vector<8x64xf32>
    %54 = math.exp %53 : vector<8x64xf32>
    %cst_33 = arith.constant 1.000000e+00 : f32
    %55 = vector.broadcast %cst_33 : f32 to vector<8x64xf32>
    %56 = arith.addf %55, %54 : vector<8x64xf32>
    %57 = math.log %56 : vector<8x64xf32>
    %58 = arith.addf %50, %57 : vector<8x64xf32>
    %c0_34 = arith.constant 0 : index
    %c0_35 = arith.constant 0 : index
    %59 = vector.load %arg7[%c0_34, %c0_35] : memref<64x32xf32, #tpu.memory_space<vmem>>, vector<64x32xf32>
    %cst_36 = arith.constant dense<0.000000e+00> : vector<8x32xf32>
    %60 = tpu.matmul %43, %59, %cst_36 {dimension_numbers = #tpu.dot_dimension_numbers<[1], [0], [0], [1], [0, 0, 1, 1], [], []>, precision = #tpu.contract_precision<fp32>} : vector<8x64xf32>, vector<64x32xf32>, vector<8x32xf32> -> vector<8x32xf32>
    %61 = vector.extract_strided_slice %60 {offsets = [0, 0], sizes = [8, 16], strides = [1, 1]} : vector<8x32xf32> to vector<8x16xf32>
    %62 = tpu.transpose %61, [1, 0] : vector<8x16xf32> -> vector<16x8xf32>
    %63 = vector.extract_strided_slice %60 {offsets = [0, 16], sizes = [8, 16], strides = [1, 1]} : vector<8x32xf32> to vector<8x16xf32>
    %64 = tpu.transpose %63, [1, 0] : vector<8x16xf32> -> vector<16x8xf32>
    %cst_37 = arith.constant 0.000000e+00 : f32
    %65 = vector.broadcast %cst_37 : f32 to vector<16x64xf32>
    %66 = vector.extract_strided_slice %58 {offsets = [0, 0], sizes = [1, 64], strides = [1, 1]} : vector<8x64xf32> to vector<1x64xf32>
    %67 = vector.extract_strided_slice %43 {offsets = [0, 0], sizes = [1, 64], strides = [1, 1]} : vector<8x64xf32> to vector<1x64xf32>
    %68 = vector.broadcast %66 : vector<1x64xf32> to vector<16x64xf32>
    %69 = arith.mulf %68, %2 : vector<16x64xf32>
    %70 = math.exp %69 : vector<16x64xf32>
    %71 = arith.mulf %70, %65 : vector<16x64xf32>
    %72 = arith.mulf %66, %67 : vector<1x64xf32>
    %73 = vector.extract_strided_slice %62 {offsets = [0, 0], sizes = [16, 1], strides = [1, 1]} : vector<16x8xf32> to vector<16x1xf32>
    %74 = vector.broadcast %72 : vector<1x64xf32> to vector<16x64xf32>
    %75 = vector.broadcast %73 : vector<16x1xf32> to vector<16x64xf32>
    %76 = arith.mulf %74, %75 : vector<16x64xf32>
    %77 = arith.addf %71, %76 : vector<16x64xf32>
    %78 = vector.extract_strided_slice %64 {offsets = [0, 0], sizes = [16, 1], strides = [1, 1]} : vector<16x8xf32> to vector<16x1xf32>
    %79 = vector.broadcast %78 : vector<16x1xf32> to vector<16x64xf32>
    %80 = arith.mulf %77, %79 : vector<16x64xf32>
    %cst_38 = arith.constant dense<0.000000e+00> : vector<64xf32>
    %81 = vector.multi_reduction <add>, %80, %cst_38 [0] : vector<16x64xf32> to vector<64xf32>
    %82 = vector.shape_cast %81 : vector<64xf32> to vector<1x64xf32>
    %c0_39 = arith.constant 0 : index
    %c0_40 = arith.constant 0 : index
    %83 = vector.load %arg21[%c0_39, %c0_40] : memref<8x64xf32, #tpu.memory_space<vmem>>, vector<1x64xf32>
    tpu.vector_store %arg21[%c0_39, %c0_40], %82 {strides = array<i32>} : memref<8x64xf32, #tpu.memory_space<vmem>>, vector<1x64xf32>,
    %84 = vector.extract_strided_slice %58 {offsets = [1, 0], sizes = [1, 64], strides = [1, 1]} : vector<8x64xf32> to vector<1x64xf32>
    %85 = vector.extract_strided_slice %43 {offsets = [1, 0], sizes = [1, 64], strides = [1, 1]} : vector<8x64xf32> to vector<1x64xf32>
    %86 = vector.broadcast %84 : vector<1x64xf32> to vector<16x64xf32>
    %87 = arith.mulf %86, %2 : vector<16x64xf32>
    %88 = math.exp %87 : vector<16x64xf32>
    %89 = arith.mulf %88, %77 : vector<16x64xf32>
    %90 = arith.mulf %84, %85 : vector<1x64xf32>
    %91 = vector.extract_strided_slice %62 {offsets = [0, 1], sizes = [16, 1], strides = [1, 1]} : vector<16x8xf32> to vector<16x1xf32>
    %92 = vector.broadcast %90 : vector<1x64xf32> to vector<16x64xf32>
    %93 = vector.broadcast %91 : vector<16x1xf32> to vector<16x64xf32>
    %94 = arith.mulf %92, %93 : vector<16x64xf32>
    %95 = arith.addf %89, %94 : vector<16x64xf32>
    %96 = vector.extract_strided_slice %64 {offsets = [0, 1], sizes = [16, 1], strides = [1, 1]} : vector<16x8xf32> to vector<16x1xf32>
    %97 = vector.broadcast %96 : vector<16x1xf32> to vector<16x64xf32>
    %98 = arith.mulf %95, %97 : vector<16x64xf32>
    %cst_41 = arith.constant dense<0.000000e+00> : vector<64xf32>
    %99 = vector.multi_reduction <add>, %98, %cst_41 [0] : vector<16x64xf32> to vector<64xf32>
    %100 = vector.shape_cast %99 : vector<64xf32> to vector<1x64xf32>
    %c1_42 = arith.constant 1 : index
    %c0_43 = arith.constant 0 : index
    %101 = vector.load %arg21[%c1_42, %c0_43] : memref<8x64xf32, #tpu.memory_space<vmem>>, vector<1x64xf32>
    tpu.vector_store %arg21[%c1_42, %c0_43], %100 {strides = array<i32>} : memref<8x64xf32, #tpu.memory_space<vmem>>, vector<1x64xf32>,
    %102 = vector.extract_strided_slice %58 {offsets = [2, 0], sizes = [1, 64], strides = [1, 1]} : vector<8x64xf32> to vector<1x64xf32>
    %103 = vector.extract_strided_slice %43 {offsets = [2, 0], sizes = [1, 64], strides = [1, 1]} : vector<8x64xf32> to vector<1x64xf32>
    %104 = vector.broadcast %102 : vector<1x64xf32> to vector<16x64xf32>
    %105 = arith.mulf %104, %2 : vector<16x64xf32>
    %106 = math.exp %105 : vector<16x64xf32>
    %107 = arith.mulf %106, %95 : vector<16x64xf32>
    %108 = arith.mulf %102, %103 : vector<1x64xf32>
    %109 = vector.extract_strided_slice %62 {offsets = [0, 2], sizes = [16, 1], strides = [1, 1]} : vector<16x8xf32> to vector<16x1xf32>
    %110 = vector.broadcast %108 : vector<1x64xf32> to vector<16x64xf32>
    %111 = vector.broadcast %109 : vector<16x1xf32> to vector<16x64xf32>
    %112 = arith.mulf %110, %111 : vector<16x64xf32>
    %113 = arith.addf %107, %112 : vector<16x64xf32>
    %114 = vector.extract_strided_slice %64 {offsets = [0, 2], sizes = [16, 1], strides = [1, 1]} : vector<16x8xf32> to vector<16x1xf32>
    %115 = vector.broadcast %114 : vector<16x1xf32> to vector<16x64xf32>
    %116 = arith.mulf %113, %115 : vector<16x64xf32>
    %cst_44 = arith.constant dense<0.000000e+00> : vector<64xf32>
    %117 = vector.multi_reduction <add>, %116, %cst_44 [0] : vector<16x64xf32> to vector<64xf32>
    %118 = vector.shape_cast %117 : vector<64xf32> to vector<1x64xf32>
    %c2_45 = arith.constant 2 : index
    %c0_46 = arith.constant 0 : index
    %119 = vector.load %arg21[%c2_45, %c0_46] : memref<8x64xf32, #tpu.memory_space<vmem>>, vector<1x64xf32>
    tpu.vector_store %arg21[%c2_45, %c0_46], %118 {strides = array<i32>} : memref<8x64xf32, #tpu.memory_space<vmem>>, vector<1x64xf32>,
    %120 = vector.extract_strided_slice %58 {offsets = [3, 0], sizes = [1, 64], strides = [1, 1]} : vector<8x64xf32> to vector<1x64xf32>
    %121 = vector.extract_strided_slice %43 {offsets = [3, 0], sizes = [1, 64], strides = [1, 1]} : vector<8x64xf32> to vector<1x64xf32>
    %122 = vector.broadcast %120 : vector<1x64xf32> to vector<16x64xf32>
    %123 = arith.mulf %122, %2 : vector<16x64xf32>
    %124 = math.exp %123 : vector<16x64xf32>
    %125 = arith.mulf %124, %113 : vector<16x64xf32>
    %126 = arith.mulf %120, %121 : vector<1x64xf32>
    %127 = vector.extract_strided_slice %62 {offsets = [0, 3], sizes = [16, 1], strides = [1, 1]} : vector<16x8xf32> to vector<16x1xf32>
    %128 = vector.broadcast %126 : vector<1x64xf32> to vector<16x64xf32>
    %129 = vector.broadcast %127 : vector<16x1xf32> to vector<16x64xf32>
    %130 = arith.mulf %128, %129 : vector<16x64xf32>
    %131 = arith.addf %125, %130 : vector<16x64xf32>
    %132 = vector.extract_strided_slice %64 {offsets = [0, 3], sizes = [16, 1], strides = [1, 1]} : vector<16x8xf32> to vector<16x1xf32>
    %133 = vector.broadcast %132 : vector<16x1xf32> to vector<16x64xf32>
    %134 = arith.mulf %131, %133 : vector<16x64xf32>
    %cst_47 = arith.constant dense<0.000000e+00> : vector<64xf32>
    %135 = vector.multi_reduction <add>, %134, %cst_47 [0] : vector<16x64xf32> to vector<64xf32>
    %136 = vector.shape_cast %135 : vector<64xf32> to vector<1x64xf32>
    %c3_48 = arith.constant 3 : index
    %c0_49 = arith.constant 0 : index
    %137 = vector.load %arg21[%c3_48, %c0_49] : memref<8x64xf32, #tpu.memory_space<vmem>>, vector<1x64xf32>
    tpu.vector_store %arg21[%c3_48, %c0_49], %136 {strides = array<i32>} : memref<8x64xf32, #tpu.memory_space<vmem>>, vector<1x64xf32>,
    %138 = vector.extract_strided_slice %58 {offsets = [4, 0], sizes = [1, 64], strides = [1, 1]} : vector<8x64xf32> to vector<1x64xf32>
    %139 = vector.extract_strided_slice %43 {offsets = [4, 0], sizes = [1, 64], strides = [1, 1]} : vector<8x64xf32> to vector<1x64xf32>
    %140 = vector.broadcast %138 : vector<1x64xf32> to vector<16x64xf32>
    %141 = arith.mulf %140, %2 : vector<16x64xf32>
    %142 = math.exp %141 : vector<16x64xf32>
    %143 = arith.mulf %142, %131 : vector<16x64xf32>
    %144 = arith.mulf %138, %139 : vector<1x64xf32>
    %145 = vector.extract_strided_slice %62 {offsets = [0, 4], sizes = [16, 1], strides = [1, 1]} : vector<16x8xf32> to vector<16x1xf32>
    %146 = vector.broadcast %144 : vector<1x64xf32> to vector<16x64xf32>
    %147 = vector.broadcast %145 : vector<16x1xf32> to vector<16x64xf32>
    %148 = arith.mulf %146, %147 : vector<16x64xf32>
    %149 = arith.addf %143, %148 : vector<16x64xf32>
    %150 = vector.extract_strided_slice %64 {offsets = [0, 4], sizes = [16, 1], strides = [1, 1]} : vector<16x8xf32> to vector<16x1xf32>
    %151 = vector.broadcast %150 : vector<16x1xf32> to vector<16x64xf32>
    %152 = arith.mulf %149, %151 : vector<16x64xf32>
    %cst_50 = arith.constant dense<0.000000e+00> : vector<64xf32>
    %153 = vector.multi_reduction <add>, %152, %cst_50 [0] : vector<16x64xf32> to vector<64xf32>
    %154 = vector.shape_cast %153 : vector<64xf32> to vector<1x64xf32>
    %c4 = arith.constant 4 : index
    %c0_51 = arith.constant 0 : index
    %155 = vector.load %arg21[%c4, %c0_51] : memref<8x64xf32, #tpu.memory_space<vmem>>, vector<1x64xf32>
    tpu.vector_store %arg21[%c4, %c0_51], %154 {strides = array<i32>} : memref<8x64xf32, #tpu.memory_space<vmem>>, vector<1x64xf32>,
    %156 = vector.extract_strided_slice %58 {offsets = [5, 0], sizes = [1, 64], strides = [1, 1]} : vector<8x64xf32> to vector<1x64xf32>
    %157 = vector.extract_strided_slice %43 {offsets = [5, 0], sizes = [1, 64], strides = [1, 1]} : vector<8x64xf32> to vector<1x64xf32>
    %158 = vector.broadcast %156 : vector<1x64xf32> to vector<16x64xf32>
    %159 = arith.mulf %158, %2 : vector<16x64xf32>
    %160 = math.exp %159 : vector<16x64xf32>
    %161 = arith.mulf %160, %149 : vector<16x64xf32>
    %162 = arith.mulf %156, %157 : vector<1x64xf32>
    %163 = vector.extract_strided_slice %62 {offsets = [0, 5], sizes = [16, 1], strides = [1, 1]} : vector<16x8xf32> to vector<16x1xf32>
    %164 = vector.broadcast %162 : vector<1x64xf32> to vector<16x64xf32>
    %165 = vector.broadcast %163 : vector<16x1xf32> to vector<16x64xf32>
    %166 = arith.mulf %164, %165 : vector<16x64xf32>
    %167 = arith.addf %161, %166 : vector<16x64xf32>
    %168 = vector.extract_strided_slice %64 {offsets = [0, 5], sizes = [16, 1], strides = [1, 1]} : vector<16x8xf32> to vector<16x1xf32>
    %169 = vector.broadcast %168 : vector<16x1xf32> to vector<16x64xf32>
    %170 = arith.mulf %167, %169 : vector<16x64xf32>
    %cst_52 = arith.constant dense<0.000000e+00> : vector<64xf32>
    %171 = vector.multi_reduction <add>, %170, %cst_52 [0] : vector<16x64xf32> to vector<64xf32>
    %172 = vector.shape_cast %171 : vector<64xf32> to vector<1x64xf32>
    %c5 = arith.constant 5 : index
    %c0_53 = arith.constant 0 : index
    %173 = vector.load %arg21[%c5, %c0_53] : memref<8x64xf32, #tpu.memory_space<vmem>>, vector<1x64xf32>
    tpu.vector_store %arg21[%c5, %c0_53], %172 {strides = array<i32>} : memref<8x64xf32, #tpu.memory_space<vmem>>, vector<1x64xf32>,
    %174 = vector.extract_strided_slice %58 {offsets = [6, 0], sizes = [1, 64], strides = [1, 1]} : vector<8x64xf32> to vector<1x64xf32>
    %175 = vector.extract_strided_slice %43 {offsets = [6, 0], sizes = [1, 64], strides = [1, 1]} : vector<8x64xf32> to vector<1x64xf32>
    %176 = vector.broadcast %174 : vector<1x64xf32> to vector<16x64xf32>
    %177 = arith.mulf %176, %2 : vector<16x64xf32>
    %178 = math.exp %177 : vector<16x64xf32>
    %179 = arith.mulf %178, %167 : vector<16x64xf32>
    %180 = arith.mulf %174, %175 : vector<1x64xf32>
    %181 = vector.extract_strided_slice %62 {offsets = [0, 6], sizes = [16, 1], strides = [1, 1]} : vector<16x8xf32> to vector<16x1xf32>
    %182 = vector.broadcast %180 : vector<1x64xf32> to vector<16x64xf32>
    %183 = vector.broadcast %181 : vector<16x1xf32> to vector<16x64xf32>
    %184 = arith.mulf %182, %183 : vector<16x64xf32>
    %185 = arith.addf %179, %184 : vector<16x64xf32>
    %186 = vector.extract_strided_slice %64 {offsets = [0, 6], sizes = [16, 1], strides = [1, 1]} : vector<16x8xf32> to vector<16x1xf32>
    %187 = vector.broadcast %186 : vector<16x1xf32> to vector<16x64xf32>
    %188 = arith.mulf %185, %187 : vector<16x64xf32>
    %cst_54 = arith.constant dense<0.000000e+00> : vector<64xf32>
    %189 = vector.multi_reduction <add>, %188, %cst_54 [0] : vector<16x64xf32> to vector<64xf32>
    %190 = vector.shape_cast %189 : vector<64xf32> to vector<1x64xf32>
    %c6 = arith.constant 6 : index
    %c0_55 = arith.constant 0 : index
    %191 = vector.load %arg21[%c6, %c0_55] : memref<8x64xf32, #tpu.memory_space<vmem>>, vector<1x64xf32>
    tpu.vector_store %arg21[%c6, %c0_55], %190 {strides = array<i32>} : memref<8x64xf32, #tpu.memory_space<vmem>>, vector<1x64xf32>,
    %192 = vector.extract_strided_slice %58 {offsets = [7, 0], sizes = [1, 64], strides = [1, 1]} : vector<8x64xf32> to vector<1x64xf32>
    %193 = vector.extract_strided_slice %43 {offsets = [7, 0], sizes = [1, 64], strides = [1, 1]} : vector<8x64xf32> to vector<1x64xf32>
    %194 = vector.broadcast %192 : vector<1x64xf32> to vector<16x64xf32>
    %195 = arith.mulf %194, %2 : vector<16x64xf32>
    %196 = math.exp %195 : vector<16x64xf32>
    %197 = arith.mulf %196, %185 : vector<16x64xf32>
    %198 = arith.mulf %192, %193 : vector<1x64xf32>
    %199 = vector.extract_strided_slice %62 {offsets = [0, 7], sizes = [16, 1], strides = [1, 1]} : vector<16x8xf32> to vector<16x1xf32>
    %200 = vector.broadcast %198 : vector<1x64xf32> to vector<16x64xf32>
    %201 = vector.broadcast %199 : vector<16x1xf32> to vector<16x64xf32>
    %202 = arith.mulf %200, %201 : vector<16x64xf32>
    %203 = arith.addf %197, %202 : vector<16x64xf32>
    %204 = vector.extract_strided_slice %64 {offsets = [0, 7], sizes = [16, 1], strides = [1, 1]} : vector<16x8xf32> to vector<16x1xf32>
    %205 = vector.broadcast %204 : vector<16x1xf32> to vector<16x64xf32>
    %206 = arith.mulf %203, %205 : vector<16x64xf32>
    %cst_56 = arith.constant dense<0.000000e+00> : vector<64xf32>
    %207 = vector.multi_reduction <add>, %206, %cst_56 [0] : vector<16x64xf32> to vector<64xf32>
    %208 = vector.shape_cast %207 : vector<64xf32> to vector<1x64xf32>
    %c7 = arith.constant 7 : index
    %c0_57 = arith.constant 0 : index
    %209 = vector.load %arg21[%c7, %c0_57] : memref<8x64xf32, #tpu.memory_space<vmem>>, vector<1x64xf32>
    tpu.vector_store %arg21[%c7, %c0_57], %208 {strides = array<i32>} : memref<8x64xf32, #tpu.memory_space<vmem>>, vector<1x64xf32>,
    %c0_58 = arith.constant 0 : index
    %c0_59 = arith.constant 0 : index
    %210 = vector.load %arg21[%c0_58, %c0_59] : memref<8x64xf32, #tpu.memory_space<vmem>>, vector<8x64xf32>
    %211 = vector.broadcast %3 : vector<1x64xf32> to vector<8x64xf32>
    %212 = arith.mulf %43, %211 : vector<8x64xf32>
    %213 = arith.addf %210, %212 : vector<8x64xf32>
    %cst_60 = arith.constant 5.000000e-01 : f32
    %214 = vector.broadcast %cst_60 : f32 to vector<8x64xf32>
    %215 = arith.mulf %214, %11 : vector<8x64xf32>
    %216 = math.tanh %215 : vector<8x64xf32>
    %cst_61 = arith.constant 1.000000e+00 : f32
    %217 = vector.broadcast %cst_61 : f32 to vector<8x64xf32>
    %218 = arith.addf %216, %217 : vector<8x64xf32>
    %cst_62 = arith.constant 5.000000e-01 : f32
    %219 = vector.broadcast %cst_62 : f32 to vector<8x64xf32>
    %220 = arith.mulf %219, %218 : vector<8x64xf32>
    %221 = arith.mulf %11, %220 : vector<8x64xf32>
    %222 = arith.mulf %213, %221 : vector<8x64xf32>
    %c0_63 = arith.constant 0 : index
    %c0_64 = arith.constant 0 : index
    %223 = vector.load %arg10[%c0_63, %c0_64] : memref<64x32xf32, #tpu.memory_space<vmem>>, vector<64x32xf32>
    %cst_65 = arith.constant dense<0.000000e+00> : vector<8x32xf32>
    %224 = tpu.matmul %222, %223, %cst_65 {dimension_numbers = #tpu.dot_dimension_numbers<[1], [0], [0], [1], [0, 0, 1, 1], [], []>, precision = #tpu.contract_precision<fp32>} : vector<8x64xf32>, vector<64x32xf32>, vector<8x32xf32> -> vector<8x32xf32>
    %225 = arith.addf %7, %224 : vector<8x32xf32>
    %c0_66 = arith.constant 0 : index
    %c0_67 = arith.constant 0 : index
    %226 = vector.load %arg15[%c0_66, %c0_67] : memref<1x32xf32, #tpu.memory_space<vmem>>, vector<1x32xf32>
    %c0_68 = arith.constant 0 : index
    %c0_69 = arith.constant 0 : index
    %227 = vector.load %arg16[%c0_68, %c0_69] : memref<1x32xf32, #tpu.memory_space<vmem>>, vector<1x32xf32>
    %cst_70 = arith.constant dense<0.000000e+00> : vector<8xf32>
    %228 = vector.multi_reduction <add>, %225, %cst_70 [1] : vector<8x32xf32> to vector<8xf32>
    %229 = vector.shape_cast %228 : vector<8xf32> to vector<8x1xf32>
    %cst_71 = arith.constant 3.200000e+01 : f32
    %230 = vector.broadcast %cst_71 : f32 to vector<8x1xf32>
    %231 = arith.divf %229, %230 : vector<8x1xf32>
    %232 = vector.broadcast %231 : vector<8x1xf32> to vector<8x32xf32>
    %233 = arith.subf %225, %232 : vector<8x32xf32>
    %234 = arith.mulf %233, %233 : vector<8x32xf32>
    %cst_72 = arith.constant dense<0.000000e+00> : vector<8xf32>
    %235 = vector.multi_reduction <add>, %234, %cst_72 [1] : vector<8x32xf32> to vector<8xf32>
    %236 = vector.shape_cast %235 : vector<8xf32> to vector<8x1xf32>
    %cst_73 = arith.constant 3.200000e+01 : f32
    %237 = vector.broadcast %cst_73 : f32 to vector<8x1xf32>
    %238 = arith.divf %236, %237 : vector<8x1xf32>
    %239 = vector.broadcast %231 : vector<8x1xf32> to vector<8x32xf32>
    %240 = arith.subf %225, %239 : vector<8x32xf32>
    %cst_74 = arith.constant 9.99999974E-6 : f32
    %241 = vector.broadcast %cst_74 : f32 to vector<8x1xf32>
    %242 = arith.addf %238, %241 : vector<8x1xf32>
    %243 = math.rsqrt %242 : vector<8x1xf32>
    %244 = vector.broadcast %243 : vector<8x1xf32> to vector<8x32xf32>
    %245 = arith.mulf %240, %244 : vector<8x32xf32>
    %246 = vector.broadcast %226 : vector<1x32xf32> to vector<8x32xf32>
    %247 = arith.mulf %245, %246 : vector<8x32xf32>
    %248 = vector.broadcast %227 : vector<1x32xf32> to vector<8x32xf32>
    %249 = arith.addf %247, %248 : vector<8x32xf32>
    %c0_75 = arith.constant 0 : index
    %c0_76 = arith.constant 0 : index
    %250 = vector.load %arg11[%c0_75, %c0_76] : memref<32x128xf32, #tpu.memory_space<vmem>>, vector<32x128xf32>
    %cst_77 = arith.constant dense<0.000000e+00> : vector<8x128xf32>
    %251 = tpu.matmul %249, %250, %cst_77 {dimension_numbers = #tpu.dot_dimension_numbers<[1], [0], [0], [1], [0, 0, 1, 1], [], []>, precision = #tpu.contract_precision<fp32>} : vector<8x32xf32>, vector<32x128xf32>, vector<8x128xf32> -> vector<8x128xf32>
    %c0_78 = arith.constant 0 : index
    %c0_79 = arith.constant 0 : index
    %252 = vector.load %arg12[%c0_78, %c0_79] : memref<1x128xf32, #tpu.memory_space<vmem>>, vector<1x128xf32>
    %253 = vector.broadcast %252 : vector<1x128xf32> to vector<8x128xf32>
    %254 = arith.addf %251, %253 : vector<8x128xf32>
    %cst_80 = arith.constant 5.000000e-01 : f32
    %255 = vector.broadcast %cst_80 : f32 to vector<8x128xf32>
    %256 = arith.mulf %255, %254 : vector<8x128xf32>
    %cst_81 = arith.constant 0.707106769 : f32
    %257 = vector.broadcast %cst_81 : f32 to vector<8x128xf32>
    %258 = arith.mulf %254, %257 : vector<8x128xf32>
    %cst_82 = arith.constant 0.000000e+00 : f32
    %259 = vector.broadcast %cst_82 : f32 to vector<8x128xf32>
    %260 = arith.cmpf oge, %258, %259 : vector<8x128xf32>
    %cst_83 = arith.constant 1.000000e+00 : f32
    %cst_84 = arith.constant -1.000000e+00 : f32
    %261 = vector.broadcast %cst_83 : f32 to vector<8x128xf32>
    %262 = vector.broadcast %cst_84 : f32 to vector<8x128xf32>
    %263 = arith.select %260, %261, %262 : vector<8x128xi1>, vector<8x128xf32>
    %264 = math.absf %258 : vector<8x128xf32>
    %cst_85 = arith.constant 0.327591091 : f32
    %265 = vector.broadcast %cst_85 : f32 to vector<8x128xf32>
    %266 = arith.mulf %265, %264 : vector<8x128xf32>
    %cst_86 = arith.constant 1.000000e+00 : f32
    %267 = vector.broadcast %cst_86 : f32 to vector<8x128xf32>
    %268 = arith.addf %267, %266 : vector<8x128xf32>
    %cst_87 = arith.constant 1.000000e+00 : f32
    %269 = vector.broadcast %cst_87 : f32 to vector<8x128xf32>
    %270 = arith.divf %269, %268 : vector<8x128xf32>
    %cst_88 = arith.constant 1.06140542 : f32
    %271 = vector.broadcast %cst_88 : f32 to vector<8x128xf32>
    %272 = arith.mulf %271, %270 : vector<8x128xf32>
    %cst_89 = arith.constant -1.45315206 : f32
    %273 = vector.broadcast %cst_89 : f32 to vector<8x128xf32>
    %274 = arith.addf %272, %273 : vector<8x128xf32>
    %275 = arith.mulf %274, %270 : vector<8x128xf32>
    %cst_90 = arith.constant 1.42141378 : f32
    %276 = vector.broadcast %cst_90 : f32 to vector<8x128xf32>
    %277 = arith.addf %275, %276 : vector<8x128xf32>
    %278 = arith.mulf %277, %270 : vector<8x128xf32>
    %cst_91 = arith.constant -0.284496725 : f32
    %279 = vector.broadcast %cst_91 : f32 to vector<8x128xf32>
    %280 = arith.addf %278, %279 : vector<8x128xf32>
    %281 = arith.mulf %280, %270 : vector<8x128xf32>
    %cst_92 = arith.constant 0.254829586 : f32
    %282 = vector.broadcast %cst_92 : f32 to vector<8x128xf32>
    %283 = arith.addf %281, %282 : vector<8x128xf32>
    %284 = arith.mulf %283, %270 : vector<8x128xf32>
    %cst_93 = arith.constant 0.000000e+00 : f32
    %285 = vector.broadcast %cst_93 : f32 to vector<8x128xf32>
    %286 = arith.subf %285, %264 : vector<8x128xf32>
    %287 = arith.mulf %286, %264 : vector<8x128xf32>
    %288 = math.exp %287 : vector<8x128xf32>
    %289 = arith.mulf %284, %288 : vector<8x128xf32>
    %cst_94 = arith.constant 1.000000e+00 : f32
    %290 = vector.broadcast %cst_94 : f32 to vector<8x128xf32>
    %291 = arith.subf %290, %289 : vector<8x128xf32>
    %292 = arith.mulf %263, %291 : vector<8x128xf32>
    %cst_95 = arith.constant 1.000000e+00 : f32
    %293 = vector.broadcast %cst_95 : f32 to vector<8x128xf32>
    %294 = arith.addf %293, %292 : vector<8x128xf32>
    %295 = arith.mulf %256, %294 : vector<8x128xf32>
    %c0_96 = arith.constant 0 : index
    %c0_97 = arith.constant 0 : index
    %296 = vector.load %arg13[%c0_96, %c0_97] : memref<128x32xf32, #tpu.memory_space<vmem>>, vector<128x32xf32>
    %cst_98 = arith.constant dense<0.000000e+00> : vector<8x32xf32>
    %297 = tpu.matmul %295, %296, %cst_98 {dimension_numbers = #tpu.dot_dimension_numbers<[1], [0], [0], [1], [0, 0, 1, 1], [], []>, precision = #tpu.contract_precision<fp32>} : vector<8x128xf32>, vector<128x32xf32>, vector<8x32xf32> -> vector<8x32xf32>
    %c0_99 = arith.constant 0 : index
    %c0_100 = arith.constant 0 : index
    %298 = vector.load %arg14[%c0_99, %c0_100] : memref<1x32xf32, #tpu.memory_space<vmem>>, vector<1x32xf32>
    %299 = vector.broadcast %298 : vector<1x32xf32> to vector<8x32xf32>
    %300 = arith.addf %297, %299 : vector<8x32xf32>
    %cst_101 = arith.constant 5.000000e-01 : f32
    %301 = vector.broadcast %cst_101 : f32 to vector<8x32xf32>
    %302 = arith.mulf %301, %300 : vector<8x32xf32>
    %cst_102 = arith.constant 0.707106769 : f32
    %303 = vector.broadcast %cst_102 : f32 to vector<8x32xf32>
    %304 = arith.mulf %300, %303 : vector<8x32xf32>
    %cst_103 = arith.constant 0.000000e+00 : f32
    %305 = vector.broadcast %cst_103 : f32 to vector<8x32xf32>
    %306 = arith.cmpf oge, %304, %305 : vector<8x32xf32>
    %cst_104 = arith.constant 1.000000e+00 : f32
    %cst_105 = arith.constant -1.000000e+00 : f32
    %307 = vector.broadcast %cst_104 : f32 to vector<8x32xf32>
    %308 = vector.broadcast %cst_105 : f32 to vector<8x32xf32>
    %309 = arith.select %306, %307, %308 : vector<8x32xi1>, vector<8x32xf32>
    %310 = math.absf %304 : vector<8x32xf32>
    %cst_106 = arith.constant 0.327591091 : f32
    %311 = vector.broadcast %cst_106 : f32 to vector<8x32xf32>
    %312 = arith.mulf %311, %310 : vector<8x32xf32>
    %cst_107 = arith.constant 1.000000e+00 : f32
    %313 = vector.broadcast %cst_107 : f32 to vector<8x32xf32>
    %314 = arith.addf %313, %312 : vector<8x32xf32>
    %cst_108 = arith.constant 1.000000e+00 : f32
    %315 = vector.broadcast %cst_108 : f32 to vector<8x32xf32>
    %316 = arith.divf %315, %314 : vector<8x32xf32>
    %cst_109 = arith.constant 1.06140542 : f32
    %317 = vector.broadcast %cst_109 : f32 to vector<8x32xf32>
    %318 = arith.mulf %317, %316 : vector<8x32xf32>
    %cst_110 = arith.constant -1.45315206 : f32
    %319 = vector.broadcast %cst_110 : f32 to vector<8x32xf32>
    %320 = arith.addf %318, %319 : vector<8x32xf32>
    %321 = arith.mulf %320, %316 : vector<8x32xf32>
    %cst_111 = arith.constant 1.42141378 : f32
    %322 = vector.broadcast %cst_111 : f32 to vector<8x32xf32>
    %323 = arith.addf %321, %322 : vector<8x32xf32>
    %324 = arith.mulf %323, %316 : vector<8x32xf32>
    %cst_112 = arith.constant -0.284496725 : f32
    %325 = vector.broadcast %cst_112 : f32 to vector<8x32xf32>
    %326 = arith.addf %324, %325 : vector<8x32xf32>
    %327 = arith.mulf %326, %316 : vector<8x32xf32>
    %cst_113 = arith.constant 0.254829586 : f32
    %328 = vector.broadcast %cst_113 : f32 to vector<8x32xf32>
    %329 = arith.addf %327, %328 : vector<8x32xf32>
    %330 = arith.mulf %329, %316 : vector<8x32xf32>
    %cst_114 = arith.constant 0.000000e+00 : f32
    %331 = vector.broadcast %cst_114 : f32 to vector<8x32xf32>
    %332 = arith.subf %331, %310 : vector<8x32xf32>
    %333 = arith.mulf %332, %310 : vector<8x32xf32>
    %334 = math.exp %333 : vector<8x32xf32>
    %335 = arith.mulf %330, %334 : vector<8x32xf32>
    %cst_115 = arith.constant 1.000000e+00 : f32
    %336 = vector.broadcast %cst_115 : f32 to vector<8x32xf32>
    %337 = arith.subf %336, %335 : vector<8x32xf32>
    %338 = arith.mulf %309, %337 : vector<8x32xf32>
    %cst_116 = arith.constant 1.000000e+00 : f32
    %339 = vector.broadcast %cst_116 : f32 to vector<8x32xf32>
    %340 = arith.addf %339, %338 : vector<8x32xf32>
    %341 = arith.mulf %302, %340 : vector<8x32xf32>
    %342 = arith.addf %249, %341 : vector<8x32xf32>
    %c0_117 = arith.constant 0 : index
    %c0_118 = arith.constant 0 : index
    %343 = vector.load %arg17[%c0_117, %c0_118] : memref<1x32xf32, #tpu.memory_space<vmem>>, vector<1x32xf32>
    %c0_119 = arith.constant 0 : index
    %c0_120 = arith.constant 0 : index
    %344 = vector.load %arg18[%c0_119, %c0_120] : memref<1x32xf32, #tpu.memory_space<vmem>>, vector<1x32xf32>
    %cst_121 = arith.constant dense<0.000000e+00> : vector<8xf32>
    %345 = vector.multi_reduction <add>, %342, %cst_121 [1] : vector<8x32xf32> to vector<8xf32>
    %346 = vector.shape_cast %345 : vector<8xf32> to vector<8x1xf32>
    %cst_122 = arith.constant 3.200000e+01 : f32
    %347 = vector.broadcast %cst_122 : f32 to vector<8x1xf32>
    %348 = arith.divf %346, %347 : vector<8x1xf32>
    %349 = vector.broadcast %348 : vector<8x1xf32> to vector<8x32xf32>
    %350 = arith.subf %342, %349 : vector<8x32xf32>
    %351 = arith.mulf %350, %350 : vector<8x32xf32>
    %cst_123 = arith.constant dense<0.000000e+00> : vector<8xf32>
    %352 = vector.multi_reduction <add>, %351, %cst_123 [1] : vector<8x32xf32> to vector<8xf32>
    %353 = vector.shape_cast %352 : vector<8xf32> to vector<8x1xf32>
    %cst_124 = arith.constant 3.200000e+01 : f32
    %354 = vector.broadcast %cst_124 : f32 to vector<8x1xf32>
    %355 = arith.divf %353, %354 : vector<8x1xf32>
    %356 = vector.broadcast %348 : vector<8x1xf32> to vector<8x32xf32>
    %357 = arith.subf %342, %356 : vector<8x32xf32>
    %cst_125 = arith.constant 9.99999974E-6 : f32
    %358 = vector.broadcast %cst_125 : f32 to vector<8x1xf32>
    %359 = arith.addf %355, %358 : vector<8x1xf32>
    %360 = math.rsqrt %359 : vector<8x1xf32>
    %361 = vector.broadcast %360 : vector<8x1xf32> to vector<8x32xf32>
    %362 = arith.mulf %357, %361 : vector<8x32xf32>
    %363 = vector.broadcast %343 : vector<1x32xf32> to vector<8x32xf32>
    %364 = arith.mulf %362, %363 : vector<8x32xf32>
    %365 = vector.broadcast %344 : vector<1x32xf32> to vector<8x32xf32>
    %366 = arith.addf %364, %365 : vector<8x32xf32>
    %c0_126 = arith.constant 0 : index
    %c0_127 = arith.constant 0 : index
    %367 = vector.load %arg2[%c0_126, %c0_127] : memref<32x128xf32, #tpu.memory_space<vmem>>, vector<32x128xf32>
    %cst_128 = arith.constant dense<0.000000e+00> : vector<8x128xf32>
    %368 = tpu.matmul %366, %367, %cst_128 {dimension_numbers = #tpu.dot_dimension_numbers<[1], [0], [0], [1], [0, 0, 1, 1], [], []>, precision = #tpu.contract_precision<fp32>} : vector<8x32xf32>, vector<32x128xf32>, vector<8x128xf32> -> vector<8x128xf32>
    %369 = vector.extract_strided_slice %368 {offsets = [0, 0], sizes = [8, 64], strides = [1, 1]} : vector<8x128xf32> to vector<8x64xf32>
    %370 = vector.extract_strided_slice %368 {offsets = [0, 64], sizes = [8, 64], strides = [1, 1]} : vector<8x128xf32> to vector<8x64xf32>
    %c3_129 = arith.constant 3 : index
    %c0_130 = arith.constant 0 : index
    %371 = vector.load %arg20[%c3_129, %c0_130] : memref<11x64xf32, #tpu.memory_space<vmem>>, vector<8x64xf32>
    tpu.vector_store %arg20[%c3_129, %c0_130], %369 {strides = array<i32>} : memref<11x64xf32, #tpu.memory_space<vmem>>, vector<8x64xf32>,
    %cst_131 = arith.constant 0.000000e+00 : f32
    %372 = vector.broadcast %cst_131 : f32 to vector<8x64xf32>
    %373 = vector.extract_strided_slice %0 {offsets = [0, 0], sizes = [1, 64], strides = [1, 1]} : vector<4x64xf32> to vector<1x64xf32>
    %c0_132 = arith.constant 0 : index
    %c0_133 = arith.constant 0 : index
    %374 = vector.load %arg20[%c0_132, %c0_133] : memref<11x64xf32, #tpu.memory_space<vmem>>, vector<8x64xf32>
    %375 = vector.broadcast %373 : vector<1x64xf32> to vector<8x64xf32>
    %376 = arith.mulf %375, %374 : vector<8x64xf32>
    %377 = arith.addf %372, %376 : vector<8x64xf32>
    %378 = vector.extract_strided_slice %0 {offsets = [1, 0], sizes = [1, 64], strides = [1, 1]} : vector<4x64xf32> to vector<1x64xf32>
    %c1_134 = arith.constant 1 : index
    %c0_135 = arith.constant 0 : index
    %379 = vector.load %arg20[%c1_134, %c0_135] : memref<11x64xf32, #tpu.memory_space<vmem>>, vector<8x64xf32>
    %380 = vector.broadcast %378 : vector<1x64xf32> to vector<8x64xf32>
    %381 = arith.mulf %380, %379 : vector<8x64xf32>
    %382 = arith.addf %377, %381 : vector<8x64xf32>
    %383 = vector.extract_strided_slice %0 {offsets = [2, 0], sizes = [1, 64], strides = [1, 1]} : vector<4x64xf32> to vector<1x64xf32>
    %c2_136 = arith.constant 2 : index
    %c0_137 = arith.constant 0 : index
    %384 = vector.load %arg20[%c2_136, %c0_137] : memref<11x64xf32, #tpu.memory_space<vmem>>, vector<8x64xf32>
    %385 = vector.broadcast %383 : vector<1x64xf32> to vector<8x64xf32>
    %386 = arith.mulf %385, %384 : vector<8x64xf32>
    %387 = arith.addf %382, %386 : vector<8x64xf32>
    %388 = vector.extract_strided_slice %0 {offsets = [3, 0], sizes = [1, 64], strides = [1, 1]} : vector<4x64xf32> to vector<1x64xf32>
    %c3_138 = arith.constant 3 : index
    %c0_139 = arith.constant 0 : index
    %389 = vector.load %arg20[%c3_138, %c0_139] : memref<11x64xf32, #tpu.memory_space<vmem>>, vector<8x64xf32>
    %390 = vector.broadcast %388 : vector<1x64xf32> to vector<8x64xf32>
    %391 = arith.mulf %390, %389 : vector<8x64xf32>
    %392 = arith.addf %387, %391 : vector<8x64xf32>
    %393 = vector.broadcast %1 : vector<1x64xf32> to vector<8x64xf32>
    %394 = arith.addf %392, %393 : vector<8x64xf32>
    %cst_140 = arith.constant 5.000000e-01 : f32
    %395 = vector.broadcast %cst_140 : f32 to vector<8x64xf32>
    %396 = arith.mulf %395, %394 : vector<8x64xf32>
    %397 = math.tanh %396 : vector<8x64xf32>
    %cst_141 = arith.constant 1.000000e+00 : f32
    %398 = vector.broadcast %cst_141 : f32 to vector<8x64xf32>
    %399 = arith.addf %397, %398 : vector<8x64xf32>
    %cst_142 = arith.constant 5.000000e-01 : f32
    %400 = vector.broadcast %cst_142 : f32 to vector<8x64xf32>
    %401 = arith.mulf %400, %399 : vector<8x64xf32>
    %402 = arith.mulf %394, %401 : vector<8x64xf32>
    %c0_143 = arith.constant 0 : index
    %c0_144 = arith.constant 0 : index
    %403 = vector.load %arg5[%c0_143, %c0_144] : memref<64x64xf32, #tpu.memory_space<vmem>>, vector<64x64xf32>
    %cst_145 = arith.constant dense<0.000000e+00> : vector<8x64xf32>
    %404 = tpu.matmul %402, %403, %cst_145 {dimension_numbers = #tpu.dot_dimension_numbers<[1], [0], [0], [1], [0, 0, 1, 1], [], []>, precision = #tpu.contract_precision<fp32>} : vector<8x64xf32>, vector<64x64xf32>, vector<8x64xf32> -> vector<8x64xf32>
    %c0_146 = arith.constant 0 : index
    %c0_147 = arith.constant 0 : index
    %405 = vector.load %arg6[%c0_146, %c0_147] : memref<1x64xf32, #tpu.memory_space<vmem>>, vector<1x64xf32>
    %406 = vector.broadcast %405 : vector<1x64xf32> to vector<8x64xf32>
    %407 = arith.addf %404, %406 : vector<8x64xf32>
    %cst_148 = arith.constant 0.000000e+00 : f32
    %408 = vector.broadcast %cst_148 : f32 to vector<8x64xf32>
    %409 = arith.maximumf %407, %408 : vector<8x64xf32>
    %410 = math.absf %407 : vector<8x64xf32>
    %cst_149 = arith.constant 0.000000e+00 : f32
    %411 = vector.broadcast %cst_149 : f32 to vector<8x64xf32>
    %412 = arith.subf %411, %410 : vector<8x64xf32>
    %413 = math.exp %412 : vector<8x64xf32>
    %cst_150 = arith.constant 1.000000e+00 : f32
    %414 = vector.broadcast %cst_150 : f32 to vector<8x64xf32>
    %415 = arith.addf %414, %413 : vector<8x64xf32>
    %416 = math.log %415 : vector<8x64xf32>
    %417 = arith.addf %409, %416 : vector<8x64xf32>
    %c0_151 = arith.constant 0 : index
    %c0_152 = arith.constant 0 : index
    %418 = vector.load %arg7[%c0_151, %c0_152] : memref<64x32xf32, #tpu.memory_space<vmem>>, vector<64x32xf32>
    %cst_153 = arith.constant dense<0.000000e+00> : vector<8x32xf32>
    %419 = tpu.matmul %402, %418, %cst_153 {dimension_numbers = #tpu.dot_dimension_numbers<[1], [0], [0], [1], [0, 0, 1, 1], [], []>, precision = #tpu.contract_precision<fp32>} : vector<8x64xf32>, vector<64x32xf32>, vector<8x32xf32> -> vector<8x32xf32>
    %420 = vector.extract_strided_slice %419 {offsets = [0, 0], sizes = [8, 16], strides = [1, 1]} : vector<8x32xf32> to vector<8x16xf32>
    %421 = tpu.transpose %420, [1, 0] : vector<8x16xf32> -> vector<16x8xf32>
    %422 = vector.extract_strided_slice %419 {offsets = [0, 16], sizes = [8, 16], strides = [1, 1]} : vector<8x32xf32> to vector<8x16xf32>
    %423 = tpu.transpose %422, [1, 0] : vector<8x16xf32> -> vector<16x8xf32>
    %cst_154 = arith.constant 0.000000e+00 : f32
    %424 = vector.broadcast %cst_154 : f32 to vector<16x64xf32>
    %425 = vector.extract_strided_slice %417 {offsets = [0, 0], sizes = [1, 64], strides = [1, 1]} : vector<8x64xf32> to vector<1x64xf32>
    %426 = vector.extract_strided_slice %402 {offsets = [0, 0], sizes = [1, 64], strides = [1, 1]} : vector<8x64xf32> to vector<1x64xf32>
    %427 = vector.broadcast %425 : vector<1x64xf32> to vector<16x64xf32>
    %428 = arith.mulf %427, %2 : vector<16x64xf32>
    %429 = math.exp %428 : vector<16x64xf32>
    %430 = arith.mulf %429, %424 : vector<16x64xf32>
    %431 = arith.mulf %425, %426 : vector<1x64xf32>
    %432 = vector.extract_strided_slice %421 {offsets = [0, 0], sizes = [16, 1], strides = [1, 1]} : vector<16x8xf32> to vector<16x1xf32>
    %433 = vector.broadcast %431 : vector<1x64xf32> to vector<16x64xf32>
    %434 = vector.broadcast %432 : vector<16x1xf32> to vector<16x64xf32>
    %435 = arith.mulf %433, %434 : vector<16x64xf32>
    %436 = arith.addf %430, %435 : vector<16x64xf32>
    %437 = vector.extract_strided_slice %423 {offsets = [0, 0], sizes = [16, 1], strides = [1, 1]} : vector<16x8xf32> to vector<16x1xf32>
    %438 = vector.broadcast %437 : vector<16x1xf32> to vector<16x64xf32>
    %439 = arith.mulf %436, %438 : vector<16x64xf32>
    %cst_155 = arith.constant dense<0.000000e+00> : vector<64xf32>
    %440 = vector.multi_reduction <add>, %439, %cst_155 [0] : vector<16x64xf32> to vector<64xf32>
    %441 = vector.shape_cast %440 : vector<64xf32> to vector<1x64xf32>
    %c0_156 = arith.constant 0 : index
    %c0_157 = arith.constant 0 : index
    %442 = vector.load %arg21[%c0_156, %c0_157] : memref<8x64xf32, #tpu.memory_space<vmem>>, vector<1x64xf32>
    tpu.vector_store %arg21[%c0_156, %c0_157], %441 {strides = array<i32>} : memref<8x64xf32, #tpu.memory_space<vmem>>, vector<1x64xf32>,
    %443 = vector.extract_strided_slice %417 {offsets = [1, 0], sizes = [1, 64], strides = [1, 1]} : vector<8x64xf32> to vector<1x64xf32>
    %444 = vector.extract_strided_slice %402 {offsets = [1, 0], sizes = [1, 64], strides = [1, 1]} : vector<8x64xf32> to vector<1x64xf32>
    %445 = vector.broadcast %443 : vector<1x64xf32> to vector<16x64xf32>
    %446 = arith.mulf %445, %2 : vector<16x64xf32>
    %447 = math.exp %446 : vector<16x64xf32>
    %448 = arith.mulf %447, %436 : vector<16x64xf32>
    %449 = arith.mulf %443, %444 : vector<1x64xf32>
    %450 = vector.extract_strided_slice %421 {offsets = [0, 1], sizes = [16, 1], strides = [1, 1]} : vector<16x8xf32> to vector<16x1xf32>
    %451 = vector.broadcast %449 : vector<1x64xf32> to vector<16x64xf32>
    %452 = vector.broadcast %450 : vector<16x1xf32> to vector<16x64xf32>
    %453 = arith.mulf %451, %452 : vector<16x64xf32>
    %454 = arith.addf %448, %453 : vector<16x64xf32>
    %455 = vector.extract_strided_slice %423 {offsets = [0, 1], sizes = [16, 1], strides = [1, 1]} : vector<16x8xf32> to vector<16x1xf32>
    %456 = vector.broadcast %455 : vector<16x1xf32> to vector<16x64xf32>
    %457 = arith.mulf %454, %456 : vector<16x64xf32>
    %cst_158 = arith.constant dense<0.000000e+00> : vector<64xf32>
    %458 = vector.multi_reduction <add>, %457, %cst_158 [0] : vector<16x64xf32> to vector<64xf32>
    %459 = vector.shape_cast %458 : vector<64xf32> to vector<1x64xf32>
    %c1_159 = arith.constant 1 : index
    %c0_160 = arith.constant 0 : index
    %460 = vector.load %arg21[%c1_159, %c0_160] : memref<8x64xf32, #tpu.memory_space<vmem>>, vector<1x64xf32>
    tpu.vector_store %arg21[%c1_159, %c0_160], %459 {strides = array<i32>} : memref<8x64xf32, #tpu.memory_space<vmem>>, vector<1x64xf32>,
    %461 = vector.extract_strided_slice %417 {offsets = [2, 0], sizes = [1, 64], strides = [1, 1]} : vector<8x64xf32> to vector<1x64xf32>
    %462 = vector.extract_strided_slice %402 {offsets = [2, 0], sizes = [1, 64], strides = [1, 1]} : vector<8x64xf32> to vector<1x64xf32>
    %463 = vector.broadcast %461 : vector<1x64xf32> to vector<16x64xf32>
    %464 = arith.mulf %463, %2 : vector<16x64xf32>
    %465 = math.exp %464 : vector<16x64xf32>
    %466 = arith.mulf %465, %454 : vector<16x64xf32>
    %467 = arith.mulf %461, %462 : vector<1x64xf32>
    %468 = vector.extract_strided_slice %421 {offsets = [0, 2], sizes = [16, 1], strides = [1, 1]} : vector<16x8xf32> to vector<16x1xf32>
    %469 = vector.broadcast %467 : vector<1x64xf32> to vector<16x64xf32>
    %470 = vector.broadcast %468 : vector<16x1xf32> to vector<16x64xf32>
    %471 = arith.mulf %469, %470 : vector<16x64xf32>
    %472 = arith.addf %466, %471 : vector<16x64xf32>
    %473 = vector.extract_strided_slice %423 {offsets = [0, 2], sizes = [16, 1], strides = [1, 1]} : vector<16x8xf32> to vector<16x1xf32>
    %474 = vector.broadcast %473 : vector<16x1xf32> to vector<16x64xf32>
    %475 = arith.mulf %472, %474 : vector<16x64xf32>
    %cst_161 = arith.constant dense<0.000000e+00> : vector<64xf32>
    %476 = vector.multi_reduction <add>, %475, %cst_161 [0] : vector<16x64xf32> to vector<64xf32>
    %477 = vector.shape_cast %476 : vector<64xf32> to vector<1x64xf32>
    %c2_162 = arith.constant 2 : index
    %c0_163 = arith.constant 0 : index
    %478 = vector.load %arg21[%c2_162, %c0_163] : memref<8x64xf32, #tpu.memory_space<vmem>>, vector<1x64xf32>
    tpu.vector_store %arg21[%c2_162, %c0_163], %477 {strides = array<i32>} : memref<8x64xf32, #tpu.memory_space<vmem>>, vector<1x64xf32>,
    %479 = vector.extract_strided_slice %417 {offsets = [3, 0], sizes = [1, 64], strides = [1, 1]} : vector<8x64xf32> to vector<1x64xf32>
    %480 = vector.extract_strided_slice %402 {offsets = [3, 0], sizes = [1, 64], strides = [1, 1]} : vector<8x64xf32> to vector<1x64xf32>
    %481 = vector.broadcast %479 : vector<1x64xf32> to vector<16x64xf32>
    %482 = arith.mulf %481, %2 : vector<16x64xf32>
    %483 = math.exp %482 : vector<16x64xf32>
    %484 = arith.mulf %483, %472 : vector<16x64xf32>
    %485 = arith.mulf %479, %480 : vector<1x64xf32>
    %486 = vector.extract_strided_slice %421 {offsets = [0, 3], sizes = [16, 1], strides = [1, 1]} : vector<16x8xf32> to vector<16x1xf32>
    %487 = vector.broadcast %485 : vector<1x64xf32> to vector<16x64xf32>
    %488 = vector.broadcast %486 : vector<16x1xf32> to vector<16x64xf32>
    %489 = arith.mulf %487, %488 : vector<16x64xf32>
    %490 = arith.addf %484, %489 : vector<16x64xf32>
    %491 = vector.extract_strided_slice %423 {offsets = [0, 3], sizes = [16, 1], strides = [1, 1]} : vector<16x8xf32> to vector<16x1xf32>
    %492 = vector.broadcast %491 : vector<16x1xf32> to vector<16x64xf32>
    %493 = arith.mulf %490, %492 : vector<16x64xf32>
    %cst_164 = arith.constant dense<0.000000e+00> : vector<64xf32>
    %494 = vector.multi_reduction <add>, %493, %cst_164 [0] : vector<16x64xf32> to vector<64xf32>
    %495 = vector.shape_cast %494 : vector<64xf32> to vector<1x64xf32>
    %c3_165 = arith.constant 3 : index
    %c0_166 = arith.constant 0 : index
    %496 = vector.load %arg21[%c3_165, %c0_166] : memref<8x64xf32, #tpu.memory_space<vmem>>, vector<1x64xf32>
    tpu.vector_store %arg21[%c3_165, %c0_166], %495 {strides = array<i32>} : memref<8x64xf32, #tpu.memory_space<vmem>>, vector<1x64xf32>,
    %497 = vector.extract_strided_slice %417 {offsets = [4, 0], sizes = [1, 64], strides = [1, 1]} : vector<8x64xf32> to vector<1x64xf32>
    %498 = vector.extract_strided_slice %402 {offsets = [4, 0], sizes = [1, 64], strides = [1, 1]} : vector<8x64xf32> to vector<1x64xf32>
    %499 = vector.broadcast %497 : vector<1x64xf32> to vector<16x64xf32>
    %500 = arith.mulf %499, %2 : vector<16x64xf32>
    %501 = math.exp %500 : vector<16x64xf32>
    %502 = arith.mulf %501, %490 : vector<16x64xf32>
    %503 = arith.mulf %497, %498 : vector<1x64xf32>
    %504 = vector.extract_strided_slice %421 {offsets = [0, 4], sizes = [16, 1], strides = [1, 1]} : vector<16x8xf32> to vector<16x1xf32>
    %505 = vector.broadcast %503 : vector<1x64xf32> to vector<16x64xf32>
    %506 = vector.broadcast %504 : vector<16x1xf32> to vector<16x64xf32>
    %507 = arith.mulf %505, %506 : vector<16x64xf32>
    %508 = arith.addf %502, %507 : vector<16x64xf32>
    %509 = vector.extract_strided_slice %423 {offsets = [0, 4], sizes = [16, 1], strides = [1, 1]} : vector<16x8xf32> to vector<16x1xf32>
    %510 = vector.broadcast %509 : vector<16x1xf32> to vector<16x64xf32>
    %511 = arith.mulf %508, %510 : vector<16x64xf32>
    %cst_167 = arith.constant dense<0.000000e+00> : vector<64xf32>
    %512 = vector.multi_reduction <add>, %511, %cst_167 [0] : vector<16x64xf32> to vector<64xf32>
    %513 = vector.shape_cast %512 : vector<64xf32> to vector<1x64xf32>
    %c4_168 = arith.constant 4 : index
    %c0_169 = arith.constant 0 : index
    %514 = vector.load %arg21[%c4_168, %c0_169] : memref<8x64xf32, #tpu.memory_space<vmem>>, vector<1x64xf32>
    tpu.vector_store %arg21[%c4_168, %c0_169], %513 {strides = array<i32>} : memref<8x64xf32, #tpu.memory_space<vmem>>, vector<1x64xf32>,
    %515 = vector.extract_strided_slice %417 {offsets = [5, 0], sizes = [1, 64], strides = [1, 1]} : vector<8x64xf32> to vector<1x64xf32>
    %516 = vector.extract_strided_slice %402 {offsets = [5, 0], sizes = [1, 64], strides = [1, 1]} : vector<8x64xf32> to vector<1x64xf32>
    %517 = vector.broadcast %515 : vector<1x64xf32> to vector<16x64xf32>
    %518 = arith.mulf %517, %2 : vector<16x64xf32>
    %519 = math.exp %518 : vector<16x64xf32>
    %520 = arith.mulf %519, %508 : vector<16x64xf32>
    %521 = arith.mulf %515, %516 : vector<1x64xf32>
    %522 = vector.extract_strided_slice %421 {offsets = [0, 5], sizes = [16, 1], strides = [1, 1]} : vector<16x8xf32> to vector<16x1xf32>
    %523 = vector.broadcast %521 : vector<1x64xf32> to vector<16x64xf32>
    %524 = vector.broadcast %522 : vector<16x1xf32> to vector<16x64xf32>
    %525 = arith.mulf %523, %524 : vector<16x64xf32>
    %526 = arith.addf %520, %525 : vector<16x64xf32>
    %527 = vector.extract_strided_slice %423 {offsets = [0, 5], sizes = [16, 1], strides = [1, 1]} : vector<16x8xf32> to vector<16x1xf32>
    %528 = vector.broadcast %527 : vector<16x1xf32> to vector<16x64xf32>
    %529 = arith.mulf %526, %528 : vector<16x64xf32>
    %cst_170 = arith.constant dense<0.000000e+00> : vector<64xf32>
    %530 = vector.multi_reduction <add>, %529, %cst_170 [0] : vector<16x64xf32> to vector<64xf32>
    %531 = vector.shape_cast %530 : vector<64xf32> to vector<1x64xf32>
    %c5_171 = arith.constant 5 : index
    %c0_172 = arith.constant 0 : index
    %532 = vector.load %arg21[%c5_171, %c0_172] : memref<8x64xf32, #tpu.memory_space<vmem>>, vector<1x64xf32>
    tpu.vector_store %arg21[%c5_171, %c0_172], %531 {strides = array<i32>} : memref<8x64xf32, #tpu.memory_space<vmem>>, vector<1x64xf32>,
    %533 = vector.extract_strided_slice %417 {offsets = [6, 0], sizes = [1, 64], strides = [1, 1]} : vector<8x64xf32> to vector<1x64xf32>
    %534 = vector.extract_strided_slice %402 {offsets = [6, 0], sizes = [1, 64], strides = [1, 1]} : vector<8x64xf32> to vector<1x64xf32>
    %535 = vector.broadcast %533 : vector<1x64xf32> to vector<16x64xf32>
    %536 = arith.mulf %535, %2 : vector<16x64xf32>
    %537 = math.exp %536 : vector<16x64xf32>
    %538 = arith.mulf %537, %526 : vector<16x64xf32>
    %539 = arith.mulf %533, %534 : vector<1x64xf32>
    %540 = vector.extract_strided_slice %421 {offsets = [0, 6], sizes = [16, 1], strides = [1, 1]} : vector<16x8xf32> to vector<16x1xf32>
    %541 = vector.broadcast %539 : vector<1x64xf32> to vector<16x64xf32>
    %542 = vector.broadcast %540 : vector<16x1xf32> to vector<16x64xf32>
    %543 = arith.mulf %541, %542 : vector<16x64xf32>
    %544 = arith.addf %538, %543 : vector<16x64xf32>
    %545 = vector.extract_strided_slice %423 {offsets = [0, 6], sizes = [16, 1], strides = [1, 1]} : vector<16x8xf32> to vector<16x1xf32>
    %546 = vector.broadcast %545 : vector<16x1xf32> to vector<16x64xf32>
    %547 = arith.mulf %544, %546 : vector<16x64xf32>
    %cst_173 = arith.constant dense<0.000000e+00> : vector<64xf32>
    %548 = vector.multi_reduction <add>, %547, %cst_173 [0] : vector<16x64xf32> to vector<64xf32>
    %549 = vector.shape_cast %548 : vector<64xf32> to vector<1x64xf32>
    %c6_174 = arith.constant 6 : index
    %c0_175 = arith.constant 0 : index
    %550 = vector.load %arg21[%c6_174, %c0_175] : memref<8x64xf32, #tpu.memory_space<vmem>>, vector<1x64xf32>
    tpu.vector_store %arg21[%c6_174, %c0_175], %549 {strides = array<i32>} : memref<8x64xf32, #tpu.memory_space<vmem>>, vector<1x64xf32>,
    %551 = vector.extract_strided_slice %417 {offsets = [7, 0], sizes = [1, 64], strides = [1, 1]} : vector<8x64xf32> to vector<1x64xf32>
    %552 = vector.extract_strided_slice %402 {offsets = [7, 0], sizes = [1, 64], strides = [1, 1]} : vector<8x64xf32> to vector<1x64xf32>
    %553 = vector.broadcast %551 : vector<1x64xf32> to vector<16x64xf32>
    %554 = arith.mulf %553, %2 : vector<16x64xf32>
    %555 = math.exp %554 : vector<16x64xf32>
    %556 = arith.mulf %555, %544 : vector<16x64xf32>
    %557 = arith.mulf %551, %552 : vector<1x64xf32>
    %558 = vector.extract_strided_slice %421 {offsets = [0, 7], sizes = [16, 1], strides = [1, 1]} : vector<16x8xf32> to vector<16x1xf32>
    %559 = vector.broadcast %557 : vector<1x64xf32> to vector<16x64xf32>
    %560 = vector.broadcast %558 : vector<16x1xf32> to vector<16x64xf32>
    %561 = arith.mulf %559, %560 : vector<16x64xf32>
    %562 = arith.addf %556, %561 : vector<16x64xf32>
    %563 = vector.extract_strided_slice %423 {offsets = [0, 7], sizes = [16, 1], strides = [1, 1]} : vector<16x8xf32> to vector<16x1xf32>
    %564 = vector.broadcast %563 : vector<16x1xf32> to vector<16x64xf32>
    %565 = arith.mulf %562, %564 : vector<16x64xf32>
    %cst_176 = arith.constant dense<0.000000e+00> : vector<64xf32>
    %566 = vector.multi_reduction <add>, %565, %cst_176 [0] : vector<16x64xf32> to vector<64xf32>
    %567 = vector.shape_cast %566 : vector<64xf32> to vector<1x64xf32>
    %c7_177 = arith.constant 7 : index
    %c0_178 = arith.constant 0 : index
    %568 = vector.load %arg21[%c7_177, %c0_178] : memref<8x64xf32, #tpu.memory_space<vmem>>, vector<1x64xf32>
    tpu.vector_store %arg21[%c7_177, %c0_178], %567 {strides = array<i32>} : memref<8x64xf32, #tpu.memory_space<vmem>>, vector<1x64xf32>,
    %c0_179 = arith.constant 0 : index
    %c0_180 = arith.constant 0 : index
    %569 = vector.load %arg21[%c0_179, %c0_180] : memref<8x64xf32, #tpu.memory_space<vmem>>, vector<8x64xf32>
    %570 = vector.broadcast %3 : vector<1x64xf32> to vector<8x64xf32>
    %571 = arith.mulf %402, %570 : vector<8x64xf32>
    %572 = arith.addf %569, %571 : vector<8x64xf32>
    %cst_181 = arith.constant 5.000000e-01 : f32
    %573 = vector.broadcast %cst_181 : f32 to vector<8x64xf32>
    %574 = arith.mulf %573, %370 : vector<8x64xf32>
    %575 = math.tanh %574 : vector<8x64xf32>
    %cst_182 = arith.constant 1.000000e+00 : f32
    %576 = vector.broadcast %cst_182 : f32 to vector<8x64xf32>
    %577 = arith.addf %575, %576 : vector<8x64xf32>
    %cst_183 = arith.constant 5.000000e-01 : f32
    %578 = vector.broadcast %cst_183 : f32 to vector<8x64xf32>
    %579 = arith.mulf %578, %577 : vector<8x64xf32>
    %580 = arith.mulf %370, %579 : vector<8x64xf32>
    %581 = arith.mulf %572, %580 : vector<8x64xf32>
    %c0_184 = arith.constant 0 : index
    %c0_185 = arith.constant 0 : index
    %582 = vector.load %arg10[%c0_184, %c0_185] : memref<64x32xf32, #tpu.memory_space<vmem>>, vector<64x32xf32>
    %cst_186 = arith.constant dense<0.000000e+00> : vector<8x32xf32>
    %583 = tpu.matmul %581, %582, %cst_186 {dimension_numbers = #tpu.dot_dimension_numbers<[1], [0], [0], [1], [0, 0, 1, 1], [], []>, precision = #tpu.contract_precision<fp32>} : vector<8x64xf32>, vector<64x32xf32>, vector<8x32xf32> -> vector<8x32xf32>
    %584 = arith.addf %366, %583 : vector<8x32xf32>
    %c0_187 = arith.constant 0 : index
    %c0_188 = arith.constant 0 : index
    %585 = vector.load %arg15[%c0_187, %c0_188] : memref<1x32xf32, #tpu.memory_space<vmem>>, vector<1x32xf32>
    %c0_189 = arith.constant 0 : index
    %c0_190 = arith.constant 0 : index
    %586 = vector.load %arg16[%c0_189, %c0_190] : memref<1x32xf32, #tpu.memory_space<vmem>>, vector<1x32xf32>
    %cst_191 = arith.constant dense<0.000000e+00> : vector<8xf32>
    %587 = vector.multi_reduction <add>, %584, %cst_191 [1] : vector<8x32xf32> to vector<8xf32>
    %588 = vector.shape_cast %587 : vector<8xf32> to vector<8x1xf32>
    %cst_192 = arith.constant 3.200000e+01 : f32
    %589 = vector.broadcast %cst_192 : f32 to vector<8x1xf32>
    %590 = arith.divf %588, %589 : vector<8x1xf32>
    %591 = vector.broadcast %590 : vector<8x1xf32> to vector<8x32xf32>
    %592 = arith.subf %584, %591 : vector<8x32xf32>
    %593 = arith.mulf %592, %592 : vector<8x32xf32>
    %cst_193 = arith.constant dense<0.000000e+00> : vector<8xf32>
    %594 = vector.multi_reduction <add>, %593, %cst_193 [1] : vector<8x32xf32> to vector<8xf32>
    %595 = vector.shape_cast %594 : vector<8xf32> to vector<8x1xf32>
    %cst_194 = arith.constant 3.200000e+01 : f32
    %596 = vector.broadcast %cst_194 : f32 to vector<8x1xf32>
    %597 = arith.divf %595, %596 : vector<8x1xf32>
    %598 = vector.broadcast %590 : vector<8x1xf32> to vector<8x32xf32>
    %599 = arith.subf %584, %598 : vector<8x32xf32>
    %cst_195 = arith.constant 9.99999974E-6 : f32
    %600 = vector.broadcast %cst_195 : f32 to vector<8x1xf32>
    %601 = arith.addf %597, %600 : vector<8x1xf32>
    %602 = math.rsqrt %601 : vector<8x1xf32>
    %603 = vector.broadcast %602 : vector<8x1xf32> to vector<8x32xf32>
    %604 = arith.mulf %599, %603 : vector<8x32xf32>
    %605 = vector.broadcast %585 : vector<1x32xf32> to vector<8x32xf32>
    %606 = arith.mulf %604, %605 : vector<8x32xf32>
    %607 = vector.broadcast %586 : vector<1x32xf32> to vector<8x32xf32>
    %608 = arith.addf %606, %607 : vector<8x32xf32>
    %c0_196 = arith.constant 0 : index
    %c0_197 = arith.constant 0 : index
    %609 = vector.load %arg11[%c0_196, %c0_197] : memref<32x128xf32, #tpu.memory_space<vmem>>, vector<32x128xf32>
    %cst_198 = arith.constant dense<0.000000e+00> : vector<8x128xf32>
    %610 = tpu.matmul %608, %609, %cst_198 {dimension_numbers = #tpu.dot_dimension_numbers<[1], [0], [0], [1], [0, 0, 1, 1], [], []>, precision = #tpu.contract_precision<fp32>} : vector<8x32xf32>, vector<32x128xf32>, vector<8x128xf32> -> vector<8x128xf32>
    %c0_199 = arith.constant 0 : index
    %c0_200 = arith.constant 0 : index
    %611 = vector.load %arg12[%c0_199, %c0_200] : memref<1x128xf32, #tpu.memory_space<vmem>>, vector<1x128xf32>
    %612 = vector.broadcast %611 : vector<1x128xf32> to vector<8x128xf32>
    %613 = arith.addf %610, %612 : vector<8x128xf32>
    %cst_201 = arith.constant 5.000000e-01 : f32
    %614 = vector.broadcast %cst_201 : f32 to vector<8x128xf32>
    %615 = arith.mulf %614, %613 : vector<8x128xf32>
    %cst_202 = arith.constant 0.707106769 : f32
    %616 = vector.broadcast %cst_202 : f32 to vector<8x128xf32>
    %617 = arith.mulf %613, %616 : vector<8x128xf32>
    %cst_203 = arith.constant 0.000000e+00 : f32
    %618 = vector.broadcast %cst_203 : f32 to vector<8x128xf32>
    %619 = arith.cmpf oge, %617, %618 : vector<8x128xf32>
    %cst_204 = arith.constant 1.000000e+00 : f32
    %cst_205 = arith.constant -1.000000e+00 : f32
    %620 = vector.broadcast %cst_204 : f32 to vector<8x128xf32>
    %621 = vector.broadcast %cst_205 : f32 to vector<8x128xf32>
    %622 = arith.select %619, %620, %621 : vector<8x128xi1>, vector<8x128xf32>
    %623 = math.absf %617 : vector<8x128xf32>
    %cst_206 = arith.constant 0.327591091 : f32
    %624 = vector.broadcast %cst_206 : f32 to vector<8x128xf32>
    %625 = arith.mulf %624, %623 : vector<8x128xf32>
    %cst_207 = arith.constant 1.000000e+00 : f32
    %626 = vector.broadcast %cst_207 : f32 to vector<8x128xf32>
    %627 = arith.addf %626, %625 : vector<8x128xf32>
    %cst_208 = arith.constant 1.000000e+00 : f32
    %628 = vector.broadcast %cst_208 : f32 to vector<8x128xf32>
    %629 = arith.divf %628, %627 : vector<8x128xf32>
    %cst_209 = arith.constant 1.06140542 : f32
    %630 = vector.broadcast %cst_209 : f32 to vector<8x128xf32>
    %631 = arith.mulf %630, %629 : vector<8x128xf32>
    %cst_210 = arith.constant -1.45315206 : f32
    %632 = vector.broadcast %cst_210 : f32 to vector<8x128xf32>
    %633 = arith.addf %631, %632 : vector<8x128xf32>
    %634 = arith.mulf %633, %629 : vector<8x128xf32>
    %cst_211 = arith.constant 1.42141378 : f32
    %635 = vector.broadcast %cst_211 : f32 to vector<8x128xf32>
    %636 = arith.addf %634, %635 : vector<8x128xf32>
    %637 = arith.mulf %636, %629 : vector<8x128xf32>
    %cst_212 = arith.constant -0.284496725 : f32
    %638 = vector.broadcast %cst_212 : f32 to vector<8x128xf32>
    %639 = arith.addf %637, %638 : vector<8x128xf32>
    %640 = arith.mulf %639, %629 : vector<8x128xf32>
    %cst_213 = arith.constant 0.254829586 : f32
    %641 = vector.broadcast %cst_213 : f32 to vector<8x128xf32>
    %642 = arith.addf %640, %641 : vector<8x128xf32>
    %643 = arith.mulf %642, %629 : vector<8x128xf32>
    %cst_214 = arith.constant 0.000000e+00 : f32
    %644 = vector.broadcast %cst_214 : f32 to vector<8x128xf32>
    %645 = arith.subf %644, %623 : vector<8x128xf32>
    %646 = arith.mulf %645, %623 : vector<8x128xf32>
    %647 = math.exp %646 : vector<8x128xf32>
    %648 = arith.mulf %643, %647 : vector<8x128xf32>
    %cst_215 = arith.constant 1.000000e+00 : f32
    %649 = vector.broadcast %cst_215 : f32 to vector<8x128xf32>
    %650 = arith.subf %649, %648 : vector<8x128xf32>
    %651 = arith.mulf %622, %650 : vector<8x128xf32>
    %cst_216 = arith.constant 1.000000e+00 : f32
    %652 = vector.broadcast %cst_216 : f32 to vector<8x128xf32>
    %653 = arith.addf %652, %651 : vector<8x128xf32>
    %654 = arith.mulf %615, %653 : vector<8x128xf32>
    %c0_217 = arith.constant 0 : index
    %c0_218 = arith.constant 0 : index
    %655 = vector.load %arg13[%c0_217, %c0_218] : memref<128x32xf32, #tpu.memory_space<vmem>>, vector<128x32xf32>
    %cst_219 = arith.constant dense<0.000000e+00> : vector<8x32xf32>
    %656 = tpu.matmul %654, %655, %cst_219 {dimension_numbers = #tpu.dot_dimension_numbers<[1], [0], [0], [1], [0, 0, 1, 1], [], []>, precision = #tpu.contract_precision<fp32>} : vector<8x128xf32>, vector<128x32xf32>, vector<8x32xf32> -> vector<8x32xf32>
    %c0_220 = arith.constant 0 : index
    %c0_221 = arith.constant 0 : index
    %657 = vector.load %arg14[%c0_220, %c0_221] : memref<1x32xf32, #tpu.memory_space<vmem>>, vector<1x32xf32>
    %658 = vector.broadcast %657 : vector<1x32xf32> to vector<8x32xf32>
    %659 = arith.addf %656, %658 : vector<8x32xf32>
    %cst_222 = arith.constant 5.000000e-01 : f32
    %660 = vector.broadcast %cst_222 : f32 to vector<8x32xf32>
    %661 = arith.mulf %660, %659 : vector<8x32xf32>
    %cst_223 = arith.constant 0.707106769 : f32
    %662 = vector.broadcast %cst_223 : f32 to vector<8x32xf32>
    %663 = arith.mulf %659, %662 : vector<8x32xf32>
    %cst_224 = arith.constant 0.000000e+00 : f32
    %664 = vector.broadcast %cst_224 : f32 to vector<8x32xf32>
    %665 = arith.cmpf oge, %663, %664 : vector<8x32xf32>
    %cst_225 = arith.constant 1.000000e+00 : f32
    %cst_226 = arith.constant -1.000000e+00 : f32
    %666 = vector.broadcast %cst_225 : f32 to vector<8x32xf32>
    %667 = vector.broadcast %cst_226 : f32 to vector<8x32xf32>
    %668 = arith.select %665, %666, %667 : vector<8x32xi1>, vector<8x32xf32>
    %669 = math.absf %663 : vector<8x32xf32>
    %cst_227 = arith.constant 0.327591091 : f32
    %670 = vector.broadcast %cst_227 : f32 to vector<8x32xf32>
    %671 = arith.mulf %670, %669 : vector<8x32xf32>
    %cst_228 = arith.constant 1.000000e+00 : f32
    %672 = vector.broadcast %cst_228 : f32 to vector<8x32xf32>
    %673 = arith.addf %672, %671 : vector<8x32xf32>
    %cst_229 = arith.constant 1.000000e+00 : f32
    %674 = vector.broadcast %cst_229 : f32 to vector<8x32xf32>
    %675 = arith.divf %674, %673 : vector<8x32xf32>
    %cst_230 = arith.constant 1.06140542 : f32
    %676 = vector.broadcast %cst_230 : f32 to vector<8x32xf32>
    %677 = arith.mulf %676, %675 : vector<8x32xf32>
    %cst_231 = arith.constant -1.45315206 : f32
    %678 = vector.broadcast %cst_231 : f32 to vector<8x32xf32>
    %679 = arith.addf %677, %678 : vector<8x32xf32>
    %680 = arith.mulf %679, %675 : vector<8x32xf32>
    %cst_232 = arith.constant 1.42141378 : f32
    %681 = vector.broadcast %cst_232 : f32 to vector<8x32xf32>
    %682 = arith.addf %680, %681 : vector<8x32xf32>
    %683 = arith.mulf %682, %675 : vector<8x32xf32>
    %cst_233 = arith.constant -0.284496725 : f32
    %684 = vector.broadcast %cst_233 : f32 to vector<8x32xf32>
    %685 = arith.addf %683, %684 : vector<8x32xf32>
    %686 = arith.mulf %685, %675 : vector<8x32xf32>
    %cst_234 = arith.constant 0.254829586 : f32
    %687 = vector.broadcast %cst_234 : f32 to vector<8x32xf32>
    %688 = arith.addf %686, %687 : vector<8x32xf32>
    %689 = arith.mulf %688, %675 : vector<8x32xf32>
    %cst_235 = arith.constant 0.000000e+00 : f32
    %690 = vector.broadcast %cst_235 : f32 to vector<8x32xf32>
    %691 = arith.subf %690, %669 : vector<8x32xf32>
    %692 = arith.mulf %691, %669 : vector<8x32xf32>
    %693 = math.exp %692 : vector<8x32xf32>
    %694 = arith.mulf %689, %693 : vector<8x32xf32>
    %cst_236 = arith.constant 1.000000e+00 : f32
    %695 = vector.broadcast %cst_236 : f32 to vector<8x32xf32>
    %696 = arith.subf %695, %694 : vector<8x32xf32>
    %697 = arith.mulf %668, %696 : vector<8x32xf32>
    %cst_237 = arith.constant 1.000000e+00 : f32
    %698 = vector.broadcast %cst_237 : f32 to vector<8x32xf32>
    %699 = arith.addf %698, %697 : vector<8x32xf32>
    %700 = arith.mulf %661, %699 : vector<8x32xf32>
    %701 = arith.addf %608, %700 : vector<8x32xf32>
    %c0_238 = arith.constant 0 : index
    %c0_239 = arith.constant 0 : index
    %702 = vector.load %arg17[%c0_238, %c0_239] : memref<1x32xf32, #tpu.memory_space<vmem>>, vector<1x32xf32>
    %c0_240 = arith.constant 0 : index
    %c0_241 = arith.constant 0 : index
    %703 = vector.load %arg18[%c0_240, %c0_241] : memref<1x32xf32, #tpu.memory_space<vmem>>, vector<1x32xf32>
    %cst_242 = arith.constant dense<0.000000e+00> : vector<8xf32>
    %704 = vector.multi_reduction <add>, %701, %cst_242 [1] : vector<8x32xf32> to vector<8xf32>
    %705 = vector.shape_cast %704 : vector<8xf32> to vector<8x1xf32>
    %cst_243 = arith.constant 3.200000e+01 : f32
    %706 = vector.broadcast %cst_243 : f32 to vector<8x1xf32>
    %707 = arith.divf %705, %706 : vector<8x1xf32>
    %708 = vector.broadcast %707 : vector<8x1xf32> to vector<8x32xf32>
    %709 = arith.subf %701, %708 : vector<8x32xf32>
    %710 = arith.mulf %709, %709 : vector<8x32xf32>
    %cst_244 = arith.constant dense<0.000000e+00> : vector<8xf32>
    %711 = vector.multi_reduction <add>, %710, %cst_244 [1] : vector<8x32xf32> to vector<8xf32>
    %712 = vector.shape_cast %711 : vector<8xf32> to vector<8x1xf32>
    %cst_245 = arith.constant 3.200000e+01 : f32
    %713 = vector.broadcast %cst_245 : f32 to vector<8x1xf32>
    %714 = arith.divf %712, %713 : vector<8x1xf32>
    %715 = vector.broadcast %707 : vector<8x1xf32> to vector<8x32xf32>
    %716 = arith.subf %701, %715 : vector<8x32xf32>
    %cst_246 = arith.constant 9.99999974E-6 : f32
    %717 = vector.broadcast %cst_246 : f32 to vector<8x1xf32>
    %718 = arith.addf %714, %717 : vector<8x1xf32>
    %719 = math.rsqrt %718 : vector<8x1xf32>
    %720 = vector.broadcast %719 : vector<8x1xf32> to vector<8x32xf32>
    %721 = arith.mulf %716, %720 : vector<8x32xf32>
    %722 = vector.broadcast %702 : vector<1x32xf32> to vector<8x32xf32>
    %723 = arith.mulf %721, %722 : vector<8x32xf32>
    %724 = vector.broadcast %703 : vector<1x32xf32> to vector<8x32xf32>
    %725 = arith.addf %723, %724 : vector<8x32xf32>
    %c0_247 = arith.constant 0 : index
    %c0_248 = arith.constant 0 : index
    %c0_249 = arith.constant 0 : index
    %726 = vector.load %arg19[%c0_247, %c0_248, %c0_249] : memref<1x8x32xf32, #tpu.memory_space<vmem>>, vector<1x8x32xf32>
    %727 = vector.shape_cast %726 : vector<1x8x32xf32> to vector<8x32xf32>
    %728 = vector.shape_cast %725 : vector<8x32xf32> to vector<1x8x32xf32>
    tpu.vector_store %arg19[%c0_247, %c0_248, %c0_249], %728 {strides = array<i32>} : memref<1x8x32xf32, #tpu.memory_space<vmem>>, vector<1x8x32xf32>,
    return
  }
  func.func @transform_0(%arg0: i32) -> (i32, i32, i32) {
    %c0_i32 = arith.constant 0 : i32
    %c0_i32_0 = arith.constant 0 : i32
    %c0_i32_1 = arith.constant 0 : i32
    return %arg0, %c0_i32, %c0_i32_0 : i32, i32, i32
  }
  func.func @transform_1(%arg0: i32) -> (i32, i32) {
    %c0_i32 = arith.constant 0 : i32
    %c0_i32_0 = arith.constant 0 : i32
    %c0_i32_1 = arith.constant 0 : i32
    return %c0_i32, %c0_i32_0 : i32, i32
  }
  func.func @transform_2(%arg0: i32) -> (i32, i32) {
    %c0_i32 = arith.constant 0 : i32
    %c0_i32_0 = arith.constant 0 : i32
    %c0_i32_1 = arith.constant 0 : i32
    return %c0_i32, %c0_i32_0 : i32, i32
  }
  func.func @transform_3(%arg0: i32) -> (i32, i32) {
    %c0_i32 = arith.constant 0 : i32
    %c0_i32_0 = arith.constant 0 : i32
    %c0_i32_1 = arith.constant 0 : i32
    return %c0_i32, %c0_i32_0 : i32, i32
  }
  func.func @transform_4(%arg0: i32) -> (i32, i32) {
    %c0_i32 = arith.constant 0 : i32
    %c0_i32_0 = arith.constant 0 : i32
    %c0_i32_1 = arith.constant 0 : i32
    return %c0_i32, %c0_i32_0 : i32, i32
  }
  func.func @transform_5(%arg0: i32) -> (i32, i32) {
    %c0_i32 = arith.constant 0 : i32
    %c0_i32_0 = arith.constant 0 : i32
    %c0_i32_1 = arith.constant 0 : i32
    return %c0_i32, %c0_i32_0 : i32, i32
  }
  func.func @transform_6(%arg0: i32) -> (i32, i32) {
    %c0_i32 = arith.constant 0 : i32
    %c0_i32_0 = arith.constant 0 : i32
    %c0_i32_1 = arith.constant 0 : i32
    return %c0_i32, %c0_i32_0 : i32, i32
  }
  func.func @transform_7(%arg0: i32) -> (i32, i32) {
    %c0_i32 = arith.constant 0 : i32
    %c0_i32_0 = arith.constant 0 : i32
    %c0_i32_1 = arith.constant 0 : i32
    return %c0_i32, %c0_i32_0 : i32, i32
  }
  func.func @transform_8(%arg0: i32) -> (i32, i32) {
    %c0_i32 = arith.constant 0 : i32
    %c0_i32_0 = arith.constant 0 : i32
    %c0_i32_1 = arith.constant 0 : i32
    return %c0_i32, %c0_i32_0 : i32, i32
  }
  func.func @transform_9(%arg0: i32) -> (i32, i32) {
    %c0_i32 = arith.constant 0 : i32
    %c0_i32_0 = arith.constant 0 : i32
    %c0_i32_1 = arith.constant 0 : i32
    return %c0_i32, %c0_i32_0 : i32, i32
  }
  func.func @transform_10(%arg0: i32) -> (i32, i32) {
    %c0_i32 = arith.constant 0 : i32
    %c0_i32_0 = arith.constant 0 : i32
    %c0_i32_1 = arith.constant 0 : i32
    return %c0_i32, %c0_i32_0 : i32, i32
  }
  func.func @transform_11(%arg0: i32) -> (i32, i32) {
    %c0_i32 = arith.constant 0 : i32
    %c0_i32_0 = arith.constant 0 : i32
    %c0_i32_1 = arith.constant 0 : i32
    return %c0_i32, %c0_i32_0 : i32, i32
  }
  func.func @transform_12(%arg0: i32) -> (i32, i32) {
    %c0_i32 = arith.constant 0 : i32
    %c0_i32_0 = arith.constant 0 : i32
    %c0_i32_1 = arith.constant 0 : i32
    return %c0_i32, %c0_i32_0 : i32, i32
  }
  func.func @transform_13(%arg0: i32) -> (i32, i32) {
    %c0_i32 = arith.constant 0 : i32
    %c0_i32_0 = arith.constant 0 : i32
    %c0_i32_1 = arith.constant 0 : i32
    return %c0_i32, %c0_i32_0 : i32, i32
  }
  func.func @transform_14(%arg0: i32) -> (i32, i32) {
    %c0_i32 = arith.constant 0 : i32
    %c0_i32_0 = arith.constant 0 : i32
    %c0_i32_1 = arith.constant 0 : i32
    return %c0_i32, %c0_i32_0 : i32, i32
  }
  func.func @transform_15(%arg0: i32) -> (i32, i32) {
    %c0_i32 = arith.constant 0 : i32
    %c0_i32_0 = arith.constant 0 : i32
    %c0_i32_1 = arith.constant 0 : i32
    return %c0_i32, %c0_i32_0 : i32, i32
  }
  func.func @transform_16(%arg0: i32) -> (i32, i32) {
    %c0_i32 = arith.constant 0 : i32
    %c0_i32_0 = arith.constant 0 : i32
    %c0_i32_1 = arith.constant 0 : i32
    return %c0_i32, %c0_i32_0 : i32, i32
  }
  func.func @transform_17(%arg0: i32) -> (i32, i32) {
    %c0_i32 = arith.constant 0 : i32
    %c0_i32_0 = arith.constant 0 : i32
    %c0_i32_1 = arith.constant 0 : i32
    return %c0_i32, %c0_i32_0 : i32, i32
  }
  func.func @transform_18(%arg0: i32) -> (i32, i32, i32) {
    %c0_i32 = arith.constant 0 : i32
    %c0_i32_0 = arith.constant 0 : i32
    %c0_i32_1 = arith.constant 0 : i32
    return %arg0, %c0_i32, %c0_i32_0 : i32, i32, i32
  }
}

</mosaic_0001>

<bundles_post_ra>
// kernel: ssm_forward.1
= control target key start
LH: loop header
LB: loop body
LE: loop exit
PB: predicated region body
PF: predicated region fallthrough
CT: control target
= control target key end

     0   :  { %s14434_s0 = inlined_call_operand.vmem [shape: f32[2,8,32], index: 0, kind: input, shape index: {}]   ;;  %s14435_s1 = inlined_call_operand.vmem [shape: f32[32,128], index: 1, kind: input, shape index: {}]   ;;  %s14436_s2 = inlined_call_operand.vmem [shape: f32[4,64], index: 2, kind: input, shape index: {}]   ;;  %s14437_s3 = inlined_call_operand.vmem [shape: f32[1,64], index: 3, kind: input, shape index: {}]   ;;  %s14438_s4 = inlined_call_operand.vmem [shape: f32[64,64], index: 4, kind: input, shape index: {}]   ;;  %s14439_s5 = inlined_call_operand.vmem [shape: f32[1,64], index: 5, kind: input, shape index: {}]   ;;  %s14440_s6 = inlined_call_operand.vmem [shape: f32[64,32], index: 6, kind: input, shape index: {}]   ;;  %s14441_s7 = inlined_call_operand.vmem [shape: f32[16,64], index: 7, kind: input, shape index: {}]   ;;  %s14442_s8 = inlined_call_operand.vmem [shape: f32[1,64], index: 8, kind: input, shape index: {}]   ;;  %s14443_s9 = inlined_call_operand.vmem [shape: f32[64,32], index: 9, kind: input, shape index: {}]   ;;  %s14444_s10 = inlined_call_operand.vmem [shape: f32[32,128], index: 10, kind: input, shape index: {}]   ;;  %s14445_s11 = inlined_call_operand.vmem [shape: f32[1,128], index: 11, kind: input, shape index: {}]   ;;  %s14446_s12 = inlined_call_operand.vmem [shape: f32[128,32], index: 12, kind: input, shape index: {}]   ;;  %s14447_s13 = inlined_call_operand.vmem [shape: f32[1,32], index: 13, kind: input, shape index: {}]   ;;  %s14448_s14 = inlined_call_operand.vmem [shape: f32[1,32], index: 14, kind: input, shape index: {}]   ;;  %s14449_s15 = inlined_call_operand.vmem [shape: f32[1,32], index: 15, kind: input, shape index: {}]   ;;  %s14450_s16 = inlined_call_operand.vmem [shape: f32[1,32], index: 16, kind: input, shape index: {}]   ;;  %s14451_s17 = inlined_call_operand.vmem [shape: f32[1,32], index: 17, kind: input, shape index: {}]   ;;  %s14452_s18 = inlined_call_operand.hbm [shape: f32[2,8,32], index: 18, kind: output, shape index: {}]  }
   0x1   :  { %14514 = sst [smem:[#allocation20_spill]] %s14434_s0 }
   0x2   :  { %14515 = sst [smem:[#allocation21_spill]] %s14435_s1 }
   0x3   :  { %14516 = sst [smem:[#allocation22_spill]] %s14436_s2 }
   0x4   :  { %14517 = sst [smem:[#allocation23_spill]] %s14437_s3 }
   0x5   :  { %23 = vsyncpa [#allocation5], 0 }
   0x6   :  { %25 = vsyncpa [#allocation5 + $0x1], 0  ;;  %s11925_s27 = smov 0   ;;  %s11927_s28 = smov 0  }
   0x7   :  { %s11929_s29 = smov 0   ;;  %s11931_s30 = smov 0  }
   0x8 LB: > { %14518 = sst [smem:[#allocation7_spill]] %s11801_s27  ;;  %s11946_s0 = sadd.s32 4294967295, %s11813_s30   ;;  %s11813_s30 = sphi %s11931_s30, %s14590_s30   ;;  %s11809_s29 = sphi %s11929_s29, %s14592_s29   ;;  %s11805_s28 = sphi %s11927_s28, %s14594_s28   ;;  %s11801_s27 = sphi %s11925_s27, %s14593_s27  }
   0x9   : > { %14519 = sst [smem:[#allocation8_spill]] %s11809_s29  ;;  %s8515_s19 = sadd.s32 4294967294, %s11813_s30  }
   0xa   : > { %14520 = sst [smem:[#allocation9_spill]] %s11813_s30  ;;  %s11950_s1 = sadd.s32 1, %s11813_s30  }
   0xb   : > { %14521 = sst [smem:[#allocation10_spill]] %s11950_s1  ;;  %s421_s20 = sadd.s32 1, %s11809_s29 }
   0xc   : > { %s418_s21 = ssub.s32 %s11813_s30, %s11950_s1  ;;  %p431_p0 = scmp.ne.s32.totalorder %s11809_s29, %s11805_s28 }
   0xd   : > { %p419_p1 = scmp.eq.s32.totalorder %s418_s21, 0  ;;  %p432_p2 = scmp.eq.s32.totalorder %s11946_s0, 1 }
   0xe   : > { %p437_p3 = scmp.ne.s32.totalorder %s11805_s28, %s11801_s27  ;;  %p438_p4 = scmp.eq.s32.totalorder %s8515_s19, 1 }
   0xf   : > { %s11961_s22 = scalar_select %p419_p1, %s11809_s29, %s421_s20  }
  0x10   : > { %p11963_p5 = por %p432_p2, %p431_p0  ;;  %p11967_p6 = por %p438_p4, %p437_p3 }
  0x11   : > { %14522 = sst [smem:[#allocation11_spill]] %s11961_s22  ;;  %p8518_p7 = scmp.ge.s32.totalorder %s11813_s30, 1 }
  0x12   : > { %s14524_s23 = scalar_select %p11967_p6, 1, 0 }
  0x13   : > { %p514_p8 = scmp.lt.s32.totalorder %s11813_s30, 3 }
  0x14   : > { %14525 = sst [smem:[#allocation12_spill]] %s14524_s23 }
  0x15   : > { %p515_p9 = pnand %p8518_p7, %p514_p8 }
  0x17   : > { %518 = sbr.rel (%p515_p9) target bundleno = 5779 (0x1693), region = 92 }
  0x1e   : > { %s14526_s26 = sld [smem:[#allocation21_spill]]  ;;  %v14457_v3 = vmov 0.0|0.0   ;;  %vm11816_vm0 = vmmov 0   ;;  %v14459_v8 = vmov 0.0   ;;  %p567_p10 = scmp.lt.s32.totalorder %s11946_s0, 1  ;;  %vm576_vm1 = vcmask 518144  }
  0x1f   : > { %10557 = vmatprep.subr.bf16.mxu0 %v14457_v3  ;;  %9197 = vmatprep.mubr.msk.f32.mxu0 %vm11816_vm0, %v14459_v8  ;;  %577 = vst.msk [vmem:[#allocation2] sm:$0x7] %vm576_vm1, %v14459_v8  ;;  %vm583_vm2 = vcmask 261120   ;;  %s14527_s25 = sld [smem:[#allocation20_spill]]  ;;  %v12033_v41 = vld [vmem:[%s14440_s6] sm:$0xff]  ;;  %v12038_v42 = vld [vmem:[%s14440_s6 + $0x8] sm:$0xff] }
  0x20   : > { %10593 = vmatprep.subr.bf16.mxu1 %v14457_v3  ;;  %9271 = vmatprep.mubr.msk.f32.mxu1 %vm11816_vm0, %v14459_v8  ;;  %s568_s29 = scalar_select %p567_p10, %s11946_s0, 1  ;;  %v1687_v43 = vand.u32 4294901760, %v12033_v41  ;;  %v1690_v44 = vand.u32 4294901760, %v12038_v42  ;;  %v12055_v47 = vld [vmem:[%s14440_s6 + $0x10] sm:$0xff]  ;;  %v12060_v48 = vld [vmem:[%s14440_s6 + $0x18] sm:$0xff]  ;;  %v1114_v53 = vld [vmem:[%s14438_s4] sm:$0xff] }
  0x21   : > { %v1693_v51 = vand.u32 4294901760, %v12055_v47  ;;  %v1696_v52 = vand.u32 4294901760, %v12060_v48  ;;  %v1115_v54 = vld [vmem:[%s14438_s4 + $0x8] sm:$0xff]  ;;  %v1133_v55 = vand.u32 4294901760, %v1114_v53  ;;  %v12075_v57 = vld [vmem:[%s14440_s6 + $0x20] sm:$0xff]  ;;  %v1116_v63 = vld [vmem:[%s14438_s4 + $0x10] sm:$0xff] }
  0x22   : > { %s8520_s1 = sshll.u32 %s568_s29, 3  ;;  %v12045_v45 = vsub.f32 %v12033_v41, %v1687_v43  ;;  %v12050_v46 = vsub.f32 %v12038_v42, %v1690_v44  ;;  %v1136_v56 = vand.u32 4294901760, %v1115_v54  ;;  %v12096_v62 = vld [vmem:[%s14440_s6 + $0x28] sm:$0xff]  ;;  %vm1072_vm3 = vcmask 523264   ;;  %s14532_s3 = sld [smem:[#allocation23_spill]] }
  0x23   : > { %v12086_v60 = vsub.f32 %v12055_v47, %v1693_v51  ;;  %v12091_v61 = vsub.f32 %v12060_v48, %v1696_v52  ;;  %s14461_s29 = smov 112   ;;  %vm2343_vm4 = vcmask 516096   ;;  %s14565_s22 = smov 64  }
  0x24   : > { %v579_v0 = vld [vmem:[%s14526_s26] sm:$0xff]  ;;  %v580_v1 = vld [vmem:[%s14526_s26 + $0x8] sm:$0xff]  ;;  %v581_v2 = vld [vmem:[%s14526_s26 + $0x10] sm:$0xff]  ;;  %v1772_v49 = vand.u32 4294901760, %v12045_v45  ;;  %v1779_v50 = vand.u32 4294901760, %v12050_v46  ;;  %s564_s24 = sand.u32 1, %s11805_s28  }
  0x25   : > { %v588_v4 = vand.u32 4294901760, %v579_v0  ;;  %v591_v5 = vand.u32 4294901760, %v580_v1  ;;  %v582_v6 = vld [vmem:[%s14526_s26 + $0x18] sm:$0xff]  ;;  %v594_v7 = vand.u32 4294901760, %v581_v2  ;;  %s12001_s19 = scalar_lea.vmem %s14527_s25, %s8520_s1  ;;  %s14529_s25 = sld [smem:[#allocation22_spill]] }
  0x26   : > { %v597_v9 = vand.u32 4294901760, %v582_v6  ;;  %v578_v18 = vld [vmem:[%s12001_s19] sm:$0xff]  ;;  %v1773_v58 = vsub.f32 %v12045_v45, %v1772_v49  ;;  %v1780_v59 = vsub.f32 %v12050_v46, %v1779_v50  ;;  %v12276_v47 = vpack.c.bf16 %v1779_v50, %v1772_v49  ;;  %s14464_s1 = smov 64   ;;  %s8538_s30 = sshll.u32 %s11946_s0, 7 }
  0x27   : > { %v11992_v10 = vpack.c.bf16 %v591_v5, %v588_v4  ;;  %v668_v11 = vsub.f32 %v579_v0, %v588_v4  ;;  %v675_v12 = vsub.f32 %v580_v1, %v591_v5  ;;  %v682_v13 = vsub.f32 %v581_v2, %v594_v7  ;;  %v1117_v0 = vld [vmem:[%s14438_s4 + $0x18] sm:$0xff]  ;;  %s11829_s0 = smov [#allocation4]  }
  0x28   : > { %v689_v14 = vsub.f32 %v582_v6, %v597_v9  ;;  %v10561_v15 = vpack.c.bf16 %v597_v9, %v594_v7  ;;  %v585_v20 = vsel %vm583_vm2, %v578_v18, 0  ;;  %v12104_v1 = vpack.c.bf16 %v1136_v56, %v1133_v55  ;;  %v12114_v6 = vld [vmem:[%s14440_s6 + $0x30] sm:$0xff] }
  0x29   : > { %10559 = vmatpush3.bf16.msra.mxu0 %v11992_v10  ;;  %v669_v16 = vand.u32 4294901760, %v668_v11  ;;  %v676_v17 = vand.u32 4294901760, %v675_v12  ;;  %v683_v19 = vand.u32 4294901760, %v682_v13  ;;  %v656_v24 = vand.u32 4294901760, %v585_v20 }
  0x2a   : > { %10560 = vmatprep.subr.bf16.mxu0 %v14457_v3  ;;  %v690_v23 = vand.u32 4294901760, %v689_v14  ;;  %v10570_v37 = vpack.c.bf16 %v675_v12, %v668_v11  ;;  %v10573_v38 = vpack.c.bf16 %v689_v14, %v682_v13  ;;  %v12106_v2 = vsub.f32 %v1114_v53, %v1133_v55  ;;  %10595 = vmatpush3.bf16.msra.mxu1 %v12104_v1 }
  0x2b   : > { %v670_v21 = vsub.f32 %v668_v11, %v669_v16  ;;  %v677_v22 = vsub.f32 %v675_v12, %v676_v17  ;;  %v657_v25 = vsub.f32 %v585_v20, %v656_v24  ;;  %v684_v28 = vsub.f32 %v682_v13, %v683_v19  ;;  %10596 = vmatprep.subr.bf16.mxu1 %v14457_v3 }
  0x2c   : > { %v691_v29 = vsub.f32 %v689_v14, %v690_v23  ;;  %v10582_v39 = vpack.c.bf16 %v676_v17, %v669_v16  ;;  %v10585_v40 = vpack.c.bf16 %v690_v23, %v683_v19  ;;  %v12108_v4 = vsub.f32 %v1115_v54, %v1136_v56  ;;  %v12128_v16 = vld [vmem:[%s14440_s6 + $0x38] sm:$0xff] }
  0x2d   : > { %10562 = vmatpush3.bf16.msra.mxu0 %v10561_v15  ;;  %v671_v26 = vand.u32 4294901760, %v670_v21  ;;  %v678_v27 = vand.u32 4294901760, %v677_v22  ;;  %v658_v30 = vand.u32 4294901760, %v657_v25  ;;  %v685_v33 = vand.u32 4294901760, %v684_v28  ;;  %v1118_v21 = vld [vmem:[%s14438_s4 + $0x20] sm:$0xff] }
  0x2e   : > { %10563 = vmatprep.subr.bf16.mxu0 %v14457_v3  ;;  %v692_v34 = vand.u32 4294901760, %v691_v29  ;;  %v1699_v5 = vand.u32 4294901760, %v12075_v57  ;;  %v1774_v7 = vand.u32 4294901760, %v1773_v58  ;;  %v1781_v9 = vand.u32 4294901760, %v1780_v59 }
  0x2f   : > { %v659_v31 = vsub.f32 %v657_v25, %v658_v30  ;;  %v10564_v32 = vpack.c.bf16 %v678_v27, %v671_v26  ;;  %v1793_v11 = vand.u32 4294901760, %v12091_v61  ;;  %v1702_v12 = vand.u32 4294901760, %v12096_v62  ;;  %v1119_v26 = vld [vmem:[%s14438_s4 + $0x28] sm:$0xff] }
  0x30   : > { %v10567_v36 = vpack.c.bf16 %v692_v34, %v685_v33  ;;  %v12123_v13 = vsub.f32 %v12075_v57, %v1699_v5  ;;  %v1139_v14 = vand.u32 4294901760, %v1116_v63  ;;  %v10678_v17 = vpack.c.bf16 %v1781_v9, %v1774_v7 }
  0x31   : > { %v660_v35 = vand.u32 4294901760, %v659_v31  ;;  %v1794_v19 = vsub.f32 %v12091_v61, %v1793_v11  ;;  %v1705_v20 = vand.u32 4294901760, %v12114_v6  ;;  %v12145_v23 = vsub.f32 %v12096_v62, %v1702_v12 }
  0x32   : > { %v1800_v22 = vand.u32 4294901760, %v12123_v13  ;;  %v1145_v34 = vand.u32 4294901760, %v1118_v21  ;;  %v12260_v41 = vpack.c.bf16 %v1702_v12, %v1699_v5 }
  0x33   : > { %9198 = vmatmul.mubr.f32.vlgmr.msra.gmra.mrb[0].mxu0 %v660_v35  ;;  %v1795_v28 = vand.u32 4294901760, %v1794_v19  ;;  %v12166_v33 = vsub.f32 %v12114_v6, %v1705_v20  ;;  %v1075_v6 = vlaneseq }
  0x34   : > { %10565 = vmatpush3.bf16.msra.mxu0 %v10564_v32  ;;  %9208 = vmatprep.mubr.msk.f32.mxu0 %vm11816_vm0, %v14459_v8  ;;  %v1801_v31 = vsub.f32 %v12123_v13, %v1800_v22  ;;  %v1807_v32 = vand.u32 4294901760, %v12145_v23  ;;  %v12178_v53 = vsub.f32 %v1118_v21, %v1145_v34 }
  0x35   : > { %10566 = vmatprep.subr.bf16.mxu0 %v14457_v3 }
  0x38   : > { %10568 = vmatpush3.bf16.msra.mxu0 %v10567_v36 }
  0x39   : > { %10569 = vmatprep.subr.bf16.mxu0 %v14457_v3 }
  0x3b   : > { %9209 = vmatmul.mubr.f32.vlgmr.msra.gmra.mrb[0].mxu0 %v656_v24 }
  0x3c   : > { %10571 = vmatpush3.bf16.msra.mxu0 %v10570_v37  ;;  %9219 = vmatprep.mubr.msk.f32.mxu0 %vm11816_vm0, %v14459_v8  ;;  %v1148_v37 = vand.u32 4294901760, %v1119_v26 }
  0x3d   : > { %10572 = vmatprep.subr.bf16.mxu0 %v14457_v3 }
  0x3e   : > { %v12181_v55 = vpack.c.bf16 %v1148_v37, %v1145_v34  ;;  %v12183_v56 = vsub.f32 %v1119_v26, %v1148_v37  ;;  %v1218_v26 = vand.u32 4294901760, %v12106_v2 }
  0x40   : > { %10574 = vmatpush3.bf16.msra.mxu0 %v10573_v38  ;;  %v1802_v38 = vand.u32 4294901760, %v1801_v31  ;;  %v1219_v37 = vsub.f32 %v12106_v2, %v1218_v26 }
  0x41   : > { %10575 = vmatprep.subr.bf16.mxu0 %v14457_v3 }
  0x43   : > { %9220 = vmatmul.mubr.f32.vlgmr.msra.gmra.mrb[0].mxu0 %v657_v25  ;;  %v12149_v25 = vsub.f32 %v1116_v63, %v1139_v14 }
  0x44   : > { %10577 = vmatpush3.bf16.msra.mxu0 %v11992_v10  ;;  %9230 = vmatprep.mubr.msk.f32.mxu0 %vm11816_vm0, %v14459_v8 }
  0x45   : > { %10578 = vmatprep.subr.bf16.mxu0 %v14457_v3 }
  0x48   : > { %10580 = vmatpush3.bf16.msra.mxu0 %v10561_v15 }
  0x49   : > { %10581 = vmatprep.subr.bf16.mxu0 %v14457_v3 }
  0x4b   : > { %9231 = vmatmul.mubr.f32.vlgmr.msra.gmra.mrb[0].mxu0 %v658_v30  ;;  %v1708_v30 = vand.u32 4294901760, %v12128_v16 }
  0x4c   : > { %10583 = vmatpush3.bf16.msra.mxu0 %v10582_v39  ;;  %9241 = vmatprep.mubr.msk.f32.mxu0 %vm11816_vm0, %v14459_v8  ;;  %v1808_v39 = vsub.f32 %v12145_v23, %v1807_v32 }
  0x4d   : > { %10584 = vmatprep.subr.bf16.mxu0 %v14457_v3  ;;  %v12171_v36 = vsub.f32 %v12128_v16, %v1708_v30 }
  0x4e   : > { %v1809_v58 = vand.u32 4294901760, %v1808_v39  ;;  %v1220_v39 = vand.u32 4294901760, %v1219_v37 }
  0x4f   : > { %v1821_v54 = vand.u32 4294901760, %v12171_v36 }
  0x50   : > { %10586 = vmatpush3.bf16.msra.mxu0 %v10585_v40  ;;  %v1814_v40 = vand.u32 4294901760, %v12166_v33 }
  0x51   : > { %10587 = vmatprep.subr.bf16.mxu0 %v14457_v3  ;;  %v1822_v63 = vsub.f32 %v12171_v36, %v1821_v54 }
  0x52   : > { %v1815_v59 = vsub.f32 %v12166_v33, %v1814_v40  ;;  %v12296_v49 = vpack.c.bf16 %v1821_v54, %v1814_v40 }
  0x53   : > { %9242 = vmatmul.mubr.f32.vlgmr.msra.gmra.mrb[0].mxu0 %v656_v24  ;;  %v1823_v9 = vand.u32 4294901760, %v1822_v63 }
  0x54   : > { %10589 = vmatpush3.bf16.msra.mxu0 %v11992_v10  ;;  %9252 = vmatprep.mubr.msk.f32.mxu0 %vm11816_vm0, %v14459_v8  ;;  %v1786_v10 = vand.u32 4294901760, %v12086_v60  ;;  %v1816_v7 = vand.u32 4294901760, %v1815_v59 }
  0x55   : > { %10590 = vmatprep.subr.bf16.mxu0 %v14457_v3 }
  0x56   : > { %v1787_v18 = vsub.f32 %v12086_v60, %v1786_v10 }
  0x58   : > { %10592 = vmatpush3.bf16.msra.mxu0 %v10561_v15  ;;  %v1142_v15 = vand.u32 4294901760, %v1117_v0  ;;  %v1788_v27 = vand.u32 4294901760, %v1787_v18  ;;  %v1121_v18 = vld [vmem:[%s14438_s4 + $0x38] sm:$0xff] }
  0x59   : > { %10677 = vmatprep.subr.bf16.mxu0 %v14457_v3  ;;  %v1154_v21 = vand.u32 4294901760, %v1121_v18 }
  0x5a   : > { %v12154_v29 = vsub.f32 %v1117_v0, %v1142_v15  ;;  %v10681_v35 = vpack.c.bf16 %v1795_v28, %v1788_v27  ;;  %v10684_v0 = vpack.c.bf16 %v1809_v58, %v1802_v38  ;;  %v1225_v27 = vand.u32 4294901760, %v12108_v4 }
  0x5b   : > { %9253 = vmatmul.mubr.f32.vlgmr.msra.gmra.mrb[0].mxu0 %v656_v24  ;;  %v12147_v24 = vpack.c.bf16 %v1142_v15, %v1139_v14  ;;  %v10687_v14 = vpack.c.bf16 %v1823_v9, %v1816_v7  ;;  %v1232_v58 = vand.u32 4294901760, %v12149_v25 }
  0x5c   : > { %9404 = vmatprep.mubr.msk.f32.mxu0 %vm11816_vm0, %v14459_v8  ;;  %10679 = vmatpush3.bf16.msra.mxu0 %v10678_v17  ;;  %v1120_v17 = vld [vmem:[%s14438_s4 + $0x30] sm:$0xff]  ;;  %v1226_v38 = vsub.f32 %v12108_v4, %v1225_v27  ;;  %v1239_v59 = vand.u32 4294901760, %v12154_v29  ;;  %v10621_v42 = vpack.c.bf16 %v12154_v29, %v12149_v25  ;;  %v12298_v50 = vpack.c.bf16 %v1225_v27, %v1218_v26 }
  0x5d   : > { %10680 = vmatprep.subr.bf16.mxu0 %v14457_v3  ;;  %10598 = vmatpush3.bf16.msra.mxu1 %v12147_v24  ;;  %v1151_v19 = vand.u32 4294901760, %v1120_v17  ;;  %v1233_v7 = vsub.f32 %v12149_v25, %v1232_v58 }
  0x5e   : > { %10599 = vmatprep.subr.bf16.mxu1 %v14457_v3  ;;  %v1227_v63 = vand.u32 4294901760, %v1226_v38  ;;  %v1240_v9 = vsub.f32 %v12154_v29, %v1239_v59  ;;  %v12300_v57 = vpack.c.bf16 %v1239_v59, %v1232_v58 }
  0x5f   : > { %v12208_v31 = vpack.c.bf16 %v1154_v21, %v1151_v19  ;;  %v12210_v34 = vsub.f32 %v1120_v17, %v1151_v19  ;;  %v1234_v17 = vand.u32 4294901760, %v1233_v7  ;;  %v1246_v19 = vand.u32 4294901760, %v12178_v53 }
  0x60   : > { %10682 = vmatpush3.bf16.msra.mxu0 %v10681_v35  ;;  %v12212_v35 = vsub.f32 %v1121_v18, %v1154_v21  ;;  %v1241_v18 = vand.u32 4294901760, %v1240_v9  ;;  %v1253_v21 = vand.u32 4294901760, %v12183_v56  ;;  %v12242_v9 = vpack.c.bf16 %v1690_v44, %v1687_v43 }
  0x61   : > { %10683 = vmatprep.subr.bf16.mxu0 %v14457_v3  ;;  %10601 = vmatpush3.bf16.msra.mxu1 %v12181_v55  ;;  %v1247_v28 = vsub.f32 %v12178_v53, %v1246_v19  ;;  %v12268_v43 = vpack.c.bf16 %v1708_v30, %v1705_v20 }
  0x62   : > { %10602 = vmatprep.subr.bf16.mxu1 %v14457_v3  ;;  %v12228_v37 = vpack.c.bf16 %v1241_v18, %v1234_v17  ;;  %v12302_v62 = vpack.c.bf16 %v1253_v21, %v1246_v19 }
  0x64   : > { %10685 = vmatpush3.bf16.msra.mxu0 %v10684_v0  ;;  %v1254_v0 = vsub.f32 %v12183_v56, %v1253_v21 }
  0x65   : > { %10686 = vmatprep.subr.bf16.mxu0 %v14457_v3  ;;  %10604 = vmatpush3.bf16.msra.mxu1 %v12208_v31 }
  0x66   : > { %10605 = vmatprep.subr.bf16.mxu1 %v14457_v3  ;;  %v1255_v8 = vand.u32 4294901760, %v1254_v0 }
  0x68   : > { %10688 = vmatpush3.bf16.msra.mxu0 %v10687_v14  ;;  %v12224_v14 = vpack.c.bf16 %v1227_v63, %v1220_v39  ;;  %v1260_v39 = vand.u32 4294901760, %v12210_v34  ;;  %v1267_v63 = vand.u32 4294901760, %v12212_v35 }
  0x69   : > { %10689 = vmatprep.subr.bf16.mxu0 %v14457_v3  ;;  %v1248_v3 = vand.u32 4294901760, %v1247_v28 }
  0x6a   : > { %v1261_v17 = vsub.f32 %v12210_v34, %v1260_v39  ;;  %v1268_v18 = vsub.f32 %v12212_v35, %v1267_v63  ;;  %v12304_v5 = vpack.c.bf16 %v1267_v63, %v1260_v39 }
  0x6b   : > { %v12236_v7 = vpack.c.bf16 %v1255_v8, %v1248_v3  ;;  %v12252_v3 = vpack.c.bf16 %v1696_v52, %v1693_v51  ;;  %v10618_v8 = vpack.c.bf16 %v12108_v4, %v12106_v2  ;;  %v12284_v51 = vpack.c.bf16 %v1793_v11, %v1786_v10 }
  0x6c   : > { %v1262_v38 = vand.u32 4294901760, %v1261_v17  ;;  %v1269_v15 = vand.u32 4294901760, %v1268_v18  ;;  %v12290_v52 = vpack.c.bf16 %v1807_v32, %v1800_v22  ;;  %v12306_v10 = vshrl.u32 %v1075_v6, 7  ;;  %v571_v22 = vld [vmem:[%s14529_s25] sm:$0xf]  ;;  %s14549_s25 = smov 112  }
  0x6d   : > { %v8521_v18 = vld [vmem:[%s14532_s3] ss:$0 sm:$0xff] }
  0x6e   : > { %v12246_v28 = vpack.c.bf16 %v1269_v15, %v1262_v38  ;;  %v12313_v12 = vsub.s32 0, %v12306_v10  ;;  %v12316_v16 = vsub.s32 1, %v12306_v10  ;;  %v12322_v30 = vsub.s32 2, %v12306_v10 }
  0x6f   : > { %v12331_v54 = vsub.s32 3, %v12306_v10 }
  0x70   : > { %14528 = vst [vmem:[#allocation13_spill] sm:$0xff] %v12316_v16  ;;  %14530 = vst [vmem:[#allocation14_spill] sm:$0xff] %v12322_v30  ;;  %v12325_v32 = vrot.slane %v571_v22, %v12313_v12  ;;  %v12328_v40 = vrot.slane %v571_v22, %v12316_v16  ;;  %v12334_v15 = vrot.slane %v571_v22, %v12322_v30 }
  0x71   : > { %14531 = vst [vmem:[#allocation15_spill] sm:$0xff] %v12331_v54  ;;  %v12339_v19 = vrot.slane %v571_v22, %v12331_v54 }
 0x12e   : > { %v12308_v11 = vpop.f32.mrb[0].mxu0 }
 0x12f   : > { %1073 = vst.msk [vmem:[#allocation2 + $0x3] sm:$0xff] %vm1072_vm3, %v12308_v11  ;;  %v9254_v20 = vpop.f32.mrb[1].mxu0 }
 0x136   : > { %v1074_v26 = vld [vmem:[#allocation2] sm:$0xff] }
 0x137   : > { %v1081_v27 = vld [vmem:[#allocation2 + $0x1] sm:$0xff]  ;;  %v1079_v59 = vmul.f32 %v12325_v32, %v1074_v26 }
 0x138   : > { %v1088_v58 = vld [vmem:[#allocation2 + $0x2] sm:$0xff]  ;;  %v1086_v0 = vmul.f32 %v12328_v40, %v1081_v27 }
 0x139   : > { %v1095_v21 = vld [vmem:[#allocation2 + $0x3] sm:$0xff]  ;;  %v1093_v38 = vmul.f32 %v12334_v15, %v1088_v58 }
 0x13a   : > { %v1087_v39 = vadd.f32 %v1086_v0, %v1079_v59  ;;  %v1100_v17 = vmul.f32 %v12339_v19, %v1095_v21  ;;  %v14533_v21 = vpack.c.bf16 %v12050_v46, %v12045_v45  ;;  %v14537_v45 = vpack.c.bf16 %v12145_v23, %v12123_v13 }
 0x13b   : > { %v14538_v46 = vpack.c.bf16 %v12171_v36, %v12166_v33  ;;  %v14480_v23 = vmov 0  }
 0x13c   : > { %v1094_v63 = vadd.f32 %v1093_v38, %v1087_v39  ;;  %v14534_v38 = vmov 0.0   ;;  %11578 = vset.pattern.permute.xlu1 %v14480_v23 }
 0x13e   : > { %v1101_v6 = vadd.f32 %v1100_v17, %v1094_v63  ;;  %v14536_v63 = vpack.c.bf16 %v12091_v61, %v12086_v60  ;;  %v14539_v60 = vpack.c.bf16 %v12183_v56, %v12178_v53  ;;  %v14540_v61 = vpack.c.bf16 %v12212_v35, %v12210_v34 }
 0x13f   : > { %v14474_v56 = vmov 6   ;;  %v14478_v34 = vmov 3   ;;  %v14472_v35 = vmov 4  }
 0x140   : > { %v1108_v20 = vadd.f32 %v8521_v18, %v1101_v6 }
 0x142   : > { %v1109_v48 = vmul.f32 0.5, %v1108_v20 }
 0x144   : > { %11642 = vtanh.f32 %v1109_v48  ;;  %v14535_v48 = vmov 0.0|0.0  }
 0x14e   : > { %v11643_v26 = vpop.eup %11642 }
 0x14f   : > { %v1111_v27 = vadd.f32 1.0, %v11643_v26 }
 0x151   : > { %v1112_v44 = vmul.f32 0.5, %v1111_v27 }
 0x153   : > { %v12346_v22 = vmul.f32 %v1112_v44, %v1108_v20 }
 0x155   : > { %v1130_v58 = vsel %vm1072_vm3, %v12346_v22, 0 }
 0x156   : > { %v12350_v59 = vand.u32 4294901760, %v1130_v58 }
 0x158   : > { %9405 = vmatmul.mubr.f32.vlgmr.msra.gmra.mrb[2].mxu0 %v12350_v59  ;;  %v1206_v0 = vsub.f32 %v1130_v58, %v12350_v59  ;;  %v12525_v58 = vsub.s32 4, %v12306_v10 }
 0x159   : > { %10691 = vmatpush3.bf16.msra.mxu0 %v14533_v21  ;;  %9423 = vmatprep.mubr.msk.f32.mxu0 %vm11816_vm0, %v14534_v38 }
 0x15a   : > { %10692 = vmatprep.subr.bf16.mxu0 %v14535_v48  ;;  %v12360_v44 = vand.u32 4294901760, %v1206_v0  ;;  %14541 = vst [vmem:[#allocation16_spill] sm:$0xff] %v12525_v58 }
 0x15c   : > { %v1208_v39 = vsub.f32 %v1206_v0, %v12360_v44 }
 0x15d   : > { %10694 = vmatpush3.bf16.msra.mxu0 %v14536_v63  ;;  %v12535_v63 = vsub.s32 5, %v12306_v10 }
 0x15e   : > { %10695 = vmatprep.subr.bf16.mxu0 %v14535_v48  ;;  %v12367_v17 = vand.u32 4294901760, %v1208_v39 }
 0x15f   : > { %14542 = vst [vmem:[#allocation17_spill] sm:$0xff] %v12535_v63 }
 0x160   : > { %9272 = vmatmul.mubr.f32.vlgmr.msra.gmra.mrb[0].mxu1 %v12367_v17 }
 0x161   : > { %10607 = vmatpush3.bf16.msra.mxu1 %v12224_v14  ;;  %10697 = vmatpush3.bf16.msra.mxu0 %v14537_v45  ;;  %v14468_v14 = vmov 5  }
 0x162   : > { %10608 = vmatprep.subr.bf16.mxu1 %v14535_v48  ;;  %10698 = vmatprep.subr.bf16.mxu0 %v14535_v48 }
 0x163   : > { %9290 = vmatprep.mubr.msk.f32.mxu1 %vm11816_vm0, %v14534_v38 }
 0x165   : > { %10610 = vmatpush3.bf16.msra.mxu1 %v12228_v37  ;;  %10700 = vmatpush3.bf16.msra.mxu0 %v14538_v46  ;;  %v14466_v37 = vmov 7  }
 0x166   : > { %10611 = vmatprep.subr.bf16.mxu1 %v14535_v48  ;;  %10701 = vmatprep.subr.bf16.mxu0 %v14535_v48 }
 0x168   : > { %9424 = vmatmul.mubr.f32.vlgmr.msra.gmra.mrb[2].mxu0 %v1206_v0 }
 0x169   : > { %10613 = vmatpush3.bf16.msra.mxu1 %v12236_v7  ;;  %10703 = vmatpush3.bf16.msra.mxu0 %v12242_v9  ;;  %v8522_v7 = vld [vmem:[%s14439_s5] ss:$0 sm:$0xff] }
 0x16a   : > { %10614 = vmatprep.subr.bf16.mxu1 %v14535_v48  ;;  %10704 = vmatprep.subr.bf16.mxu0 %v14535_v48 }
 0x16b   : > { %9442 = vmatprep.mubr.msk.f32.mxu0 %vm11816_vm0, %v14534_v38 }
 0x16d   : > { %10616 = vmatpush3.bf16.msra.mxu1 %v12246_v28  ;;  %10706 = vmatpush3.bf16.msra.mxu0 %v12252_v3 }
 0x16e   : > { %10617 = vmatprep.subr.bf16.mxu1 %v14535_v48  ;;  %10707 = vmatprep.subr.bf16.mxu0 %v14535_v48 }
 0x170   : > { %9291 = vmatmul.mubr.f32.vlgmr.msra.gmra.mrb[0].mxu1 %v12350_v59 }
 0x171   : > { %10619 = vmatpush3.bf16.msra.mxu1 %v10618_v8  ;;  %10709 = vmatpush3.bf16.msra.mxu0 %v12260_v41 }
 0x172   : > { %10620 = vmatprep.subr.bf16.mxu1 %v14535_v48  ;;  %10710 = vmatprep.subr.bf16.mxu0 %v14535_v48 }
 0x173   : > { %9309 = vmatprep.mubr.msk.f32.mxu1 %vm11816_vm0, %v14534_v38 }
 0x175   : > { %10622 = vmatpush3.bf16.msra.mxu1 %v10621_v42  ;;  %10712 = vmatpush3.bf16.msra.mxu0 %v12268_v43 }
 0x176   : > { %10623 = vmatprep.subr.bf16.mxu1 %v14535_v48  ;;  %10713 = vmatprep.subr.bf16.mxu0 %v14535_v48 }
 0x178   : > { %9443 = vmatmul.mubr.f32.vlgmr.msra.gmra.mrb[2].mxu0 %v12360_v44 }
 0x179   : > { %10625 = vmatpush3.bf16.msra.mxu1 %v14539_v60  ;;  %10715 = vmatpush3.bf16.msra.mxu0 %v12276_v47 }
 0x17a   : > { %10626 = vmatprep.subr.bf16.mxu1 %v14535_v48  ;;  %10716 = vmatprep.subr.bf16.mxu0 %v14535_v48 }
 0x17b   : > { %9461 = vmatprep.mubr.msk.f32.mxu0 %vm11816_vm0, %v14534_v38 }
 0x17d   : > { %10628 = vmatpush3.bf16.msra.mxu1 %v14540_v61  ;;  %10718 = vmatpush3.bf16.msra.mxu0 %v12284_v51 }
 0x17e   : > { %10629 = vmatprep.subr.bf16.mxu1 %v14535_v48  ;;  %10719 = vmatprep.subr.bf16.mxu0 %v14535_v48 }
 0x180   : > { %9310 = vmatmul.mubr.f32.vlgmr.msra.gmra.mrb[0].mxu1 %v1206_v0 }
 0x181   : > { %10631 = vmatpush3.bf16.msra.mxu1 %v12104_v1  ;;  %10721 = vmatpush3.bf16.msra.mxu0 %v12290_v52 }
 0x182   : > { %10632 = vmatprep.subr.bf16.mxu1 %v14535_v48  ;;  %10722 = vmatprep.subr.bf16.mxu0 %v14535_v48 }
 0x183   : > { %9328 = vmatprep.mubr.msk.f32.mxu1 %vm11816_vm0, %v14534_v38 }
 0x185   : > { %10634 = vmatpush3.bf16.msra.mxu1 %v12147_v24  ;;  %10724 = vmatpush3.bf16.msra.mxu0 %v12296_v49 }
 0x186   : > { %10635 = vmatprep.subr.bf16.mxu1 %v14535_v48  ;;  %10725 = vmatprep.subr.bf16.mxu0 %v14535_v48 }
 0x188   : > { %9462 = vmatmul.mubr.f32.vlgmr.msra.gmra.mrb[2].mxu0 %v12350_v59 }
 0x189   : > { %10637 = vmatpush3.bf16.msra.mxu1 %v12181_v55  ;;  %10727 = vmatpush3.bf16.msra.mxu0 %v12242_v9 }
 0x18a   : > { %10638 = vmatprep.subr.bf16.mxu1 %v14535_v48  ;;  %10728 = vmatprep.subr.bf16.mxu0 %v14535_v48 }
 0x18b   : > { %9480 = vmatprep.mubr.msk.f32.mxu0 %vm11816_vm0, %v14534_v38 }
 0x18d   : > { %10640 = vmatpush3.bf16.msra.mxu1 %v12208_v31  ;;  %10730 = vmatpush3.bf16.msra.mxu0 %v12252_v3 }
 0x18e   : > { %10641 = vmatprep.subr.bf16.mxu1 %v14535_v48  ;;  %10731 = vmatprep.subr.bf16.mxu0 %v14535_v48 }
 0x190   : > { %9329 = vmatmul.mubr.f32.vlgmr.msra.gmra.mrb[0].mxu1 %v12360_v44 }
 0x191   : > { %10643 = vmatpush3.bf16.msra.mxu1 %v12298_v50  ;;  %10733 = vmatpush3.bf16.msra.mxu0 %v12260_v41  ;;  %v573_v50 = vld [vmem:[%s14441_s7] sm:$0xff] }
 0x192   : > { %10644 = vmatprep.subr.bf16.mxu1 %v14535_v48  ;;  %10734 = vmatprep.subr.bf16.mxu0 %v14535_v48 }
 0x193   : > { %9347 = vmatprep.mubr.msk.f32.mxu1 %vm11816_vm0, %v14534_v38 }
 0x195   : > { %10646 = vmatpush3.bf16.msra.mxu1 %v12300_v57  ;;  %10736 = vmatpush3.bf16.msra.mxu0 %v12268_v43 }
 0x196   : > { %10647 = vmatprep.subr.bf16.mxu1 %v14535_v48  ;;  %10773 = vmatprep.subr.bf16.mxu0 %v14535_v48 }
 0x198   : > { %9481 = vmatmul.mubr.f32.vlgmr.msra.gmra.mrb[2].mxu0 %v12350_v59 }
 0x199   : > { %10649 = vmatpush3.bf16.msra.mxu1 %v12302_v62  ;;  %9556 = vmatprep.mubr.msk.f32.mxu0 %vm11816_vm0, %v14534_v38 }
 0x19a   : > { %10650 = vmatprep.subr.bf16.mxu1 %v14535_v48 }
 0x19d   : > { %10652 = vmatpush3.bf16.msra.mxu1 %v12304_v5 }
 0x19e   : > { %10653 = vmatprep.subr.bf16.mxu1 %v14535_v48 }
 0x1a0   : > { %9348 = vmatmul.mubr.f32.vlgmr.msra.gmra.mrb[0].mxu1 %v12350_v59 }
 0x1a1   : > { %10655 = vmatpush3.bf16.msra.mxu1 %v12104_v1  ;;  %9366 = vmatprep.mubr.msk.f32.mxu1 %vm11816_vm0, %v14534_v38 }
 0x1a2   : > { %10656 = vmatprep.subr.bf16.mxu1 %v14535_v48 }
 0x1a5   : > { %10658 = vmatpush3.bf16.msra.mxu1 %v12147_v24 }
 0x1a6   : > { %10659 = vmatprep.subr.bf16.mxu1 %v14535_v48 }
 0x1a9   : > { %10661 = vmatpush3.bf16.msra.mxu1 %v12181_v55  ;;  %v14470_v55 = vmov 1  }
 0x1aa   : > { %10662 = vmatprep.subr.bf16.mxu1 %v14535_v48 }
 0x1ad   : > { %10664 = vmatpush3.bf16.msra.mxu1 %v12208_v31  ;;  %v14476_v31 = vmov 2  }
 0x1ae   : > { %10665 = vmatprep.subr.bf16.mxu1 %v14535_v48 }
 0x1b0   : > { %9367 = vmatmul.mubr.f32.vlgmr.msra.gmra.mrb[0].mxu1 %v12350_v59 }
 0x1b1   : > { %10667 = vmatpush3.bf16.msra.mxu1 %v12242_v9  ;;  %9385 = vmatprep.mubr.msk.f32.mxu1 %vm11816_vm0, %v14534_v38 }
 0x1b2   : > { %10668 = vmatprep.subr.bf16.mxu1 %v14535_v48 }
 0x1b5   : > { %10670 = vmatpush3.bf16.msra.mxu1 %v12252_v3 }
 0x1b6   : > { %10671 = vmatprep.subr.bf16.mxu1 %v14535_v48 }
 0x1b9   : > { %10673 = vmatpush3.bf16.msra.mxu1 %v12260_v41 }
 0x1ba   : > { %10674 = vmatprep.subr.bf16.mxu1 %v14535_v48 }
 0x1bd   : > { %10676 = vmatpush3.bf16.msra.mxu1 %v12268_v43 }
 0x1be   : > { %10737 = vmatprep.subr.bf16.mxu1 %v14535_v48 }
 0x1c0   : > { %9386 = vmatmul.mubr.f32.vlgmr.msra.gmra.mrb[2].mxu1 %v12367_v17 }
 0x1c1   : > { %9499 = vmatprep.mubr.msk.f32.mxu1 %vm11816_vm0, %v14534_v38 }
 0x26b   : > { %v2219_v1 = vpop.f32.mrb[2].mxu0 }
 0x26c   : > { %v9482_v2 = vpop.f32.mrb[3].mxu0 }
 0x283   : > { %v1665_v4 = vpop.f32.mrb[0].mxu1 }
 0x284   : > { %v9368_v13 = vpop.f32.mrb[1].mxu1  ;;  %v11421_v9 = vadd.f32 %v8522_v7, %v1665_v4 }
 0x285   : > { %v12549_v13 = vsub.s32 6, %v12306_v10 }
 0x286   : > { %v1670_v28 = vand.u32 2147483647, %v11421_v9  ;;  %v1669_v51 = vmax.f32 %v11421_v9, 0.0 }
 0x287   : > { %14543 = vst [vmem:[#allocation18_spill] sm:$0xff] %v12549_v13 }
 0x288   : > { %v1671_v3 = vsub.f32 0.0, %v1670_v28 }
 0x28a   : > { %v1672_v8 = vmul.f32 1.442695, %v1671_v3  ;;  %v12564_v3 = vsub.s32 7, %v12306_v10 }
 0x28c   : > { %11644 = vpow2.f32 %v1672_v8  ;;  %14544 = vst [vmem:[#allocation19_spill] sm:$0xff] %v12564_v3 }
 0x293   : > { %v1765_v24 = vpop.f32.mrb[2].mxu1 }
 0x294   : > { %v11422_v25 = vadd.f32 %v2219_v1, %v1765_v24  ;;  %v9387_v29 = vpop.f32.mrb[3].mxu1 }
 0x296   : > { %2256 = vrot.lane.b32.xlu0 %v11422_v25, %s14461_s29  ;;  %v11645_v41 = vpop.eup %11644  ;;  %s8443_s29 = scalar_lea.sflag [#allocation5], %s564_s24 }
 0x297   : > { %v1674_v42 = vadd.f32 1.0, %v11645_v41 }
 0x299   : > { %11646 = vlog2.f32 %v1674_v42 }
 0x2a3   : > { %v11647_v43 = vpop.eup %11646 }
 0x2a4   : > { %v1676_v47 = vmul.f32 0.6931472, %v11647_v43 }
 0x2a6   : > { %v1677_v52 = vadd.f32 %v1676_v47, %v1669_v51  ;;  %v12575_v51 = vld [vmem:[%s14441_s7 + $0x8] sm:$0xff] }
 0x2a8   : > { %v2294_v49 = vrot.slane %v1677_v52, %v12313_v12  ;;  %v12514_v62 = vrot.slane %v1677_v52, %v12316_v16  ;;  %v12518_v6 = vrot.slane %v1677_v52, %v12322_v30  ;;  %v12522_v27 = vrot.slane %v1677_v52, %v12331_v54 }
 0x2a9   : > { %v12528_v59 = vmul.f32 %v1677_v52, %v12346_v22  ;;  %v12532_v44 = vrot.slane %v1677_v52, %v12525_v58  ;;  %v12544_v2 = vrot.slane %v1677_v52, %v12535_v63  ;;  %v12559_v9 = vrot.slane %v1677_v52, %v12549_v13 }
 0x2aa   : > { %v2295_v57 = vmul.f32 %v2294_v49, %v573_v50  ;;  %v2349_v18 = vmul.f32 %v12514_v62, %v573_v50  ;;  %v2397_v26 = vmul.f32 %v12518_v6, %v573_v50  ;;  %v2445_v21 = vmul.f32 %v12522_v27, %v573_v50 }
 0x2ab   : > { %v12539_v17 = vrot.slane %v12528_v59, %v12313_v12  ;;  %v2493_v1 = vmul.f32 %v12532_v44, %v573_v50  ;;  %v2541_v7 = vmul.f32 %v12544_v2, %v573_v50  ;;  %v12568_v41 = vrot.slane %v12528_v59, %v12322_v30 }
 0x2ac   : > { %v2297_v5 = vmul.f32 1.442695, %v2295_v57  ;;  %v2351_v20 = vmul.f32 1.442695, %v2349_v18  ;;  %v2399_v0 = vmul.f32 1.442695, %v2397_v26  ;;  %v2589_v57 = vmul.f32 %v12559_v9, %v573_v50 }
 0x2ad   : > { %v2447_v46 = vmul.f32 1.442695, %v2445_v21  ;;  %v2543_v47 = vmul.f32 1.442695, %v2541_v7  ;;  %v2296_v26 = vmul.f32 %v2294_v49, %v12575_v51  ;;  %v12596_v49 = vrot.slane %v12528_v59, %v12525_v58 }
 0x2ae   : > { %11648 = vpow2.f32 %v2297_v5  ;;  %v12580_v5 = vrot.slane %v1677_v52, %v12564_v3 }
 0x2af   : > { %11650 = vpow2.f32 %v2351_v20  ;;  %v2299_v52 = vmul.f32 1.442695, %v2296_v26  ;;  %v2600_v26 = vrot.slane %v12528_v59, %v12549_v13 }
 0x2b0   : > { %11652 = vpow2.f32 %v2399_v0  ;;  %v12587_v0 = vrot.slane %v12528_v59, %v12331_v54 }
 0x2b1   : > { %11654 = vpow2.f32 %v2447_v46 }
 0x2b4   : > { %2223 = vxpose.xlu0.b32.start.end [1/1] (short) (narrow) %v11422_v25, 16  ;;  %v12553_v25 = vrot.slane %v12528_v59, %v12316_v16 }
 0x2b8   : > { %v11649_v39 = vpop.eup %11648 }
 0x2b9   : > { %v2301_v60 = vmul.f32 0.0, %v11649_v39  ;;  %v11651_v24 = vpop.eup %11650 }
 0x2ba   : > { %v11653_v8 = vpop.eup %11652 }
 0x2bb   : > { %v11655_v20 = vpop.eup %11654 }
 0x2dd   : > { %11586 = vset.pattern.permute.xlu0 %v14480_v23 }
 0x308   : > { %v2257_v33 = vpop.permute.xlu0 %2256 }
 0x334   : > { %v2239_v36 = vpop.trf.xlu0 }
 0x335   : > { %2310 = vperm.xlu1 %11578, %v2239_v36  }
 0x338   : > { %v2240_v53 = vpop.trf.xlu0 }
 0x339   : > { %11579 = vset.pattern.permute.xlu1 %v14470_v55  ;;  %2315 = vperm.xlu0 %11586, %v2240_v53  }
 0x33a   : > { %2362 = vperm.xlu1 %11579, %v2239_v36  }
 0x33d   : > { %11592 = vset.pattern.permute.xlu0 %v14474_v56 }
 0x33e   : > { %11580 = vset.pattern.permute.xlu1 %v14476_v31  ;;  %2606 = vperm.xlu0 %11592, %v2240_v53  }
 0x33f   : > { %2410 = vperm.xlu1 %11580, %v2239_v36  }
 0x342   : > { %11594 = vset.pattern.permute.xlu0 %v14480_v23 }
 0x343   : > { %11581 = vset.pattern.permute.xlu1 %v14478_v34 }
 0x344   : > { %2458 = vperm.xlu1 %11581, %v2239_v36  }
 0x348   : > { %11582 = vset.pattern.permute.xlu1 %v14472_v35 }
 0x349   : > { %2506 = vperm.xlu1 %11582, %v2239_v36  }
 0x34d   : > { %11583 = vset.pattern.permute.xlu1 %v14468_v14 }
 0x34e   : > { %2554 = vperm.xlu1 %11583, %v2239_v36  }
 0x352   : > { %11584 = vset.pattern.permute.xlu1 %v14474_v56 }
 0x353   : > { %2602 = vperm.xlu1 %11584, %v2239_v36  }
 0x357   : > { %11585 = vset.pattern.permute.xlu1 %v14466_v37 }
 0x358   : > { %2650 = vperm.xlu1 %11585, %v2239_v36   ;;  %v2495_v36 = vmul.f32 1.442695, %v2493_v1 }
 0x35a   : > { %11656 = vpow2.f32 %v2495_v36 }
 0x35b   : > { %11658 = vpow2.f32 %v2543_v47 }
 0x35c   : > { %11587 = vset.pattern.permute.xlu1 %v14470_v55 }
 0x35d   : > { %2366 = vperm.xlu1 %11587, %v2240_v53  }
 0x361   : > { %11588 = vset.pattern.permute.xlu1 %v14476_v31 }
 0x362   : > { %2414 = vperm.xlu1 %11588, %v2240_v53  }
 0x364   : > { %v11657_v1 = vpop.eup %11656 }
 0x365   : > { %v11659_v7 = vpop.eup %11658 }
 0x366   : > { %11589 = vset.pattern.permute.xlu1 %v14478_v34 }
 0x367   : > { %2462 = vperm.xlu1 %11589, %v2240_v53  }
 0x36b   : > { %11590 = vset.pattern.permute.xlu1 %v14472_v35 }
 0x36c   : > { %2510 = vperm.xlu1 %11590, %v2240_v53  }
 0x370   : > { %11591 = vset.pattern.permute.xlu1 %v14468_v14 }
 0x371   : > { %2558 = vperm.xlu1 %11591, %v2240_v53  }
 0x375   : > { %11593 = vset.pattern.permute.xlu1 %v14466_v37 }
 0x376   : > { %2654 = vperm.xlu1 %11593, %v2240_v53  }
 0x39f   : > { %2259 = vxpose.xlu1.b32.start.end [1/1] (short) (narrow) %v2257_v33, 16 }
 0x3b4   : > { %v2311_v45 = vpop.permute.xlu1 %2310 }
 0x3b5   : > { %v2318_v61 = vmul.f32 %v2311_v45, %v12539_v17  ;;  %v2591_v45 = vmul.f32 1.442695, %v2589_v57  ;;  %v2398_v57 = vmul.f32 %v12518_v6, %v12575_v51 }
 0x3b7   : > { %v12546_v4 = vadd.f32 %v2318_v61, %v2301_v60  ;;  %v2637_v60 = vmul.f32 %v12580_v5, %v573_v50  ;;  %11660 = vpow2.f32 %v2591_v45  ;;  %v2401_v45 = vmul.f32 1.442695, %v2398_v57 }
 0x3b8   : > { %11662 = vpow2.f32 %v2299_v52  ;;  %v2446_v52 = vmul.f32 %v12522_v27, %v12575_v51 }
 0x3b9   : > { %v2355_v29 = vmul.f32 %v11651_v24, %v12546_v4  ;;  %v2363_v33 = vpop.permute.xlu1 %2362 }
 0x3ba   : > { %v2369_v53 = vmul.f32 %v2363_v33, %v12553_v25  ;;  %v2639_v33 = vmul.f32 1.442695, %v2637_v60 }
 0x3bc   : > { %v12561_v28 = vadd.f32 %v2369_v53, %v2355_v29  ;;  %v2350_v53 = vmul.f32 %v12514_v62, %v12575_v51  ;;  %11664 = vpow2.f32 %v2639_v33  ;;  %v2648_v33 = vrot.slane %v12528_v59, %v12564_v3 }
 0x3bd   : > { %11595 = vset.pattern.permute.xlu1 %v14470_v55 }
 0x3be   : > { %v2403_v42 = vmul.f32 %v11653_v8, %v12561_v28  ;;  %v2411_v43 = vpop.permute.xlu1 %2410  ;;  %v12606_v8 = vrot.slane %v12528_v59, %v12535_v63 }
 0x3bf   : > { %v2417_v10 = vmul.f32 %v2411_v43, %v12568_v41 }
 0x3c1   : > { %v12582_v18 = vadd.f32 %v2417_v10, %v2403_v42  ;;  %v2353_v10 = vmul.f32 1.442695, %v2350_v53  ;;  %v11661_v62 = vpop.eup %11660 }
 0x3c3   : > { %v2451_v21 = vmul.f32 %v11655_v20, %v12582_v18  ;;  %v2459_v39 = vpop.permute.xlu1 %2458  ;;  %11666 = vpow2.f32 %v2353_v10 }
 0x3c4   : > { %v2465_v46 = vmul.f32 %v2459_v39, %v12587_v0  ;;  %11668 = vpow2.f32 %v2401_v45 }
 0x3c6   : > { %v12592_v61 = vadd.f32 %v2465_v46, %v2451_v21  ;;  %v2316_v21 = vpop.permute.xlu0 %2315 }
 0x3c8   : > { %v2499_v24 = vmul.f32 %v11657_v1, %v12592_v61  ;;  %v2507_v29 = vpop.permute.xlu1 %2506  ;;  %v11663_v1 = vpop.eup %11662 }
 0x3c9   : > { %v2513_v36 = vmul.f32 %v2507_v29, %v12596_v49  ;;  %v11665_v29 = vpop.eup %11664 }
 0x3cb   : > { %v12602_v50 = vadd.f32 %v2513_v36, %v2499_v24  ;;  %v2319_v24 = vmul.f32 %v2316_v21, %v12539_v17  ;;  %v2302_v36 = vmul.f32 0.0, %v11663_v1 }
 0x3cd   : > { %v2547_v42 = vmul.f32 %v11659_v7, %v12602_v50  ;;  %v2555_v43 = vpop.permute.xlu1 %2554  ;;  %v2449_v7 = vmul.f32 1.442695, %v2446_v52  ;;  %v12627_v27 = vadd.f32 %v2319_v24, %v2302_v36  ;;  %v11667_v17 = vpop.eup %11666  ;;  %v2590_v24 = vmul.f32 %v12559_v9, %v12575_v51 }
 0x3ce   : > { %v2561_v47 = vmul.f32 %v2555_v43, %v12606_v8 }
 0x3cf   : > { %11670 = vpow2.f32 %v2449_v7  ;;  %v2356_v59 = vmul.f32 %v11667_v17, %v12627_v27  ;;  %v2638_v7 = vmul.f32 %v12580_v5, %v12575_v51  ;;  %v2607_v5 = vpop.permute.xlu0 %2606 }
 0x3d0   : > { %v12612_v20 = vadd.f32 %v2561_v47, %v2547_v42  ;;  %v2494_v47 = vmul.f32 %v12532_v44, %v12575_v51 }
 0x3d2   : > { %v2603_v39 = vpop.permute.xlu1 %2602  ;;  %v2595_v46 = vmul.f32 %v11661_v62, %v12612_v20  ;;  %v2497_v62 = vmul.f32 1.442695, %v2494_v47 }
 0x3d3   : > { %v2609_v60 = vmul.f32 %v2603_v39, %v2600_v26  ;;  %v2542_v39 = vmul.f32 %v12544_v2, %v12575_v51 }
 0x3d4   : > { %11672 = vpow2.f32 %v2497_v62 }
 0x3d5   : > { %v12620_v6 = vadd.f32 %v2609_v60, %v2595_v46  ;;  %v11669_v46 = vpop.eup %11668  ;;  %v2545_v52 = vmul.f32 1.442695, %v2542_v39 }
 0x3d7   : > { %v2651_v53 = vpop.permute.xlu1 %2650  ;;  %v2643_v42 = vmul.f32 %v11665_v29, %v12620_v6  ;;  %11674 = vpow2.f32 %v2545_v52 }
 0x3d8   : > { %v2657_v43 = vmul.f32 %v2651_v53, %v2648_v33  ;;  %v2593_v53 = vmul.f32 1.442695, %v2590_v24 }
 0x3d9   : > { %v11671_v36 = vpop.eup %11670 }
 0x3da   : > { %v12629_v10 = vadd.f32 %v2657_v43, %v2643_v42  ;;  %11676 = vpow2.f32 %v2593_v53 }
 0x3dc   : > { %v2367_v57 = vpop.permute.xlu1 %2366 }
 0x3dd   : > { %v2370_v21 = vmul.f32 %v2367_v57, %v12553_v25 }
 0x3de   : > { %v11673_v47 = vpop.eup %11672 }
 0x3df   : > { %v12635_v45 = vadd.f32 %v2370_v21, %v2356_v59 }
 0x3e1   : > { %v2415_v44 = vpop.permute.xlu1 %2414  ;;  %v2404_v60 = vmul.f32 %v11669_v46, %v12635_v45  ;;  %v11675_v59 = vpop.eup %11674 }
 0x3e2   : > { %v2418_v1 = vmul.f32 %v2415_v44, %v12568_v41  ;;  %v2641_v41 = vmul.f32 1.442695, %v2638_v7  ;;  %v2610_v44 = vmul.f32 %v2607_v5, %v2600_v26  ;;  %v2690_v26 = vmul.f32 0.5, %v12308_v11 }
 0x3e4   : > { %v12641_v29 = vadd.f32 %v2418_v1, %v2404_v60  ;;  %11678 = vpow2.f32 %v2641_v41  ;;  %v11677_v46 = vpop.eup %11676  ;;  %v2701_v41 = vld [vmem:[%s14443_s9 + $0x8] sm:$0xff] }
 0x3e5   : > { %11680 = vtanh.f32 %v2690_v26 }
 0x3e6   : > { %v2463_v25 = vpop.permute.xlu1 %2462  ;;  %v2452_v2 = vmul.f32 %v11671_v36, %v12641_v29 }
 0x3e7   : > { %v2466_v42 = vmul.f32 %v2463_v25, %v12587_v0 }
 0x3e9   : > { %v12647_v43 = vadd.f32 %v2466_v42, %v2452_v2 }
 0x3eb   : > { %v2511_v17 = vpop.permute.xlu1 %2510  ;;  %v2500_v9 = vmul.f32 %v11673_v47, %v12647_v43  ;;  %v2700_v47 = vld [vmem:[%s14443_s9] sm:$0xff] }
 0x3ec   : > { %v2514_v57 = vmul.f32 %v2511_v17, %v12596_v49  ;;  %v2712_v17 = vand.u32 4294901760, %v2700_v47 }
 0x3ee   : > { %v12651_v62 = vadd.f32 %v2514_v57, %v2500_v9  ;;  %v11679_v49 = vpop.eup %11678  ;;  %v2715_v9 = vand.u32 4294901760, %v2701_v41  ;;  %v2702_v57 = vld [vmem:[%s14443_s9 + $0x10] sm:$0xff] }
 0x3ef   : > { %v2718_v5 = vand.u32 4294901760, %v2702_v57 }
 0x3f0   : > { %v2559_v21 = vpop.permute.xlu1 %2558  ;;  %v2548_v39 = vmul.f32 %v11675_v59, %v12651_v62  ;;  %v2704_v59 = vld [vmem:[%s14443_s9 + $0x20] sm:$0xff] }
 0x3f1   : > { %v2562_v51 = vmul.f32 %v2559_v21, %v12606_v8  ;;  %v12696_v21 = vpack.c.bf16 %v2715_v9, %v2712_v17 }
 0x3f3   : > { %v12655_v0 = vadd.f32 %v2562_v51, %v2548_v39  ;;  %v12698_v39 = vsub.f32 %v2700_v47, %v2712_v17  ;;  %v12700_v51 = vsub.f32 %v2701_v41, %v2715_v9  ;;  %10775 = vmatpush3.bf16.msra.mxu0 %v12696_v21  ;;  %10739 = vmatpush3.bf16.msra.mxu1 %v12696_v21 }
 0x3f4   : > { %10776 = vmatprep.subr.bf16.mxu0 %v14535_v48  ;;  %10740 = vmatprep.subr.bf16.mxu1 %v14535_v48 }
 0x3f5   : > { %v2596_v60 = vmul.f32 %v11677_v46, %v12655_v0  ;;  %v2655_v52 = vpop.permute.xlu1 %2654  ;;  %v2705_v46 = vld [vmem:[%s14443_s9 + $0x28] sm:$0xff]  ;;  %v2797_v17 = vand.u32 4294901760, %v12698_v39  ;;  %v2804_v9 = vand.u32 4294901760, %v12700_v51 }
 0x3f6   : > { %v2658_v1 = vmul.f32 %v2655_v52, %v2648_v33  ;;  %v11681_v33 = vpop.eup %11680 }
 0x3f7   : > { %v12658_v24 = vadd.f32 %v2610_v44, %v2596_v60  ;;  %v2692_v53 = vadd.f32 1.0, %v11681_v33  ;;  %v2706_v44 = vld [vmem:[%s14443_s9 + $0x30] sm:$0xff]  ;;  %v2707_v60 = vld [vmem:[%s14443_s9 + $0x38] sm:$0xff] }
 0x3f8   : > { %v2733_v33 = vand.u32 4294901760, %v2707_v60 }
 0x3f9   : > { %v2644_v36 = vmul.f32 %v11679_v49, %v12658_v24  ;;  %v2693_v7 = vmul.f32 0.5, %v2692_v53  ;;  %v2724_v49 = vand.u32 4294901760, %v2704_v59 }
 0x3fa   : > { %v12727_v47 = vsub.f32 %v2707_v60, %v2733_v33 }
 0x3fb   : > { %v12661_v25 = vadd.f32 %v2658_v1, %v2644_v36  ;;  %v2694_v42 = vmul.f32 %v2693_v7, %v12308_v11  ;;  %v2703_v11 = vld [vmem:[%s14443_s9 + $0x18] sm:$0xff]  ;;  %v12713_v1 = vsub.f32 %v2702_v57, %v2718_v5  ;;  %v2727_v36 = vand.u32 4294901760, %v2705_v46 }
 0x3fc   : > { %v2721_v52 = vand.u32 4294901760, %v2703_v11  ;;  %v12721_v53 = vsub.f32 %v2704_v59, %v2724_v49  ;;  %v2798_v57 = vsub.f32 %v12698_v39, %v2797_v17 }
 0x3fd   : > { %v12723_v7 = vsub.f32 %v2705_v46, %v2727_v36  ;;  %v12731_v41 = vpack.c.bf16 %v2727_v36, %v2724_v49  ;;  %v2811_v59 = vand.u32 4294901760, %v12713_v1 }
 0x3fe   : > { %v12718_v26 = vsub.f32 %v2703_v11, %v2721_v52  ;;  %v2805_v11 = vsub.f32 %v12700_v51, %v2804_v9 }
 0x400   : > { %v2806_v60 = vand.u32 4294901760, %v2805_v11 }
 0x41f   : > { %v2275_v2 = vpop.trf.xlu1 }
 0x420   : > { %2374 = vperm.xlu1 %11595, %v2275_v2   ;;  %2324 = vperm.xlu0 %11594, %v2275_v2  }
 0x423   : > { %v2276_v8 = vpop.trf.xlu1 }
 0x424   : > { %11596 = vset.pattern.permute.xlu1 %v14476_v31  ;;  %11597 = vset.pattern.permute.xlu0 %v14478_v34 }
 0x425   : > { %2422 = vperm.xlu1 %11596, %v2275_v2   ;;  %2470 = vperm.xlu0 %11597, %v2275_v2  }
 0x429   : > { %11598 = vset.pattern.permute.xlu1 %v14472_v35  ;;  %11600 = vset.pattern.permute.xlu0 %v14474_v56 }
 0x42a   : > { %2518 = vperm.xlu1 %11598, %v2275_v2   ;;  %2614 = vperm.xlu0 %11600, %v2275_v2  }
 0x42e   : > { %11599 = vset.pattern.permute.xlu1 %v14468_v14  ;;  %11602 = vset.pattern.permute.xlu0 %v14470_v55 }
 0x42f   : > { %2566 = vperm.xlu1 %11599, %v2275_v2   ;;  %2378 = vperm.xlu0 %11602, %v2276_v8  }
 0x433   : > { %11601 = vset.pattern.permute.xlu1 %v14480_v23  ;;  %11605 = vset.pattern.permute.xlu0 %v14472_v35 }
 0x434   : > { %2329 = vperm.xlu1 %11601, %v2276_v8   ;;  %2522 = vperm.xlu0 %11605, %v2276_v8  }
 0x438   : > { %11603 = vset.pattern.permute.xlu1 %v14476_v31  ;;  %11609 = vset.pattern.permute.xlu0 %v14466_v37 }
 0x439   : > { %2426 = vperm.xlu1 %11603, %v2276_v8   ;;  %2666 = vperm.xlu0 %11609, %v2276_v8  }
 0x43d   : > { %11604 = vset.pattern.permute.xlu1 %v14478_v34 }
 0x43e   : > { %2474 = vperm.xlu1 %11604, %v2276_v8  }
 0x442   : > { %11606 = vset.pattern.permute.xlu1 %v14468_v14 }
 0x443   : > { %2570 = vperm.xlu1 %11606, %v2276_v8  }
 0x447   : > { %11607 = vset.pattern.permute.xlu1 %v14474_v56 }
 0x448   : > { %2618 = vperm.xlu1 %11607, %v2276_v8   ;;  %v12716_v8 = vpack.c.bf16 %v2721_v52, %v2718_v5  ;;  %v2818_v5 = vand.u32 4294901760, %v12718_v26  ;;  %v2812_v52 = vsub.f32 %v12713_v1, %v2811_v59 }
 0x44a   : > { %10778 = vmatpush3.bf16.msra.mxu0 %v12716_v8  ;;  %10742 = vmatpush3.bf16.msra.mxu1 %v12716_v8  ;;  %v2819_v49 = vsub.f32 %v12718_v26, %v2818_v5  ;;  %v12779_v3 = vpack.c.bf16 %v2818_v5, %v2811_v59 }
 0x44b   : > { %10779 = vmatprep.subr.bf16.mxu0 %v14535_v48  ;;  %10743 = vmatprep.subr.bf16.mxu1 %v14535_v48 }
 0x44c   : > { %11608 = vset.pattern.permute.xlu1 %v14466_v37  ;;  %v2813_v37 = vand.u32 4294901760, %v2812_v52  ;;  %v2820_v14 = vand.u32 4294901760, %v2819_v49  ;;  %v2846_v49 = vand.u32 4294901760, %v12727_v47 }
 0x44d   : > { %2662 = vperm.xlu1 %11608, %v2275_v2   ;;  %v2730_v2 = vand.u32 4294901760, %v2706_v44 }
 0x44e   : > { %10781 = vmatpush3.bf16.msra.mxu0 %v12731_v41  ;;  %10745 = vmatpush3.bf16.msra.mxu1 %v12731_v41  ;;  %v2847_v31 = vsub.f32 %v12727_v47, %v2846_v49 }
 0x44f   : > { %v12743_v46 = vpack.c.bf16 %v2733_v33, %v2730_v2  ;;  %10782 = vmatprep.subr.bf16.mxu0 %v14535_v48  ;;  %10746 = vmatprep.subr.bf16.mxu1 %v14535_v48  ;;  %v12757_v33 = vpack.c.bf16 %v2820_v14, %v2813_v37 }
 0x450   : > { %v2848_v23 = vand.u32 4294901760, %v2847_v31 }
 0x451   : > { %2696 = vrot.lane.b32.xlu1 %v2694_v42, %s14464_s1  ;;  %v12725_v42 = vsub.f32 %v2706_v44, %v2730_v2  ;;  %v2799_v44 = vand.u32 4294901760, %v2798_v57  ;;  %v2832_v2 = vand.u32 4294901760, %v12723_v7 }
 0x452   : > { %11611 = vset.pattern.permute.xlu1 %v14470_v55  ;;  %v2825_v55 = vand.u32 4294901760, %v12721_v53  ;;  %10784 = vmatpush3.bf16.msra.mxu0 %v12743_v46 }
 0x453   : > { %v12749_v36 = vpack.c.bf16 %v2806_v60, %v2799_v44  ;;  %10748 = vmatpush3.bf16.msra.mxu1 %v12743_v46  ;;  %10797 = vmatprep.subr.bf16.mxu0 %v14535_v48  ;;  %v2833_v11 = vsub.f32 %v12723_v7, %v2832_v2  ;;  %v2839_v52 = vand.u32 4294901760, %v12725_v42 }
 0x454   : > { %10749 = vmatprep.subr.bf16.mxu1 %v14535_v48  ;;  %v2826_v57 = vsub.f32 %v12721_v53, %v2825_v55 }
 0x455   : > { %v2834_v60 = vand.u32 4294901760, %v2833_v11  ;;  %v2840_v56 = vsub.f32 %v12725_v42, %v2839_v52  ;;  %v12783_v14 = vpack.c.bf16 %v2846_v49, %v2839_v52 }
 0x456   : > { %v2827_v44 = vand.u32 4294901760, %v2826_v57 }
 0x457   : > { %v2841_v34 = vand.u32 4294901760, %v2840_v56  ;;  %v12781_v56 = vpack.c.bf16 %v2832_v2, %v2825_v55 }
 0x458   : > { %v12763_v35 = vpack.c.bf16 %v2834_v60, %v2827_v44  ;;  %v12777_v60 = vpack.c.bf16 %v2804_v9, %v2797_v17 }
 0x459   : > { %v12769_v37 = vpack.c.bf16 %v2848_v23, %v2841_v34 }
 0x49f   : > { %v2375_v31 = vpop.permute.xlu1 %2374  ;;  %v2325_v13 = vpop.permute.xlu0 %2324 }
 0x4a0   : > { %v2381_v11 = vmul.f32 %v2375_v31, %v12561_v28  ;;  %v2332_v55 = vmul.f32 %v2325_v13, %v12546_v4 }
 0x4a2   : > { %v2383_v9 = vsel %vm1072_vm3, %v2381_v11, 0.0  ;;  %v2334_v31 = vsel %vm1072_vm3, %v2332_v55, 0.0 }
 0x4a4   : > { %v2423_v23 = vpop.permute.xlu1 %2422  ;;  %v2471_v34 = vpop.permute.xlu0 %2470 }
 0x4a5   : > { %v2429_v13 = vmul.f32 %v2423_v23, %v12582_v18 }
 0x4a7   : > { %v2431_v55 = vsel %vm1072_vm3, %v2429_v13, 0.0 }
 0x4a9   : > { %v2519_v63 = vpop.permute.xlu1 %2518  ;;  %v12785_v57 = vpop.permute.xlu0 %2614 }
 0x4aa   : > { %v2525_v5 = vmul.f32 %v2519_v63, %v12602_v50 }
 0x4ae   : > { %v2567_v58 = vpop.permute.xlu1 %2566  ;;  %v2379_v54 = vpop.permute.xlu0 %2378 }
 0x4af   : > { %v2382_v17 = vmul.f32 %v2379_v54, %v12635_v45  ;;  %v2527_v54 = vsel %vm1072_vm3, %v2525_v5, 0.0 }
 0x4b1   : > { %v2384_v59 = vsel %vm1072_vm3, %v2382_v17, 0.0 }
 0x4b2   : > { %v2385_v2 = vadd.f32 %v2384_v59, %v2383_v9 }
 0x4b3   : > { %v2330_v52 = vpop.permute.xlu1 %2329  ;;  %v2523_v49 = vpop.permute.xlu0 %2522 }
 0x4b4   : > { %v2386_v44 = vrot.slane %v2385_v2, 4  ;;  %v2333_v30 = vmul.f32 %v2330_v52, %v12627_v27  ;;  %v2526_v28 = vmul.f32 %v2523_v49, %v12651_v62 }
 0x4b6   : > { %v2387_v45 = vadd.f32 %v2386_v44, %v2385_v2  ;;  %v2335_v11 = vsel %vm1072_vm3, %v2333_v30, 0.0  ;;  %v2528_v4 = vsel %vm1072_vm3, %v2526_v28, 0.0  ;;  %v2477_v30 = vmul.f32 %v2471_v34, %v12592_v61 }
 0x4b7   : > { %v2336_v63 = vadd.f32 %v2335_v11, %v2334_v31  ;;  %v2529_v50 = vadd.f32 %v2528_v4, %v2527_v54  ;;  %v2573_v61 = vmul.f32 %v2567_v58, %v12612_v20  ;;  %v2621_v20 = vmul.f32 %v12785_v57, %v12620_v6 }
 0x4b8   : > { %v2388_v17 = vrot.slane %v2387_v45, 2  ;;  %v2427_v9 = vpop.permute.xlu1 %2426  ;;  %v2479_v4 = vsel %vm1072_vm3, %v2477_v30, 0.0 }
 0x4b9   : > { %v2337_v59 = vrot.slane %v2336_v63, 4  ;;  %v2530_v16 = vrot.slane %v2529_v50, 4  ;;  %v2430_v27 = vmul.f32 %v2427_v9, %v12641_v29 }
 0x4ba   : > { %v2389_v62 = vadd.f32 %v2388_v17, %v2387_v45 }
 0x4bb   : > { %v2338_v52 = vadd.f32 %v2337_v59, %v2336_v63  ;;  %v2531_v5 = vadd.f32 %v2530_v16, %v2529_v50  ;;  %v2432_v44 = vsel %vm1072_vm3, %v2430_v27, 0.0 }
 0x4bc   : > { %v2390_v2 = vrot.slane %v2389_v62, 1  ;;  %v2433_v49 = vadd.f32 %v2432_v44, %v2431_v55 }
 0x4bd   : > { %v2339_v18 = vrot.slane %v2338_v52, 2  ;;  %v2532_v23 = vrot.slane %v2531_v5, 2  ;;  %v2475_v28 = vpop.permute.xlu1 %2474 }
 0x4be   : > { %v2391_v31 = vadd.f32 %v2390_v2, %v2389_v62  ;;  %v2434_v54 = vrot.slane %v2433_v49, 4  ;;  %v2478_v11 = vmul.f32 %v2475_v28, %v12647_v43 }
 0x4bf   : > { %v2340_v29 = vadd.f32 %v2339_v18, %v2338_v52  ;;  %v2533_v45 = vadd.f32 %v2532_v23, %v2531_v5  ;;  %v2575_v52 = vsel %vm1072_vm3, %v2573_v61, 0.0  ;;  %v2667_v23 = vpop.permute.xlu0 %2666 }
 0x4c0   : > { %2392 = vst.msk [vmem:[#allocation3 + $0x1] sm:$0x1] %vm2343_vm4, %v2391_v31  ;;  %v2435_v16 = vadd.f32 %v2434_v54, %v2433_v49  ;;  %v2480_v13 = vsel %vm1072_vm3, %v2478_v11, 0.0  ;;  %v2623_v54 = vsel %vm1072_vm3, %v2621_v20, 0.0 }
 0x4c1   : > { %v2341_v34 = vrot.slane %v2340_v29, 1  ;;  %v2534_v63 = vrot.slane %v2533_v45, 1  ;;  %v2481_v50 = vadd.f32 %v2480_v13, %v2479_v4 }
 0x4c2   : > { %v2436_v17 = vrot.slane %v2435_v16, 2  ;;  %v2571_v9 = vpop.permute.xlu1 %2570 }
 0x4c3   : > { %v2342_v59 = vadd.f32 %v2341_v34, %v2340_v29  ;;  %v2535_v27 = vadd.f32 %v2534_v63, %v2533_v45  ;;  %v2482_v62 = vrot.slane %v2481_v50, 4  ;;  %v2574_v43 = vmul.f32 %v2571_v9, %v12655_v0 }
 0x4c4   : > { %v2437_v55 = vadd.f32 %v2436_v17, %v2435_v16  ;;  %v2670_v45 = vmul.f32 %v2667_v23, %v12661_v25 }
 0x4c5   : > { %2344 = vst.msk [vmem:[#allocation3] sm:$0x1] %vm2343_vm4, %v2342_v59  ;;  %2536 = vst.msk [vmem:[#allocation3 + $0x4] sm:$0x1] %vm2343_vm4, %v2535_v27  ;;  %v2483_v5 = vadd.f32 %v2482_v62, %v2481_v50  ;;  %v2576_v58 = vsel %vm1072_vm3, %v2574_v43, 0.0 }
 0x4c6   : > { %v2438_v44 = vrot.slane %v2437_v55, 1  ;;  %v2577_v30 = vadd.f32 %v2576_v58, %v2575_v52 }
 0x4c7   : > { %v2484_v2 = vrot.slane %v2483_v5, 2  ;;  %v2619_v49 = vpop.permute.xlu1 %2618 }
 0x4c8   : > { %v2439_v18 = vadd.f32 %v2438_v44, %v2437_v55  ;;  %v2578_v0 = vrot.slane %v2577_v30, 4  ;;  %v2622_v28 = vmul.f32 %v2619_v49, %v12658_v24  ;;  %v2672_v24 = vsel %vm1072_vm3, %v2670_v45, 0.0 }
 0x4c9   : > { %v2485_v31 = vadd.f32 %v2484_v2, %v2483_v5 }
 0x4ca   : > { %2440 = vst.msk [vmem:[#allocation3 + $0x2] sm:$0x1] %vm2343_vm4, %v2439_v18  ;;  %v2579_v11 = vadd.f32 %v2578_v0, %v2577_v30  ;;  %v2624_v29 = vsel %vm1072_vm3, %v2622_v28, 0.0  ;;  %v8523_v30 = vld [vmem:[%s14442_s8] ss:$0 sm:$0xff] }
 0x4cb   : > { %v2486_v6 = vrot.slane %v2485_v31, 1  ;;  %v2625_v57 = vadd.f32 %v2624_v29, %v2623_v54  ;;  %v2688_v2 = vmul.f32 %v8523_v30, %v12346_v22  ;;  %v14545_v22 = vpack.c.bf16 %v12700_v51, %v12698_v39 }
 0x4cc   : > { %v2580_v4 = vrot.slane %v2579_v11, 2  ;;  %v2663_v16 = vpop.permute.xlu1 %2662  ;;  %v14548_v39 = vpack.c.bf16 %v12727_v47, %v12725_v42 }
 0x4cd   : > { %v2487_v13 = vadd.f32 %v2486_v6, %v2485_v31  ;;  %v2626_v61 = vrot.slane %v2625_v57, 4  ;;  %v2669_v34 = vmul.f32 %v2663_v16, %v12629_v10  ;;  %v11746_v6 = vld [vmem:[%s12001_s19] sm:$0xff]  ;;  %s8519_s19 = sshll.u32 %s564_s24, 3 }
 0x4ce   : > { %v2581_v63 = vadd.f32 %v2580_v4, %v2579_v11  ;;  %s566_s1 = scalar_lea.vmem [#allocation4], %s8519_s19  ;;  %s11755_s19 = sshll.u32 %s11829_s0, 4  ;;  %s11756_s19 = int_to_ptr.vmem [resolvable:$false] %s11755_s19 }
 0x4cf   : > { %2488 = vst.msk [vmem:[#allocation3 + $0x3] sm:$0x1] %vm2343_vm4, %v2487_v13  ;;  %v2627_v50 = vadd.f32 %v2626_v61, %v2625_v57  ;;  %v2671_v17 = vsel %vm1072_vm3, %v2669_v34, 0.0  ;;  %s8456_s20 = sshll.u32 %s566_s1, 4  ;;  %s11757_s27 = scalar_lea.vmem %s11756_s19, 256  ;;  %s14393_s20 = int_to_ptr.vmem [resolvable:$true] %s8456_s20 }
 0x4d0   : > { %v2582_v9 = vrot.slane %v2581_v63, 1  ;;  %v2673_v59 = vadd.f32 %v2672_v24, %v2671_v17  ;;  %v2697_v23 = vpop.permute.xlu1 %2696  ;;  %v3279_v24 = vld [vmem:[%s14444_s10] sm:$0xff]  ;;  %v3281_v17 = vld [vmem:[%s14444_s10 + $0x10] sm:$0xff]  ;;  %p11758_p0 = scmp.lt.s32.totalorder %s14393_s20, %s11756_s19 }
 0x4d1   : > { %v2628_v27 = vrot.slane %v2627_v50, 2 }
 0x4d2   : > { %v2583_v25 = vadd.f32 %v2582_v9, %v2581_v63  ;;  %v2674_v62 = vrot.slane %v2673_v59, 4  ;;  %v3294_v9 = vand.u32 4294901760, %v3279_v24 }
 0x4d3   : > { %v2629_v43 = vadd.f32 %v2628_v27, %v2627_v50  ;;  %v3280_v50 = vld [vmem:[%s14444_s10 + $0x8] sm:$0xff]  ;;  %v3282_v27 = vld [vmem:[%s14444_s10 + $0x18] sm:$0xff] }
 0x4d4   : > { %2584 = vst.msk [vmem:[#allocation3 + $0x5] sm:$0x1] %vm2343_vm4, %v2583_v25  ;;  %v2675_v55 = vadd.f32 %v2674_v62, %v2673_v59  ;;  %v3297_v59 = vand.u32 4294901760, %v3280_v50  ;;  %v3300_v25 = vand.u32 4294901760, %v3281_v17  ;;  %v3303_v62 = vand.u32 4294901760, %v3282_v27 }
 0x4d5   : > { %v2630_v52 = vrot.slane %v2629_v43, 1 }
 0x4d6   : > { %v2676_v5 = vrot.slane %v2675_v55, 2 }
 0x4d7   : > { %v2631_v10 = vadd.f32 %v2630_v52, %v2629_v43  ;;  %v12900_v43 = vpack.c.bf16 %v3297_v59, %v3294_v9  ;;  %v3381_v52 = vsub.f32 %v3280_v50, %v3297_v59  ;;  %v3810_v59 = vld [vmem:[%s14446_s12 + $0x28] sm:$0xff] }
 0x4d8   : > { %v2677_v58 = vadd.f32 %v2676_v5, %v2675_v55  ;;  %v3374_v55 = vsub.f32 %v3279_v24, %v3294_v9  ;;  %v3388_v5 = vsub.f32 %v3281_v17, %v3300_v25  ;;  %v3809_v9 = vld [vmem:[%s14446_s12 + $0x20] sm:$0xff] }
 0x4d9   : > { %2632 = vst.msk [vmem:[#allocation3 + $0x6] sm:$0x1] %vm2343_vm4, %v2631_v10  ;;  %v3395_v10 = vsub.f32 %v3282_v27, %v3303_v62 }
 0x4da   : > { %v2678_v20 = vrot.slane %v2677_v58, 1 }
 0x4dc   : > { %v2679_v44 = vadd.f32 %v2678_v20, %v2677_v58  ;;  %v12903_v58 = vpack.c.bf16 %v3303_v62, %v3300_v25  ;;  %v3375_v20 = vand.u32 4294901760, %v3374_v55  ;;  %v3841_v25 = vand.u32 4294901760, %v3809_v9 }
 0x4dd   : > { %v3844_v62 = vand.u32 4294901760, %v3810_v59 }
 0x4de   : > { %2680 = vst.msk [vmem:[#allocation3 + $0x7] sm:$0x1] %vm2343_vm4, %v2679_v44  ;;  %v3382_v44 = vand.u32 4294901760, %v3381_v52  ;;  %v3376_v30 = vsub.f32 %v3374_v55, %v3375_v20 }
 0x4e5   : > { %v2681_v49 = vld [vmem:[#allocation3] sm:$0xff] }
 0x4e6   : > { %v2689_v18 = vadd.f32 %v2688_v2, %v2681_v49  ;;  %v3383_v2 = vsub.f32 %v3381_v52, %v3382_v44  ;;  %v3389_v49 = vand.u32 4294901760, %v3388_v5 }
 0x4e8   : > { %v2699_v0 = vmul.f32 %v2697_v23, %v2689_v18  ;;  %v3396_v18 = vand.u32 4294901760, %v3395_v10  ;;  %v3377_v23 = vand.u32 4294901760, %v3376_v30 }
 0x4ea   : > { %v2709_v28 = vsel %vm1072_vm3, %v2699_v0, 0  ;;  %v3384_v0 = vand.u32 4294901760, %v3383_v2 }
 0x4eb   : > { %v2784_v31 = vand.u32 4294901760, %v2709_v28 }
 0x4ed   : > { %v2785_v54 = vsub.f32 %v2709_v28, %v2784_v31  ;;  %v3390_v28 = vsub.f32 %v3388_v5, %v3389_v49 }
 0x4ef   : > { %v2786_v11 = vand.u32 4294901760, %v2785_v54 }
 0x4f1   : > { %9557 = vmatmul.mubr.f32.vlgmr.msra.gmra.mrb[4].mxu0 %v2786_v11  ;;  %v2787_v29 = vsub.f32 %v2785_v54, %v2786_v11  ;;  %v3391_v11 = vand.u32 4294901760, %v3390_v28 }
 0x4f2   : > { %10799 = vmatpush3.bf16.msra.mxu0 %v12696_v21  ;;  %9594 = vmatprep.mubr.msk.f32.mxu0 %vm11816_vm0, %v14534_v38  ;;  %v14547_v21 = vpack.c.bf16 %v12723_v7, %v12721_v53 }
 0x4f3   : > { %10800 = vmatprep.subr.bf16.mxu0 %v14535_v48  ;;  %v2788_v45 = vand.u32 4294901760, %v2787_v29 }
 0x4f5   : > { %9500 = vmatmul.mubr.f32.vlgmr.msra.gmra.mrb[4].mxu1 %v2788_v45 }
 0x4f6   : > { %10751 = vmatpush3.bf16.msra.mxu1 %v12749_v36  ;;  %10802 = vmatpush3.bf16.msra.mxu0 %v12716_v8 }
 0x4f7   : > { %10752 = vmatprep.subr.bf16.mxu1 %v14535_v48  ;;  %10803 = vmatprep.subr.bf16.mxu0 %v14535_v48 }
 0x4f8   : > { %9518 = vmatprep.mubr.msk.f32.mxu1 %vm11816_vm0, %v14534_v38 }
 0x4fa   : > { %10754 = vmatpush3.bf16.msra.mxu1 %v12757_v33  ;;  %10805 = vmatpush3.bf16.msra.mxu0 %v12731_v41 }
 0x4fb   : > { %10755 = vmatprep.subr.bf16.mxu1 %v14535_v48  ;;  %10806 = vmatprep.subr.bf16.mxu0 %v14535_v48 }
 0x4fe   : > { %10757 = vmatpush3.bf16.msra.mxu1 %v12763_v35  ;;  %10808 = vmatpush3.bf16.msra.mxu0 %v12743_v46  ;;  %v14546_v35 = vpack.c.bf16 %v12718_v26, %v12713_v1 }
 0x4ff   : > { %10758 = vmatprep.subr.bf16.mxu1 %v14535_v48  ;;  %10893 = vmatprep.subr.bf16.mxu0 %v14535_v48 }
 0x501   : > { %9595 = vmatmul.mubr.f32.vlgmr.msra.gmra.mrb[6].mxu0 %v2784_v31 }
 0x502   : > { %10760 = vmatpush3.bf16.msra.mxu1 %v12769_v37  ;;  %9765 = vmatprep.mubr.msk.f32.mxu0 %vm11816_vm0, %v14534_v38 }
 0x503   : > { %10761 = vmatprep.subr.bf16.mxu1 %v14535_v48 }
 0x505   : > { %9519 = vmatmul.mubr.f32.vlgmr.msra.gmra.mrb[6].mxu1 %v2784_v31 }
 0x506   : > { %10763 = vmatpush3.bf16.msra.mxu1 %v14545_v22  ;;  %9537 = vmatprep.mubr.msk.f32.mxu1 %vm11816_vm0, %v14534_v38  ;;  %v10822_v22 = vpack.c.bf16 %v3381_v52, %v3374_v55  ;;  %v12977_v55 = vsub.f32 %v3809_v9, %v3841_v25  ;;  %v12979_v52 = vsub.f32 %v3810_v59, %v3844_v62 }
 0x507   : > { %10764 = vmatprep.subr.bf16.mxu1 %v14535_v48 }
 0x50a   : > { %10766 = vmatpush3.bf16.msra.mxu1 %v14546_v35  ;;  %v10825_v35 = vpack.c.bf16 %v3395_v10, %v3388_v5  ;;  %v3811_v5 = vld [vmem:[%s14446_s12 + $0x30] sm:$0xff] }
 0x50b   : > { %10767 = vmatprep.subr.bf16.mxu1 %v14535_v48 }
 0x50e   : > { %10769 = vmatpush3.bf16.msra.mxu1 %v14547_v21  ;;  %v10834_v21 = vpack.c.bf16 %v3382_v44, %v3375_v20  ;;  %v3847_v20 = vand.u32 4294901760, %v3811_v5 }
 0x50f   : > { %10770 = vmatprep.subr.bf16.mxu1 %v14535_v48 }
 0x510   : > { %v12994_v2 = vsub.f32 %v3811_v5, %v3847_v20 }
 0x512   : > { %10772 = vmatpush3.bf16.msra.mxu1 %v14548_v39  ;;  %v10837_v39 = vpack.c.bf16 %v3396_v18, %v3389_v49 }
 0x513   : > { %10785 = vmatprep.subr.bf16.mxu1 %v14535_v48 }
 0x515   : > { %9538 = vmatmul.mubr.f32.vlgmr.msra.gmra.mrb[8].mxu1 %v2785_v54  ;;  %v10816_v54 = vpack.c.bf16 %v3384_v0, %v3377_v23  ;;  %v3814_v23 = vld [vmem:[%s14446_s12 + $0x48] sm:$0xff] }
 0x516   : > { %10787 = vmatpush3.bf16.msra.mxu1 %v12777_v60  ;;  %9575 = vmatprep.mubr.msk.f32.mxu1 %vm11816_vm0, %v14534_v38 }
 0x517   : > { %10788 = vmatprep.subr.bf16.mxu1 %v14535_v48 }
 0x51a   : > { %10790 = vmatpush3.bf16.msra.mxu1 %v12779_v3 }
 0x51b   : > { %10791 = vmatprep.subr.bf16.mxu1 %v14535_v48 }
 0x51e   : > { %10793 = vmatpush3.bf16.msra.mxu1 %v12781_v56 }
 0x51f   : > { %10794 = vmatprep.subr.bf16.mxu1 %v14535_v48 }
 0x522   : > { %10796 = vmatpush3.bf16.msra.mxu1 %v12783_v14 }
 0x523   : > { %10809 = vmatprep.subr.bf16.mxu1 %v14535_v48 }
 0x525   : > { %9576 = vmatmul.mubr.f32.vlgmr.msra.gmra.mrb[10].mxu1 %v2784_v31  ;;  %v3397_v31 = vsub.f32 %v3395_v10, %v3396_v18  ;;  %v3812_v10 = vld [vmem:[%s14446_s12 + $0x38] sm:$0xff]  ;;  %v3813_v18 = vld [vmem:[%s14446_s12 + $0x40] sm:$0xff] }
 0x526   : > { %9605 = vmatprep.mubr.msk.f32.mxu1 %vm11816_vm0, %v14534_v38  ;;  %10811 = vmatpush3.bf16.msra.mxu1 %v12900_v43  ;;  %v3850_v44 = vand.u32 4294901760, %v3812_v10  ;;  %v3853_v28 = vand.u32 4294901760, %v3813_v18 }
 0x527   : > { %10812 = vmatprep.subr.bf16.mxu1 %v14535_v48  ;;  %v3398_v29 = vand.u32 4294901760, %v3397_v31  ;;  %v3856_v31 = vand.u32 4294901760, %v3814_v23 }
 0x528   : > { %v12996_v49 = vsub.f32 %v3812_v10, %v3850_v44 }
 0x529   : > { %v10819_v45 = vpack.c.bf16 %v3398_v29, %v3391_v11  ;;  %v13011_v11 = vsub.f32 %v3813_v18, %v3853_v28  ;;  %v13013_v29 = vsub.f32 %v3814_v23, %v3856_v31  ;;  %v3950_v18 = vand.u32 4294901760, %v12977_v55 }
 0x52a   : > { %10814 = vmatpush3.bf16.msra.mxu1 %v12903_v58  ;;  %v10903_v0 = vpack.c.bf16 %v12996_v49, %v12994_v2  ;;  %v3957_v23 = vand.u32 4294901760, %v12979_v52 }
 0x52b   : > { %10815 = vmatprep.subr.bf16.mxu1 %v14535_v48 }
 0x5c4   : > { %v3070_v51 = vpop.f32.mrb[4].mxu0 }
 0x5c5   : > { %v9558_v1 = vpop.f32.mrb[5].mxu0 }
 0x5c8   : > { %v2790_v8 = vpop.f32.mrb[4].mxu1 }
 0x5c9   : > { %v9501_v26 = vpop.f32.mrb[5].mxu1 }
 0x5d4   : > { %v3244_v3 = vpop.f32.mrb[6].mxu0 }
 0x5d5   : > { %v9596_v53 = vpop.f32.mrb[7].mxu0 }
 0x5d8   : > { %v2901_v7 = vpop.f32.mrb[6].mxu1 }
 0x5d9   : > { %v2902_v42 = vadd.f32 %v2901_v7, %v2790_v8  ;;  %v9520_v47 = vpop.f32.mrb[7].mxu1  ;;  %v8525_v7 = vld [vmem:[%s14449_s15] ss:$0 sm:$0xff] }
 0x5e8   : > { %v2989_v41 = vpop.f32.mrb[8].mxu1 }
 0x5e9   : > { %v2990_v46 = vadd.f32 %v2989_v41, %v2902_v42  ;;  %v9539_v36 = vpop.f32.mrb[9].mxu1 }
 0x5eb   : > { %v3071_v33 = vadd.f32 %v3070_v51, %v2990_v46 }
 0x5f8   : > { %v3165_v14 = vpop.f32.mrb[10].mxu1 }
 0x5f9   : > { %v3166_v37 = vadd.f32 %v3165_v14, %v3071_v33  ;;  %v9577_v60 = vpop.f32.mrb[11].mxu1 }
 0x5fa   : > { %v3805_v60 = vld [vmem:[%s14446_s12] sm:$0xff] }
 0x5fb   : > { %v3245_v56 = vadd.f32 %v3244_v3, %v3166_v37  ;;  %v8524_v3 = vld [vmem:[%s14448_s14] ss:$0 sm:$0xff] }
 0x5fd   : > { %v3248_v57 = vadd.f32 %v11746_v6, %v3245_v56  ;;  %v3806_v56 = vld [vmem:[%s14446_s12 + $0x8] sm:$0xff]  ;;  %v3829_v6 = vand.u32 4294901760, %v3805_v60 }
 0x5ff   : > { %v3251_v4 = vsel %vm583_vm2, %v3248_v57, 0.0 }
 0x600   : > { %3252 = vadd.xlane.f32.xlu1 %v3251_v4  ;;  %v12950_v4 = vsub.f32 %v3805_v60, %v3829_v6 }
 0x68d   : > { %v3253_v16 = vpop.xlane.xlu1 %3252 }
 0x68e   : > { %v3255_v13 = vmul.f32 0.03125, %v3253_v16 }
 0x690   : > { %v3256_v61 = vsub.f32 %v3248_v57, %v3255_v13  ;;  %v3832_v57 = vand.u32 4294901760, %v3806_v56  ;;  %v3807_v13 = vld [vmem:[%s14446_s12 + $0x10] sm:$0xff] }
 0x692   : > { %v3257_v34 = vmul.f32 %v3256_v61, %v3256_v61  ;;  %v12952_v16 = vsub.f32 %v3806_v56, %v3832_v57 }
 0x694   : > { %v3258_v63 = vsel %vm583_vm2, %v3257_v34, 0.0  ;;  %v10894_v34 = vpack.c.bf16 %v12952_v16, %v12950_v4 }
 0x695   : > { %3259 = vadd.xlane.f32.xlu0 %v3258_v63  ;;  %v3835_v63 = vand.u32 4294901760, %v3807_v13 }
 0x696   : > { %10895 = vmatpush3.bf16.msra.mxu0 %v10894_v34  ;;  %v3922_v34 = vand.u32 4294901760, %v12950_v4 }
 0x697   : > { %v12962_v50 = vsub.f32 %v3807_v13, %v3835_v63  ;;  %10896 = vmatprep.subr.bf16.mxu0 %v14535_v48 }
 0x698   : > { %v3923_v9 = vsub.f32 %v12950_v4, %v3922_v34 }
 0x722   : > { %v3260_v51 = vpop.xlane.xlu0 %3259 }
 0x723   : > { %v3261_v1 = vmul.f32 0.03125, %v3260_v51  ;;  %v13026_v51 = vpack.c.bf16 %v3850_v44, %v3847_v20 }
 0x725   : > { %v3262_v8 = vadd.f32 1e-05, %v3261_v1 }
 0x727   : > { %11682 = vrsqrt.f32 %v3262_v8 }
 0x731   : > { %v11683_v26 = vpop.eup %11682 }
 0x732   : > { %v3264_v53 = vmul.f32 %v11683_v26, %v3256_v61  ;;  %v3808_v61 = vld [vmem:[%s14446_s12 + $0x18] sm:$0xff]  ;;  %v3817_v26 = vld [vmem:[%s14446_s12 + $0x60] sm:$0xff] }
 0x733   : > { %v3838_v24 = vand.u32 4294901760, %v3808_v61 }
 0x734   : > { %v3271_v42 = vmul.f32 %v8524_v3, %v3264_v53  ;;  %v3818_v3 = vld [vmem:[%s14446_s12 + $0x68] sm:$0xff]  ;;  %v3819_v53 = vld [vmem:[%s14446_s12 + $0x70] sm:$0xff] }
 0x735   : > { %v12964_v17 = vsub.f32 %v3808_v61, %v3838_v24  ;;  %v12992_v30 = vpack.c.bf16 %v3838_v24, %v3835_v63  ;;  %v3929_v63 = vand.u32 4294901760, %v12952_v16 }
 0x736   : > { %v12914_v47 = vadd.f32 %v8525_v7, %v3271_v42  ;;  %v3865_v7 = vand.u32 4294901760, %v3817_v26  ;;  %v3868_v42 = vand.u32 4294901760, %v3818_v3 }
 0x737   : > { %v10897_v27 = vpack.c.bf16 %v12964_v17, %v12962_v50  ;;  %v3930_v59 = vsub.f32 %v12952_v16, %v3929_v63 }
 0x738   : > { %v3291_v41 = vsel %vm583_vm2, %v12914_v47, 0  ;;  %v13053_v60 = vsub.f32 %v3818_v3, %v3868_v42  ;;  %v13072_v24 = vpack.c.bf16 %v3868_v42, %v3865_v7  ;;  %v3985_v3 = vand.u32 4294901760, %v13013_v29 }
 0x739   : > { %v3362_v46 = vand.u32 4294901760, %v3291_v41  ;;  %10898 = vmatpush3.bf16.msra.mxu0 %v10897_v27  ;;  %v3936_v27 = vand.u32 4294901760, %v12962_v50  ;;  %v3931_v5 = vand.u32 4294901760, %v3930_v59 }
 0x73a   : > { %10899 = vmatprep.subr.bf16.mxu0 %v14535_v48  ;;  %v3986_v42 = vsub.f32 %v13013_v29, %v3985_v3 }
 0x73b   : > { %v3363_v36 = vsub.f32 %v3291_v41, %v3362_v46  ;;  %v3820_v41 = vld [vmem:[%s14446_s12 + $0x78] sm:$0xff]  ;;  %v3937_v10 = vsub.f32 %v12962_v50, %v3936_v27  ;;  %v3951_v50 = vsub.f32 %v12977_v55, %v3950_v18 }
 0x73d   : > { %v3364_v33 = vand.u32 4294901760, %v3363_v36  ;;  %v3938_v20 = vand.u32 4294901760, %v3937_v10  ;;  %v13120_v10 = vpack.c.bf16 %v3929_v63, %v3922_v34 }
 0x73f   : > { %v3365_v14 = vsub.f32 %v3363_v36, %v3364_v33 }
 0x741   : > { %v3366_v37 = vand.u32 4294901760, %v3365_v14  ;;  %v3874_v14 = vand.u32 4294901760, %v3820_v41 }
 0x743   : > { %9606 = vmatmul.mubr.f32.vlgmr.msra.gmra.mrb[12].mxu1 %v3366_v37  ;;  %v13051_v37 = vsub.f32 %v3817_v26, %v3865_v7 }
 0x744   : > { %10817 = vmatpush3.bf16.msra.mxu1 %v10816_v54  ;;  %9616 = vmatprep.mubr.msk.f32.mxu1 %vm11816_vm0, %v14534_v38  ;;  %v13009_v54 = vpack.c.bf16 %v3844_v62, %v3841_v25  ;;  %v3943_v25 = vand.u32 4294901760, %v12964_v17  ;;  %v3924_v62 = vand.u32 4294901760, %v3923_v9 }
 0x745   : > { %10818 = vmatprep.subr.bf16.mxu1 %v14535_v48  ;;  %v4006_v59 = vand.u32 4294901760, %v13051_v37 }
 0x746   : > { %v13085_v16 = vpack.c.bf16 %v3931_v5, %v3924_v62 }
 0x748   : > { %10820 = vmatpush3.bf16.msra.mxu1 %v10819_v45  ;;  %v3815_v45 = vld [vmem:[%s14446_s12 + $0x50] sm:$0xff] }
 0x749   : > { %10821 = vmatprep.subr.bf16.mxu1 %v14535_v48 }
 0x74b   : > { %9617 = vmatmul.mubr.f32.vlgmr.msra.gmra.mrb[12].mxu1 %v3362_v46 }
 0x74c   : > { %10823 = vmatpush3.bf16.msra.mxu1 %v10822_v22  ;;  %9627 = vmatprep.mubr.msk.f32.mxu1 %vm11816_vm0, %v14534_v38  ;;  %v3816_v22 = vld [vmem:[%s14446_s12 + $0x58] sm:$0xff] }
 0x74d   : > { %10824 = vmatprep.subr.bf16.mxu1 %v14535_v48 }
 0x750   : > { %10826 = vmatpush3.bf16.msra.mxu1 %v10825_v35  ;;  %v10906_v35 = vpack.c.bf16 %v13013_v29, %v13011_v11  ;;  %v4007_v29 = vsub.f32 %v13051_v37, %v4006_v59 }
 0x751   : > { %10827 = vmatprep.subr.bf16.mxu1 %v14535_v48 }
 0x753   : > { %9628 = vmatmul.mubr.f32.vlgmr.msra.gmra.mrb[12].mxu1 %v3363_v36 }
 0x754   : > { %10829 = vmatpush3.bf16.msra.mxu1 %v12900_v43  ;;  %9638 = vmatprep.mubr.msk.f32.mxu1 %vm11816_vm0, %v14534_v38 }
 0x755   : > { %10830 = vmatprep.subr.bf16.mxu1 %v14535_v48 }
 0x758   : > { %10832 = vmatpush3.bf16.msra.mxu1 %v12903_v58 }
 0x759   : > { %10833 = vmatprep.subr.bf16.mxu1 %v14535_v48 }
 0x75b   : > { %9639 = vmatmul.mubr.f32.vlgmr.msra.gmra.mrb[12].mxu1 %v3364_v33  ;;  %v13048_v33 = vpack.c.bf16 %v3856_v31, %v3853_v28  ;;  %v3952_v28 = vand.u32 4294901760, %v3951_v50 }
 0x75c   : > { %10835 = vmatpush3.bf16.msra.mxu1 %v10834_v21  ;;  %9649 = vmatprep.mubr.msk.f32.mxu1 %vm11816_vm0, %v14534_v38  ;;  %v3859_v21 = vand.u32 4294901760, %v3815_v45 }
 0x75d   : > { %10836 = vmatprep.subr.bf16.mxu1 %v14535_v48 }
 0x75e   : > { %v13028_v1 = vsub.f32 %v3815_v45, %v3859_v21  ;;  %v3964_v45 = vand.u32 4294901760, %v12994_v2 }
 0x760   : > { %10838 = vmatpush3.bf16.msra.mxu1 %v10837_v39  ;;  %v3862_v39 = vand.u32 4294901760, %v3816_v22 }
 0x761   : > { %10839 = vmatprep.subr.bf16.mxu1 %v14535_v48 }
 0x762   : > { %v13030_v8 = vsub.f32 %v3816_v22, %v3862_v39  ;;  %v13063_v13 = vpack.c.bf16 %v3862_v39, %v3859_v21  ;;  %v3971_v22 = vand.u32 4294901760, %v12996_v49  ;;  %v3965_v21 = vsub.f32 %v12994_v2, %v3964_v45 }
 0x763   : > { %9650 = vmatmul.mubr.f32.vlgmr.msra.gmra.mrb[12].mxu1 %v3362_v46 }
 0x764   : > { %10841 = vmatpush3.bf16.msra.mxu1 %v12900_v43  ;;  %9660 = vmatprep.mubr.msk.f32.mxu1 %vm11816_vm0, %v14534_v38  ;;  %v12975_v43 = vpack.c.bf16 %v3832_v57, %v3829_v6  ;;  %v10909_v36 = vpack.c.bf16 %v13030_v8, %v13028_v1  ;;  %v13057_v6 = vsub.f32 %v3820_v41, %v3874_v14  ;;  %v3966_v26 = vand.u32 4294901760, %v3965_v21 }
 0x765   : > { %10842 = vmatprep.subr.bf16.mxu1 %v14535_v48  ;;  %v10912_v57 = vpack.c.bf16 %v13053_v60, %v13051_v37  ;;  %v3972_v39 = vsub.f32 %v12996_v49, %v3971_v22  ;;  %v3999_v2 = vand.u32 4294901760, %v13030_v8  ;;  %v13130_v21 = vpack.c.bf16 %v3957_v23, %v3950_v18 }
 0x766   : > { %v13134_v34 = vpack.c.bf16 %v3971_v22, %v3964_v45 }
 0x768   : > { %10844 = vmatpush3.bf16.msra.mxu1 %v12903_v58  ;;  %v10900_v58 = vpack.c.bf16 %v12979_v52, %v12977_v55  ;;  %v3973_v55 = vand.u32 4294901760, %v3972_v39 }
 0x769   : > { %10845 = vmatprep.subr.bf16.mxu1 %v14535_v48 }
 0x76a   : > { %10901 = vmatpush3.bf16.msra.mxu0 %v10900_v58  ;;  %v3944_v58 = vsub.f32 %v12964_v17, %v3943_v25  ;;  %v3958_v17 = vsub.f32 %v12979_v52, %v3957_v23  ;;  %v3978_v52 = vand.u32 4294901760, %v13011_v11 }
 0x76b   : > { %9661 = vmatmul.mubr.f32.vlgmr.msra.gmra.mrb[12].mxu1 %v3362_v46  ;;  %10902 = vmatprep.subr.bf16.mxu0 %v14535_v48  ;;  %v3871_v46 = vand.u32 4294901760, %v3819_v53 }
 0x76c   : > { %9695 = vmatprep.mubr.msk.f32.mxu1 %vm11816_vm0, %v14534_v38  ;;  %10847 = vmatpush3.bf16.msra.mxu1 %v12975_v43  ;;  %v3945_v44 = vand.u32 4294901760, %v3944_v58  ;;  %v3959_v31 = vand.u32 4294901760, %v3958_v17  ;;  %v3979_v7 = vsub.f32 %v13011_v11, %v3978_v52  ;;  %v4013_v11 = vand.u32 4294901760, %v13053_v60 }
 0x76d   : > { %10848 = vmatprep.subr.bf16.mxu1 %v14535_v48  ;;  %v13055_v56 = vsub.f32 %v3819_v53, %v3871_v46  ;;  %v13083_v4 = vpack.c.bf16 %v3874_v14, %v3871_v46  ;;  %v13104_v53 = vpack.c.bf16 %v3973_v55, %v3966_v26  ;;  %v3987_v46 = vand.u32 4294901760, %v3986_v42 }
 0x76e   : > { %10904 = vmatpush3.bf16.msra.mxu0 %v10903_v0  ;;  %v13090_v0 = vpack.c.bf16 %v3945_v44, %v3938_v20  ;;  %v3980_v41 = vand.u32 4294901760, %v3979_v7  ;;  %v4014_v5 = vsub.f32 %v13053_v60, %v4013_v11  ;;  %v4008_v58 = vand.u32 4294901760, %v4007_v29 }
 0x76f   : > { %10905 = vmatprep.subr.bf16.mxu0 %v14535_v48  ;;  %v10915_v61 = vpack.c.bf16 %v13057_v6, %v13055_v56  ;;  %v13136_v63 = vpack.c.bf16 %v3985_v3, %v3978_v52  ;;  %v13140_v26 = vpack.c.bf16 %v4013_v11, %v4006_v59 }
 0x770   : > { %10850 = vmatpush3.bf16.msra.mxu1 %v12992_v30  ;;  %v13110_v14 = vpack.c.bf16 %v3987_v46, %v3980_v41  ;;  %v4015_v20 = vand.u32 4294901760, %v4014_v5 }
 0x771   : > { %10851 = vmatprep.subr.bf16.mxu1 %v14535_v48 }
 0x772   : > { %10907 = vmatpush3.bf16.msra.mxu0 %v10906_v35  ;;  %v13098_v35 = vpack.c.bf16 %v3959_v31, %v3952_v28  ;;  %v13124_v44 = vpack.c.bf16 %v4015_v20, %v4008_v58  ;;  %v13128_v28 = vpack.c.bf16 %v3943_v25, %v3936_v27  ;;  %v14496_v58 = vmov -1.0  }
 0x773   : > { %10908 = vmatprep.subr.bf16.mxu0 %v14535_v48 }
 0x774   : > { %10853 = vmatpush3.bf16.msra.mxu1 %v13009_v54 }
 0x775   : > { %10854 = vmatprep.subr.bf16.mxu1 %v14535_v48 }
 0x776   : > { %10910 = vmatpush3.bf16.msra.mxu0 %v10909_v36  ;;  %v3992_v36 = vand.u32 4294901760, %v13028_v1 }
 0x777   : > { %10911 = vmatprep.subr.bf16.mxu0 %v14535_v48 }
 0x778   : > { %10856 = vmatpush3.bf16.msra.mxu1 %v13026_v51  ;;  %v3993_v49 = vsub.f32 %v13028_v1, %v3992_v36  ;;  %v4020_v1 = vand.u32 4294901760, %v13055_v56  ;;  %v13138_v39 = vpack.c.bf16 %v3999_v2, %v3992_v36 }
 0x779   : > { %10857 = vmatprep.subr.bf16.mxu1 %v14535_v48 }
 0x77a   : > { %10913 = vmatpush3.bf16.msra.mxu0 %v10912_v57  ;;  %v4000_v57 = vsub.f32 %v13030_v8, %v3999_v2  ;;  %v4027_v8 = vand.u32 4294901760, %v13057_v6  ;;  %v4021_v50 = vsub.f32 %v13055_v56, %v4020_v1  ;;  %v8526_v56 = vld [vmem:[%s14445_s11] ss:$0 sm:$0xff] }
 0x77b   : > { %10914 = vmatprep.subr.bf16.mxu0 %v14535_v48 }
 0x77c   : > { %10859 = vmatpush3.bf16.msra.mxu1 %v13048_v33  ;;  %v4001_v9 = vand.u32 4294901760, %v4000_v57  ;;  %v4028_v17 = vsub.f32 %v13057_v6, %v4027_v8  ;;  %v4022_v31 = vand.u32 4294901760, %v4021_v50  ;;  %v13142_v55 = vpack.c.bf16 %v4027_v8, %v4020_v1 }
 0x77d   : > { %10860 = vmatprep.subr.bf16.mxu1 %v14535_v48 }
 0x77e   : > { %10916 = vmatpush3.bf16.msra.mxu0 %v10915_v61  ;;  %v3994_v61 = vand.u32 4294901760, %v3993_v49  ;;  %v4029_v37 = vand.u32 4294901760, %v4028_v17 }
 0x77f   : > { %10917 = vmatprep.subr.bf16.mxu0 %v14535_v48 }
 0x780   : > { %10862 = vmatpush3.bf16.msra.mxu1 %v13063_v13  ;;  %v13116_v62 = vpack.c.bf16 %v4001_v9, %v3994_v61  ;;  %v13132_v60 = vpack.c.bf16 %v4029_v37, %v4022_v31 }
 0x781   : > { %10863 = vmatprep.subr.bf16.mxu1 %v14535_v48 }
 0x784   : > { %10865 = vmatpush3.bf16.msra.mxu1 %v13072_v24 }
 0x785   : > { %10866 = vmatprep.subr.bf16.mxu1 %v14535_v48 }
 0x788   : > { %10868 = vmatpush3.bf16.msra.mxu1 %v13083_v4 }
 0x789   : > { %10869 = vmatprep.subr.bf16.mxu1 %v14535_v48 }
 0x83e   : > { %v3774_v6 = vpop.f32.mrb[12].mxu1 }
 0x83f   : > { %v11423_v27 = vadd.f32 %v8526_v56, %v3774_v6  ;;  %v9662_v25 = vpop.f32.mrb[13].mxu1 }
 0x841   : > { %v3779_v18 = vmul.f32 0.70710677, %v11423_v27  ;;  %v3778_v8 = vmul.f32 0.5, %v11423_v27 }
 0x843   : > { %v3782_v23 = vand.u32 2147483647, %v3779_v18  ;;  %vm3780_vm5 = vcmp.ge.f32.partialorder %v3779_v18, 0.0 }
 0x844   : > { %v3781_v20 = vsel %vm3780_vm5, 1.0, %v14496_v58 }
 0x845   : > { %v3783_v7 = vmul.f32 0.3275911, %v3782_v23  ;;  %v3796_v22 = vsub.f32 0.0, %v3782_v23 }
 0x847   : > { %v3784_v45 = vadd.f32 1.0, %v3783_v7  ;;  %v3797_v3 = vmul.f32 %v3796_v22, %v3782_v23 }
 0x849   : > { %11684 = vrcp.f32 %v3784_v45  ;;  %v3798_v46 = vmul.f32 1.442695, %v3797_v3 }
 0x84b   : > { %11686 = vpow2.f32 %v3798_v46 }
 0x853   : > { %v11685_v52 = vpop.eup %11684 }
 0x854   : > { %v3787_v42 = vmul.f32 1.0614054, %v11685_v52 }
 0x855   : > { %v11687_v11 = vpop.eup %11686 }
 0x856   : > { %v3788_v41 = vadd.f32 -1.4531521, %v3787_v42 }
 0x858   : > { %v3789_v36 = vmul.f32 %v11685_v52, %v3788_v41 }
 0x85a   : > { %v3790_v2 = vadd.f32 1.4214138, %v3789_v36 }
 0x85c   : > { %v3791_v49 = vmul.f32 %v11685_v52, %v3790_v2 }
 0x85e   : > { %v3792_v57 = vadd.f32 -0.28449672, %v3791_v49 }
 0x860   : > { %v3793_v61 = vmul.f32 %v11685_v52, %v3792_v57 }
 0x862   : > { %v3794_v9 = vadd.f32 0.2548296, %v3793_v61  ;;  %v4526_v61 = vld [vmem:[%s14526_s26] sm:$0xff] }
 0x864   : > { %v3795_v59 = vmul.f32 %v11685_v52, %v3794_v9  ;;  %v4527_v9 = vld [vmem:[%s14526_s26 + $0x8] sm:$0xff] }
 0x866   : > { %v3800_v29 = vmul.f32 %v11687_v11, %v3795_v59  ;;  %v4534_v59 = vand.u32 4294901760, %v4526_v61  ;;  %v4537_v11 = vand.u32 4294901760, %v4527_v9 }
 0x868   : > { %v3801_v5 = vsub.f32 1.0, %v3800_v29  ;;  %v4529_v29 = vld [vmem:[%s14526_s26 + $0x18] sm:$0xff] }
 0x86a   : > { %v3802_v1 = vmul.f32 %v3801_v5, %v3781_v20  ;;  %v4543_v20 = vand.u32 4294901760, %v4529_v29 }
 0x86c   : > { %v3803_v50 = vadd.f32 1.0, %v3802_v1  ;;  %v13249_v1 = vpack.c.bf16 %v4537_v11, %v4534_v59 }
 0x86e   : > { %v3804_v17 = vmul.f32 %v3803_v50, %v3778_v8  ;;  %v4614_v8 = vsub.f32 %v4526_v61, %v4534_v59  ;;  %v4621_v50 = vsub.f32 %v4527_v9, %v4537_v11  ;;  %v5043_v59 = vld [vmem:[%s14438_s4 + $0x30] sm:$0xff]  ;;  %v5044_v11 = vld [vmem:[%s14438_s4 + $0x38] sm:$0xff] }
 0x870   : > { %v13148_v31 = vand.u32 4294901760, %v3804_v17 }
 0x872   : > { %v3910_v37 = vsub.f32 %v3804_v17, %v13148_v31 }
 0x874   : > { %9766 = vmatmul.mubr.f32.vlgmr.msra.gmra.mrb[8].mxu0 %v3910_v37  ;;  %v3911_v56 = vand.u32 4294901760, %v3910_v37 }
 0x875   : > { %10919 = vmatpush3.bf16.msra.mxu0 %v12975_v43  ;;  %9800 = vmatprep.mubr.msk.f32.mxu0 %vm11816_vm0, %v14534_v38 }
 0x876   : > { %10920 = vmatprep.subr.bf16.mxu0 %v14535_v48  ;;  %v3912_v6 = vsub.f32 %v3910_v37, %v3911_v56 }
 0x878   : > { %v3913_v25 = vand.u32 4294901760, %v3912_v6  ;;  %v4622_v6 = vand.u32 4294901760, %v4621_v50 }
 0x879   : > { %10922 = vmatpush3.bf16.msra.mxu0 %v12992_v30 }
 0x87a   : > { %9696 = vmatmul.mubr.f32.vlgmr.msra.gmra.mrb[14].mxu1 %v3913_v25  ;;  %10923 = vmatprep.subr.bf16.mxu0 %v14535_v48 }
 0x87b   : > { %10871 = vmatpush3.bf16.msra.mxu1 %v13085_v16  ;;  %9730 = vmatprep.mubr.msk.f32.mxu1 %vm11816_vm0, %v14534_v38 }
 0x87c   : > { %10872 = vmatprep.subr.bf16.mxu1 %v14535_v48 }
 0x87d   : > { %10925 = vmatpush3.bf16.msra.mxu0 %v13009_v54 }
 0x87e   : > { %10926 = vmatprep.subr.bf16.mxu0 %v14535_v48 }
 0x87f   : > { %10874 = vmatpush3.bf16.msra.mxu1 %v13090_v0 }
 0x880   : > { %10875 = vmatprep.subr.bf16.mxu1 %v14535_v48 }
 0x881   : > { %10928 = vmatpush3.bf16.msra.mxu0 %v13026_v51 }
 0x882   : > { %10929 = vmatprep.subr.bf16.mxu0 %v14535_v48 }
 0x883   : > { %10877 = vmatpush3.bf16.msra.mxu1 %v13098_v35 }
 0x884   : > { %10878 = vmatprep.subr.bf16.mxu1 %v14535_v48 }
 0x885   : > { %10931 = vmatpush3.bf16.msra.mxu0 %v13048_v33 }
 0x886   : > { %10932 = vmatprep.subr.bf16.mxu0 %v14535_v48 }
 0x887   : > { %10880 = vmatpush3.bf16.msra.mxu1 %v13104_v53 }
 0x888   : > { %10881 = vmatprep.subr.bf16.mxu1 %v14535_v48 }
 0x889   : > { %10934 = vmatpush3.bf16.msra.mxu0 %v13063_v13 }
 0x88a   : > { %10935 = vmatprep.subr.bf16.mxu0 %v14535_v48 }
 0x88b   : > { %10883 = vmatpush3.bf16.msra.mxu1 %v13110_v14 }
 0x88c   : > { %10884 = vmatprep.subr.bf16.mxu1 %v14535_v48 }
 0x88d   : > { %10937 = vmatpush3.bf16.msra.mxu0 %v13072_v24 }
 0x88e   : > { %10938 = vmatprep.subr.bf16.mxu0 %v14535_v48 }
 0x88f   : > { %10886 = vmatpush3.bf16.msra.mxu1 %v13116_v62 }
 0x890   : > { %10887 = vmatprep.subr.bf16.mxu1 %v14535_v48 }
 0x891   : > { %10940 = vmatpush3.bf16.msra.mxu0 %v13083_v4 }
 0x892   : > { %10941 = vmatprep.subr.bf16.mxu0 %v14535_v48 }
 0x893   : > { %10889 = vmatpush3.bf16.msra.mxu1 %v13124_v44 }
 0x894   : > { %9801 = vmatmul.mubr.f32.vlgmr.msra.gmra.mrb[8].mxu0 %v3911_v56  ;;  %10890 = vmatprep.subr.bf16.mxu1 %v14535_v48  ;;  %v4615_v56 = vand.u32 4294901760, %v4614_v8 }
 0x895   : > { %10943 = vmatpush3.bf16.msra.mxu0 %v13120_v10  ;;  %9835 = vmatprep.mubr.msk.f32.mxu0 %vm11816_vm0, %v14534_v38 }
 0x896   : > { %10944 = vmatprep.subr.bf16.mxu0 %v14535_v48  ;;  %v4616_v25 = vsub.f32 %v4614_v8, %v4615_v56 }
 0x897   : > { %10892 = vmatpush3.bf16.msra.mxu1 %v13132_v60 }
 0x898   : > { %10989 = vmatprep.subr.bf16.mxu1 %v14535_v48 }
 0x899   : > { %10946 = vmatpush3.bf16.msra.mxu0 %v13128_v28 }
 0x89a   : > { %9731 = vmatmul.mubr.f32.vlgmr.msra.gmra.mrb[14].mxu1 %v13148_v31  ;;  %10947 = vmatprep.subr.bf16.mxu0 %v14535_v48 }
 0x89b   : > { %9881 = vmatprep.mubr.msk.f32.mxu1 %vm11816_vm0, %v14534_v38  ;;  %10991 = vmatpush3.bf16.msra.mxu1 %v13249_v1 }
 0x89c   : > { %10992 = vmatprep.subr.bf16.mxu1 %v14535_v48 }
 0x89d   : > { %10949 = vmatpush3.bf16.msra.mxu0 %v13130_v21 }
 0x89e   : > { %10950 = vmatprep.subr.bf16.mxu0 %v14535_v48 }
 0x8a1   : > { %10952 = vmatpush3.bf16.msra.mxu0 %v13134_v34 }
 0x8a2   : > { %10953 = vmatprep.subr.bf16.mxu0 %v14535_v48 }
 0x8a5   : > { %10955 = vmatpush3.bf16.msra.mxu0 %v13136_v63 }
 0x8a6   : > { %10956 = vmatprep.subr.bf16.mxu0 %v14535_v48 }
 0x8a9   : > { %10958 = vmatpush3.bf16.msra.mxu0 %v13138_v39 }
 0x8aa   : > { %10959 = vmatprep.subr.bf16.mxu0 %v14535_v48 }
 0x8ad   : > { %10961 = vmatpush3.bf16.msra.mxu0 %v13140_v26 }
 0x8ae   : > { %10962 = vmatprep.subr.bf16.mxu0 %v14535_v48 }
 0x8b1   : > { %10964 = vmatpush3.bf16.msra.mxu0 %v13142_v55 }
 0x8b2   : > { %10965 = vmatprep.subr.bf16.mxu0 %v14535_v48 }
 0x8b4   : > { %9836 = vmatmul.mubr.f32.vlgmr.msra.gmra.mrb[8].mxu0 %v13148_v31 }
 0x8b5   : > { %10967 = vmatpush3.bf16.msra.mxu0 %v12975_v43  ;;  %9870 = vmatprep.mubr.msk.f32.mxu0 %vm11816_vm0, %v14534_v38 }
 0x8b6   : > { %10968 = vmatprep.subr.bf16.mxu0 %v14535_v48 }
 0x8b9   : > { %10970 = vmatpush3.bf16.msra.mxu0 %v12992_v30 }
 0x8ba   : > { %10971 = vmatprep.subr.bf16.mxu0 %v14535_v48 }
 0x8bd   : > { %10973 = vmatpush3.bf16.msra.mxu0 %v13009_v54  ;;  %v8527_v54 = vld [vmem:[%s14447_s13] ss:$0 sm:$0xff] }
 0x8be   : > { %10974 = vmatprep.subr.bf16.mxu0 %v14535_v48 }
 0x8c1   : > { %10976 = vmatpush3.bf16.msra.mxu0 %v13026_v51 }
 0x8c2   : > { %10977 = vmatprep.subr.bf16.mxu0 %v14535_v48 }
 0x8c5   : > { %10979 = vmatpush3.bf16.msra.mxu0 %v13048_v33 }
 0x8c6   : > { %10980 = vmatprep.subr.bf16.mxu0 %v14535_v48 }
 0x8c9   : > { %10982 = vmatpush3.bf16.msra.mxu0 %v13063_v13 }
 0x8ca   : > { %10983 = vmatprep.subr.bf16.mxu0 %v14535_v48 }
 0x8cd   : > { %10985 = vmatpush3.bf16.msra.mxu0 %v13072_v24 }
 0x8ce   : > { %10986 = vmatprep.subr.bf16.mxu0 %v14535_v48 }
 0x8d1   : > { %10988 = vmatpush3.bf16.msra.mxu0 %v13083_v4 }
 0x8d2   : > { %11169 = vmatprep.subr.bf16.mxu0 %v14535_v48 }
 0x8d4   : > { %9871 = vmatmul.mubr.f32.vlgmr.msra.gmra.mrb[8].mxu0 %v13148_v31  ;;  %v4635_v31 = vsub.f32 %v4529_v29, %v4543_v20 }
 0x8d5   : > { %10183 = vmatprep.mubr.msk.f32.mxu0 %vm11816_vm0, %v14534_v38 }
 0x96d   : > { %v4066_v43 = vpop.f32.mrb[14].mxu1 }
 0x96e   : > { %v9732_v30 = vpop.f32.mrb[15].mxu1  ;;  %v11424_v51 = vadd.f32 %v8527_v54, %v4066_v43  ;;  %v4623_v43 = vsub.f32 %v4621_v50, %v4622_v6  ;;  %v4636_v54 = vand.u32 4294901760, %v4635_v31 }
 0x9a7   : > { %v4465_v33 = vpop.f32.mrb[8].mxu0 }
 0x9a8   : > { %v11425_v13 = vadd.f32 %v11424_v51, %v4465_v33  ;;  %v9872_v24 = vpop.f32.mrb[9].mxu0  ;;  %v4617_v51 = vand.u32 4294901760, %v4616_v25  ;;  %v4624_v33 = vand.u32 4294901760, %v4623_v43 }
 0x9a9   : > { %v4637_v24 = vsub.f32 %v4635_v31, %v4636_v54 }
 0x9aa   : > { %v4470_v16 = vmul.f32 0.70710677, %v11425_v13  ;;  %v4469_v22 = vmul.f32 0.5, %v11425_v13 }
 0x9ac   : > { %v4473_v0 = vand.u32 2147483647, %v4470_v16  ;;  %vm4471_vm6 = vcmp.ge.f32.partialorder %v4470_v16, 0.0  ;;  %v10996_v16 = vpack.c.bf16 %v4624_v33, %v4617_v51 }
 0x9ad   : > { %v4472_v7 = vsel %vm4471_vm6, 1.0, %v14496_v58 }
 0x9ae   : > { %v4474_v4 = vmul.f32 0.3275911, %v4473_v0  ;;  %v4487_v53 = vsub.f32 0.0, %v4473_v0 }
 0x9b0   : > { %v4475_v35 = vadd.f32 1.0, %v4474_v4  ;;  %v4488_v62 = vmul.f32 %v4487_v53, %v4473_v0  ;;  %v4638_v4 = vand.u32 4294901760, %v4637_v24  ;;  %v11002_v53 = vpack.c.bf16 %v4621_v50, %v4614_v8 }
 0x9b2   : > { %11688 = vrcp.f32 %v4475_v35  ;;  %v4489_v28 = vmul.f32 1.442695, %v4488_v62  ;;  %v11014_v62 = vpack.c.bf16 %v4622_v6, %v4615_v56  ;;  %v5077_v56 = vand.u32 4294901760, %v5044_v11 }
 0x9b4   : > { %11690 = vpow2.f32 %v4489_v28  ;;  %v13337_v25 = vsub.f32 %v5044_v11, %v5077_v56 }
 0x9bc   : > { %v11689_v14 = vpop.eup %11688 }
 0x9bd   : > { %v4478_v10 = vmul.f32 1.0614054, %v11689_v14 }
 0x9be   : > { %v11691_v27 = vpop.eup %11690 }
 0x9bf   : > { %v4479_v44 = vadd.f32 -1.4531521, %v4478_v10 }
 0x9c1   : > { %v4480_v21 = vmul.f32 %v11689_v14, %v4479_v44 }
 0x9c3   : > { %v4481_v60 = vadd.f32 1.4214138, %v4480_v21 }
 0x9c5   : > { %v4482_v34 = vmul.f32 %v11689_v14, %v4481_v60 }
 0x9c7   : > { %v4483_v63 = vadd.f32 -0.28449672, %v4482_v34  ;;  %v8528_v34 = vld [vmem:[%s14450_s16] ss:$0 sm:$0xff] }
 0x9c9   : > { %v4484_v39 = vmul.f32 %v11689_v14, %v4483_v63 }
 0x9cb   : > { %v4485_v26 = vadd.f32 0.2548296, %v4484_v39  ;;  %v8529_v39 = vld [vmem:[%s14451_s17] ss:$0 sm:$0xff] }
 0x9cd   : > { %v4486_v55 = vmul.f32 %v11689_v14, %v4485_v26 }
 0x9cf   : > { %v4491_v18 = vmul.f32 %v11691_v27, %v4486_v55 }
 0x9d1   : > { %v4492_v23 = vsub.f32 1.0, %v4491_v18 }
 0x9d3   : > { %v4493_v45 = vmul.f32 %v4492_v23, %v4472_v7 }
 0x9d5   : > { %v4494_v52 = vadd.f32 1.0, %v4493_v45 }
 0x9d7   : > { %v4495_v3 = vmul.f32 %v4494_v52, %v4469_v22  ;;  %v5037_v52 = vld [vmem:[%s14438_s4] sm:$0xff] }
 0x9d9   : > { %v4496_v42 = vadd.f32 %v4495_v3, %v12914_v47  ;;  %v4528_v47 = vld [vmem:[%s14526_s26 + $0x10] sm:$0xff]  ;;  %v5038_v3 = vld [vmem:[%s14438_s4 + $0x8] sm:$0xff] }
 0x9da   : > { %v4540_v5 = vand.u32 4294901760, %v4528_v47 }
 0x9db   : > { %v4499_v41 = vsel %vm583_vm2, %v4496_v42, 0.0 }
 0x9dc   : > { %4500 = vadd.xlane.f32.xlu0 %v4499_v41  ;;  %v4628_v17 = vsub.f32 %v4528_v47, %v4540_v5  ;;  %v13252_v37 = vpack.c.bf16 %v4543_v20, %v4540_v5  ;;  %v5056_v41 = vand.u32 4294901760, %v5037_v52 }
 0x9de   : > { %10994 = vmatpush3.bf16.msra.mxu1 %v13252_v37  ;;  %v4629_v30 = vand.u32 4294901760, %v4628_v17  ;;  %v11005_v14 = vpack.c.bf16 %v4635_v31, %v4628_v17  ;;  %v13319_v5 = vsub.f32 %v5037_v52, %v5056_v41 }
 0x9df   : > { %10995 = vmatprep.subr.bf16.mxu1 %v14535_v48 }
 0x9e0   : > { %v4630_v13 = vsub.f32 %v4628_v17, %v4629_v30  ;;  %v11017_v10 = vpack.c.bf16 %v4636_v54, %v4629_v30  ;;  %v5141_v54 = vand.u32 4294901760, %v13319_v5 }
 0x9e2   : > { %v4631_v0 = vand.u32 4294901760, %v4630_v13  ;;  %v5142_v33 = vsub.f32 %v13319_v5, %v5141_v54 }
 0x9e4   : > { %v10999_v35 = vpack.c.bf16 %v4638_v4, %v4631_v0  ;;  %v5143_v0 = vand.u32 4294901760, %v5142_v33 }
 0xa69   : > { %v4501_v46 = vpop.xlane.xlu0 %4500 }
 0xa6a   : > { %v4502_v36 = vmul.f32 0.03125, %v4501_v46  ;;  %v5059_v46 = vand.u32 4294901760, %v5038_v3 }
 0xa6c   : > { %v4503_v2 = vsub.f32 %v4496_v42, %v4502_v36  ;;  %v5039_v42 = vld [vmem:[%s14438_s4 + $0x10] sm:$0xff]  ;;  %v5040_v36 = vld [vmem:[%s14438_s4 + $0x18] sm:$0xff]  ;;  %v13317_v29 = vpack.c.bf16 %v5059_v46, %v5056_v41  ;;  %v13321_v20 = vsub.f32 %v5038_v3, %v5059_v46 }
 0xa6d   : > { %v5065_v61 = vand.u32 4294901760, %v5040_v36 }
 0xa6e   : > { %v4504_v49 = vmul.f32 %v4503_v2, %v4503_v2  ;;  %v5148_v51 = vand.u32 4294901760, %v13321_v20  ;;  %v11050_v3 = vpack.c.bf16 %v13321_v20, %v13319_v5 }
 0xa6f   : > { %v13325_v8 = vsub.f32 %v5040_v36, %v5065_v61 }
 0xa70   : > { %v4505_v57 = vsel %vm583_vm2, %v4504_v49, 0.0  ;;  %v5041_v49 = vld [vmem:[%s14438_s4 + $0x20] sm:$0xff]  ;;  %v5149_v13 = vsub.f32 %v13321_v20, %v5148_v51  ;;  %v11074_v36 = vpack.c.bf16 %v5148_v51, %v5141_v54 }
 0xa71   : > { %4506 = vadd.xlane.f32.xlu0 %v4505_v57  ;;  %v5042_v57 = vld [vmem:[%s14438_s4 + $0x28] sm:$0xff]  ;;  %v5068_v9 = vand.u32 4294901760, %v5041_v49 }
 0xa72   : > { %v5071_v47 = vand.u32 4294901760, %v5042_v57  ;;  %v5150_v4 = vand.u32 4294901760, %v5149_v13 }
 0xa73   : > { %v13327_v50 = vsub.f32 %v5041_v49, %v5068_v9 }
 0xa74   : > { %v13332_v31 = vsub.f32 %v5042_v57, %v5071_v47  ;;  %v13340_v43 = vpack.c.bf16 %v5071_v47, %v5068_v9 }
 0xa76   : > { %v11056_v41 = vpack.c.bf16 %v13332_v31, %v13327_v50 }
 0xafe   : > { %v4507_v44 = vpop.xlane.xlu0 %4506 }
 0xaff   : > { %v4508_v28 = vmul.f32 0.03125, %v4507_v44  ;;  %v5169_v44 = vand.u32 4294901760, %v13327_v50 }
 0xb01   : > { %v4509_v21 = vadd.f32 1e-05, %v4508_v28  ;;  %v5176_v28 = vand.u32 4294901760, %v13332_v31 }
 0xb03   : > { %11692 = vrsqrt.f32 %v4509_v21  ;;  %v13375_v49 = vpack.c.bf16 %v5176_v28, %v5169_v44 }
 0xb0d   : > { %v11693_v60 = vpop.eup %11692 }
 0xb0e   : > { %v4511_v63 = vmul.f32 %v11693_v60, %v4503_v2  ;;  %v5062_v2 = vand.u32 4294901760, %v5039_v42  ;;  %v5170_v60 = vsub.f32 %v13327_v50, %v5169_v44 }
 0xb10   : > { %v4518_v26 = vmul.f32 %v8528_v34, %v4511_v63  ;;  %v13330_v17 = vpack.c.bf16 %v5065_v61, %v5062_v2  ;;  %v5177_v34 = vsub.f32 %v13332_v31, %v5176_v28  ;;  %v5171_v63 = vand.u32 4294901760, %v5170_v60  ;;  %v5606_v60 = vld [vmem:[%s14440_s6 + $0x28] sm:$0xff] }
 0xb12   : > { %v13263_v55 = vadd.f32 %v8529_v39, %v4518_v26  ;;  %v5190_v26 = vand.u32 4294901760, %v13337_v25 }
 0xb14   : > { %v4531_v27 = vsel %vm583_vm2, %v13263_v55, 0 }
 0xb15   : > { %v4602_v18 = vand.u32 4294901760, %v4531_v27 }
 0xb17   : > { %v4603_v23 = vsub.f32 %v4531_v27, %v4602_v18  ;;  %v5178_v27 = vand.u32 4294901760, %v5177_v34 }
 0xb19   : > { %v4604_v7 = vand.u32 4294901760, %v4603_v23 }
 0xb1b   : > { %v4605_v45 = vsub.f32 %v4603_v23, %v4604_v7 }
 0xb1d   : > { %v4606_v22 = vand.u32 4294901760, %v4605_v45 }
 0xb1f   : > { %9882 = vmatmul.mubr.f32.vlgmr.msra.gmra.mrb[16].mxu1 %v4606_v22 }
 0xb20   : > { %10997 = vmatpush3.bf16.msra.mxu1 %v10996_v16  ;;  %9892 = vmatprep.mubr.msk.f32.mxu1 %vm11816_vm0, %v14534_v38  ;;  %v5162_v16 = vand.u32 4294901760, %v13325_v8 }
 0xb21   : > { %10998 = vmatprep.subr.bf16.mxu1 %v14535_v48 }
 0xb24   : > { %11000 = vmatpush3.bf16.msra.mxu1 %v10999_v35 }
 0xb25   : > { %11001 = vmatprep.subr.bf16.mxu1 %v14535_v48 }
 0xb27   : > { %9893 = vmatmul.mubr.f32.vlgmr.msra.gmra.mrb[16].mxu1 %v4602_v18 }
 0xb28   : > { %11003 = vmatpush3.bf16.msra.mxu1 %v11002_v53  ;;  %9903 = vmatprep.mubr.msk.f32.mxu1 %vm11816_vm0, %v14534_v38  ;;  %v5163_v53 = vsub.f32 %v13325_v8, %v5162_v16 }
 0xb29   : > { %11004 = vmatprep.subr.bf16.mxu1 %v14535_v48 }
 0xb2c   : > { %11006 = vmatpush3.bf16.msra.mxu1 %v11005_v14  ;;  %v11038_v14 = vpack.c.bf16 %v5150_v4, %v5143_v0  ;;  %v5601_v4 = vld [vmem:[%s14440_s6] sm:$0xff] }
 0xb2d   : > { %11007 = vmatprep.subr.bf16.mxu1 %v14535_v48 }
 0xb2f   : > { %9904 = vmatmul.mubr.f32.vlgmr.msra.gmra.mrb[16].mxu1 %v4603_v23  ;;  %v5191_v23 = vsub.f32 %v13337_v25, %v5190_v26 }
 0xb30   : > { %11009 = vmatpush3.bf16.msra.mxu1 %v13249_v1  ;;  %9914 = vmatprep.mubr.msk.f32.mxu1 %vm11816_vm0, %v14534_v38 }
 0xb31   : > { %11010 = vmatprep.subr.bf16.mxu1 %v14535_v48  ;;  %v5192_v22 = vand.u32 4294901760, %v5191_v23 }
 0xb34   : > { %11012 = vmatpush3.bf16.msra.mxu1 %v13252_v37 }
 0xb35   : > { %11013 = vmatprep.subr.bf16.mxu1 %v14535_v48 }
 0xb37   : > { %9915 = vmatmul.mubr.f32.vlgmr.msra.gmra.mrb[16].mxu1 %v4604_v7  ;;  %v11044_v7 = vpack.c.bf16 %v5178_v27, %v5171_v63 }
 0xb38   : > { %11015 = vmatpush3.bf16.msra.mxu1 %v11014_v62  ;;  %9925 = vmatprep.mubr.msk.f32.mxu1 %vm11816_vm0, %v14534_v38 }
 0xb39   : > { %11016 = vmatprep.subr.bf16.mxu1 %v14535_v48 }
 0xb3c   : > { %11018 = vmatpush3.bf16.msra.mxu1 %v11017_v10  ;;  %v5164_v10 = vand.u32 4294901760, %v5163_v53 }
 0xb3d   : > { %11019 = vmatprep.subr.bf16.mxu1 %v14535_v48 }
 0xb3f   : > { %9926 = vmatmul.mubr.f32.vlgmr.msra.gmra.mrb[16].mxu1 %v4602_v18 }
 0xb40   : > { %11021 = vmatpush3.bf16.msra.mxu1 %v13249_v1  ;;  %9936 = vmatprep.mubr.msk.f32.mxu1 %vm11816_vm0, %v14534_v38  ;;  %v13323_v1 = vsub.f32 %v5039_v42, %v5062_v2 }
 0xb41   : > { %11022 = vmatprep.subr.bf16.mxu1 %v14535_v48 }
 0xb42   : > { %v5155_v24 = vand.u32 4294901760, %v13323_v1  ;;  %v11053_v42 = vpack.c.bf16 %v13325_v8, %v13323_v1 }
 0xb44   : > { %11024 = vmatpush3.bf16.msra.mxu1 %v13252_v37  ;;  %v5074_v37 = vand.u32 4294901760, %v5043_v59  ;;  %v5156_v35 = vsub.f32 %v13323_v1, %v5155_v24  ;;  %v13373_v2 = vpack.c.bf16 %v5162_v16, %v5155_v24 }
 0xb45   : > { %11025 = vmatprep.subr.bf16.mxu1 %v14535_v48 }
 0xb46   : > { %v13335_v6 = vsub.f32 %v5043_v59, %v5074_v37  ;;  %v13344_v30 = vpack.c.bf16 %v5077_v56, %v5074_v37  ;;  %v5157_v62 = vand.u32 4294901760, %v5156_v35  ;;  %v5602_v35 = vld [vmem:[%s14440_s6 + $0x8] sm:$0xff] }
 0xb47   : > { %9937 = vmatmul.mubr.f32.vlgmr.msra.gmra.mrb[16].mxu1 %v4602_v18  ;;  %v5613_v53 = vand.u32 4294901760, %v5602_v35 }
 0xb48   : > { %9955 = vmatprep.mubr.msk.f32.mxu1 %vm11816_vm0, %v14534_v38  ;;  %11027 = vmatpush3.bf16.msra.mxu1 %v13317_v29  ;;  %v11041_v21 = vpack.c.bf16 %v5164_v10, %v5157_v62  ;;  %v5183_v39 = vand.u32 4294901760, %v13335_v6  ;;  %v11059_v46 = vpack.c.bf16 %v13337_v25, %v13335_v6 }
 0xb49   : > { %11028 = vmatprep.subr.bf16.mxu1 %v14535_v48  ;;  %v13464_v10 = vsub.f32 %v5602_v35, %v5613_v53 }
 0xb4a   : > { %v5184_v18 = vsub.f32 %v13335_v6, %v5183_v39  ;;  %v13377_v57 = vpack.c.bf16 %v5190_v26, %v5183_v39  ;;  %v11747_v6 = vld [vmem:[%s14532_s3] ss:$0 sm:$0xff]  ;;  %v5608_v39 = vld [vmem:[%s14440_s6 + $0x38] sm:$0xff]  ;;  %s14391_s3 = scalar_lea.hbm %s14452_s18, %s8538_s30 }
 0xb4b   : > { %v5702_v27 = vand.u32 4294901760, %v13464_v10 }
 0xb4c   : > { %11030 = vmatpush3.bf16.msra.mxu1 %v13330_v17  ;;  %v5185_v45 = vand.u32 4294901760, %v5184_v18 }
 0xb4d   : > { %11031 = vmatprep.subr.bf16.mxu1 %v14535_v48 }
 0xb4e   : > { %v11047_v52 = vpack.c.bf16 %v5192_v22, %v5185_v45  ;;  %v5631_v22 = vand.u32 4294901760, %v5608_v39 }
 0xb50   : > { %11033 = vmatpush3.bf16.msra.mxu1 %v13340_v43 }
 0xb51   : > { %11034 = vmatprep.subr.bf16.mxu1 %v14535_v48 }
 0xb54   : > { %11036 = vmatpush3.bf16.msra.mxu1 %v13344_v30 }
 0xb55   : > { %11037 = vmatprep.subr.bf16.mxu1 %v14535_v48 }
 0xc1a   : > { %v13379_v61 = vpop.f32.mrb[16].mxu1 }
 0xc1b   : > { %5018 = vst.msk [vmem:[#allocation2 + $0x3] sm:$0xff] %vm1072_vm3, %v13379_v61  ;;  %v9938_v9 = vpop.f32.mrb[17].mxu1 }
 0xc22   : > { %v5019_v47 = vld [vmem:[#allocation2] sm:$0xff] }
 0xc23   : > { %v5022_v59 = vld [vmem:[#allocation2 + $0x1] sm:$0xff]  ;;  %v5020_v5 = vmul.f32 %v5019_v47, %v12325_v32 }
 0xc24   : > { %v5025_v11 = vld [vmem:[#allocation2 + $0x2] sm:$0xff]  ;;  %v5023_v20 = vmul.f32 %v5022_v59, %v12328_v40 }
 0xc25   : > { %v5028_v1 = vld [vmem:[#allocation2 + $0x3] sm:$0xff]  ;;  %v5026_v50 = vmul.f32 %v5025_v11, %v12334_v15 }
 0xc26   : > { %v5024_v8 = vadd.f32 %v5023_v20, %v5020_v5  ;;  %v5029_v37 = vmul.f32 %v5028_v1, %v12339_v19  ;;  %v13522_v5 = vsub.f32 %v5608_v39, %v5631_v22  ;;  %v14554_v39 = vmov 4  }
 0xc28   : > { %v5027_v31 = vadd.f32 %v5026_v50, %v5024_v8 }
 0xc2a   : > { %v5030_v56 = vadd.f32 %v5029_v37, %v5027_v31 }
 0xc2c   : > { %v5031_v25 = vadd.f32 %v11747_v6, %v5030_v56 }
 0xc2e   : > { %v5032_v54 = vmul.f32 0.5, %v5031_v25 }
 0xc30   : > { %11694 = vtanh.f32 %v5032_v54 }
 0xc3a   : > { %v11695_v51 = vpop.eup %11694 }
 0xc3b   : > { %v5034_v33 = vadd.f32 1.0, %v11695_v51 }
 0xc3d   : > { %v5035_v32 = vmul.f32 0.5, %v5034_v33 }
 0xc3f   : > { %v13390_v13 = vmul.f32 %v5035_v32, %v5031_v25  ;;  %v5744_v25 = vand.u32 4294901760, %v13522_v5 }
 0xc41   : > { %v5053_v40 = vsel %vm1072_vm3, %v13390_v13, 0 }
 0xc42   : > { %v13394_v15 = vand.u32 4294901760, %v5053_v40 }
 0xc44   : > { %v13397_v19 = vsub.f32 %v5053_v40, %v13394_v15  ;;  %v5745_v40 = vsub.f32 %v13522_v5, %v5744_v25 }
 0xc46   : > { %v13400_v24 = vand.u32 4294901760, %v13397_v19  ;;  %v5746_v35 = vand.u32 4294901760, %v5745_v40 }
 0xc48   : > { %v5131_v16 = vsub.f32 %v13397_v19, %v13400_v24 }
 0xc4a   : > { %v13404_v0 = vand.u32 4294901760, %v5131_v16 }
 0xc4c   : > { %9956 = vmatmul.mubr.f32.vlgmr.msra.gmra.mrb[18].mxu1 %v13404_v0 }
 0xc4d   : > { %11039 = vmatpush3.bf16.msra.mxu1 %v11038_v14  ;;  %9974 = vmatprep.mubr.msk.f32.mxu1 %vm11816_vm0, %v14534_v38  ;;  %v5604_v14 = vld [vmem:[%s14440_s6 + $0x18] sm:$0xff] }
 0xc4e   : > { %11040 = vmatprep.subr.bf16.mxu1 %v14535_v48  ;;  %v5619_v28 = vand.u32 4294901760, %v5604_v14 }
 0xc50   : > { %v13479_v63 = vsub.f32 %v5604_v14, %v5619_v28 }
 0xc51   : > { %11042 = vmatpush3.bf16.msra.mxu1 %v11041_v21  ;;  %v5605_v21 = vld [vmem:[%s14440_s6 + $0x20] sm:$0xff] }
 0xc52   : > { %11043 = vmatprep.subr.bf16.mxu1 %v14535_v48  ;;  %v5622_v23 = vand.u32 4294901760, %v5605_v21 }
 0xc55   : > { %11045 = vmatpush3.bf16.msra.mxu1 %v11044_v7  ;;  %v5625_v7 = vand.u32 4294901760, %v5606_v60 }
 0xc56   : > { %11046 = vmatprep.subr.bf16.mxu1 %v14535_v48 }
 0xc59   : > { %11048 = vmatpush3.bf16.msra.mxu1 %v11047_v52 }
 0xc5a   : > { %11049 = vmatprep.subr.bf16.mxu1 %v14535_v48 }
 0xc5c   : > { %9975 = vmatmul.mubr.f32.vlgmr.msra.gmra.mrb[18].mxu1 %v13394_v15 }
 0xc5d   : > { %11051 = vmatpush3.bf16.msra.mxu1 %v11050_v3  ;;  %9993 = vmatprep.mubr.msk.f32.mxu1 %vm11816_vm0, %v14534_v38  ;;  %v5703_v3 = vsub.f32 %v13464_v10, %v5702_v27 }
 0xc5e   : > { %11052 = vmatprep.subr.bf16.mxu1 %v14535_v48 }
 0xc5f   : > { %v5704_v9 = vand.u32 4294901760, %v5703_v3 }
 0xc61   : > { %11054 = vmatpush3.bf16.msra.mxu1 %v11053_v42 }
 0xc62   : > { %11055 = vmatprep.subr.bf16.mxu1 %v14535_v48 }
 0xc65   : > { %11057 = vmatpush3.bf16.msra.mxu1 %v11056_v41  ;;  %v5716_v41 = vand.u32 4294901760, %v13479_v63 }
 0xc66   : > { %11058 = vmatprep.subr.bf16.mxu1 %v14535_v48 }
 0xc67   : > { %v5717_v59 = vsub.f32 %v13479_v63, %v5716_v41 }
 0xc69   : > { %11060 = vmatpush3.bf16.msra.mxu1 %v11059_v46  ;;  %v13504_v46 = vpack.c.bf16 %v5625_v7, %v5622_v23  ;;  %v5718_v31 = vand.u32 4294901760, %v5717_v59 }
 0xc6a   : > { %11061 = vmatprep.subr.bf16.mxu1 %v14535_v48 }
 0xc6c   : > { %9994 = vmatmul.mubr.f32.vlgmr.msra.gmra.mrb[18].mxu1 %v13397_v19 }
 0xc6d   : > { %11063 = vmatpush3.bf16.msra.mxu1 %v13317_v29  ;;  %10012 = vmatprep.mubr.msk.f32.mxu1 %vm11816_vm0, %v14534_v38 }
 0xc6e   : > { %11064 = vmatprep.subr.bf16.mxu1 %v14535_v48 }
 0xc71   : > { %11066 = vmatpush3.bf16.msra.mxu1 %v13330_v17 }
 0xc72   : > { %11067 = vmatprep.subr.bf16.mxu1 %v14535_v48 }
 0xc75   : > { %11069 = vmatpush3.bf16.msra.mxu1 %v13340_v43 }
 0xc76   : > { %11070 = vmatprep.subr.bf16.mxu1 %v14535_v48 }
 0xc79   : > { %11072 = vmatpush3.bf16.msra.mxu1 %v13344_v30 }
 0xc7a   : > { %11073 = vmatprep.subr.bf16.mxu1 %v14535_v48 }
 0xc7c   : > { %10013 = vmatmul.mubr.f32.vlgmr.msra.gmra.mrb[18].mxu1 %v13400_v24 }
 0xc7d   : > { %11075 = vmatpush3.bf16.msra.mxu1 %v11074_v36  ;;  %10031 = vmatprep.mubr.msk.f32.mxu1 %vm11816_vm0, %v14534_v38  ;;  %v13506_v36 = vsub.f32 %v5605_v21, %v5622_v23  ;;  %v14557_v23 = vmov 7  }
 0xc7e   : > { %11076 = vmatprep.subr.bf16.mxu1 %v14535_v48 }
 0xc7f   : > { %v5723_v20 = vand.u32 4294901760, %v13506_v36 }
 0xc81   : > { %11078 = vmatpush3.bf16.msra.mxu1 %v13373_v2  ;;  %v13508_v2 = vsub.f32 %v5606_v60, %v5625_v7  ;;  %v5724_v37 = vsub.f32 %v13506_v36, %v5723_v20  ;;  %v14550_v60 = vmov 0   ;;  %v8530_v7 = vld [vmem:[%s14439_s5] ss:$0 sm:$0xff] }
 0xc82   : > { %11079 = vmatprep.subr.bf16.mxu1 %v14535_v48 }
 0xc83   : > { %v5730_v1 = vand.u32 4294901760, %v13508_v2  ;;  %v5725_v51 = vand.u32 4294901760, %v5724_v37 }
 0xc85   : > { %11081 = vmatpush3.bf16.msra.mxu1 %v13375_v49  ;;  %v5731_v56 = vsub.f32 %v13508_v2, %v5730_v1 }
 0xc86   : > { %11082 = vmatprep.subr.bf16.mxu1 %v14535_v48 }
 0xc87   : > { %v5732_v33 = vand.u32 4294901760, %v5731_v56  ;;  %v14560_v56 = vld [vmem:[#allocation15_spill] sm:$0xff] }
 0xc89   : > { %11084 = vmatpush3.bf16.msra.mxu1 %v13377_v57  ;;  %v11116_v16 = vpack.c.bf16 %v5732_v33, %v5725_v51  ;;  %v14561_v51 = vld [vmem:[#allocation16_spill] sm:$0xff] }
 0xc8a   : > { %11085 = vmatprep.subr.bf16.mxu1 %v14535_v48 }
 0xc8c   : > { %10032 = vmatmul.mubr.f32.vlgmr.msra.gmra.mrb[18].mxu1 %v13394_v15 }
 0xc8d   : > { %11087 = vmatpush3.bf16.msra.mxu1 %v13317_v29  ;;  %10050 = vmatprep.mubr.msk.f32.mxu1 %vm11816_vm0, %v14534_v38  ;;  %v5610_v29 = vand.u32 4294901760, %v5601_v4 }
 0xc8e   : > { %11088 = vmatprep.subr.bf16.mxu1 %v14535_v48 }
 0xc8f   : > { %v13462_v62 = vsub.f32 %v5601_v4, %v5610_v29  ;;  %v13467_v44 = vpack.c.bf16 %v5613_v53, %v5610_v29 }
 0xc91   : > { %11090 = vmatpush3.bf16.msra.mxu1 %v13330_v17  ;;  %v5603_v17 = vld [vmem:[%s14440_s6 + $0x10] sm:$0xff]  ;;  %v5695_v26 = vand.u32 4294901760, %v13462_v62  ;;  %v11122_v29 = vpack.c.bf16 %v13464_v10, %v13462_v62 }
 0xc92   : > { %11091 = vmatprep.subr.bf16.mxu1 %v14535_v48 }
 0xc93   : > { %v5696_v52 = vsub.f32 %v13462_v62, %v5695_v26  ;;  %v11152_v62 = vpack.c.bf16 %v5730_v1, %v5723_v20 }
 0xc95   : > { %11093 = vmatpush3.bf16.msra.mxu1 %v13340_v43  ;;  %v5616_v43 = vand.u32 4294901760, %v5603_v17  ;;  %v5697_v57 = vand.u32 4294901760, %v5696_v52 }
 0xc96   : > { %11094 = vmatprep.subr.bf16.mxu1 %v14535_v48 }
 0xc97   : > { %v13477_v34 = vsub.f32 %v5603_v17, %v5616_v43  ;;  %v13490_v18 = vpack.c.bf16 %v5619_v28, %v5616_v43  ;;  %v11110_v8 = vpack.c.bf16 %v5704_v9, %v5697_v57  ;;  %v11128_v17 = vpack.c.bf16 %v13508_v2, %v13506_v36 }
 0xc99   : > { %11096 = vmatpush3.bf16.msra.mxu1 %v13344_v30  ;;  %v5607_v30 = vld [vmem:[%s14440_s6 + $0x30] sm:$0xff]  ;;  %v5709_v42 = vand.u32 4294901760, %v13477_v34  ;;  %v11125_v53 = vpack.c.bf16 %v13479_v63, %v13477_v34  ;;  %v14551_v63 = vmov 3  }
 0xc9a   : > { %11097 = vmatprep.subr.bf16.mxu1 %v14535_v48  ;;  %v5628_v45 = vand.u32 4294901760, %v5607_v30 }
 0xc9b   : > { %v5710_v47 = vsub.f32 %v13477_v34, %v5709_v42  ;;  %v11149_v43 = vpack.c.bf16 %v5716_v41, %v5709_v42 }
 0xc9c   : > { %10051 = vmatmul.mubr.f32.vlgmr.msra.gmra.mrb[18].mxu1 %v13394_v15  ;;  %v13511_v49 = vpack.c.bf16 %v5631_v22, %v5628_v45  ;;  %v13520_v11 = vsub.f32 %v5607_v30, %v5628_v45  ;;  %v14552_v30 = vmov 2  }
 0xc9d   : > { %11099 = vmatpush3.bf16.msra.mxu1 %v13467_v44  ;;  %10069 = vmatprep.mubr.msk.f32.mxu1 %vm11816_vm0, %v14534_v38  ;;  %v5711_v50 = vand.u32 4294901760, %v5710_v47  ;;  %v11748_v47 = vld [vmem:[%s14441_s7] sm:$0xff] }
 0xc9e   : > { %11100 = vmatprep.subr.bf16.mxu1 %v14535_v48  ;;  %v5737_v6 = vand.u32 4294901760, %v13520_v11  ;;  %v11131_v14 = vpack.c.bf16 %v13522_v5, %v13520_v11 }
 0xc9f   : > { %v11113_v54 = vpack.c.bf16 %v5718_v31, %v5711_v50 }
 0xca0   : > { %v5738_v32 = vsub.f32 %v13520_v11, %v5737_v6  ;;  %v11155_v10 = vpack.c.bf16 %v5744_v25, %v5737_v6  ;;  %v14558_v11 = vld [vmem:[#allocation13_spill] sm:$0xff] }
 0xca1   : > { %11102 = vmatpush3.bf16.msra.mxu1 %v13490_v18 }
 0xca2   : > { %11103 = vmatprep.subr.bf16.mxu1 %v14535_v48  ;;  %v5739_v4 = vand.u32 4294901760, %v5738_v32 }
 0xca5   : > { %11105 = vmatpush3.bf16.msra.mxu1 %v13504_v46 }
 0xca6   : > { %11106 = vmatprep.subr.bf16.mxu1 %v14535_v48 }
 0xca9   : > { %11108 = vmatpush3.bf16.msra.mxu1 %v13511_v49 }
 0xcaa   : > { %11109 = vmatprep.subr.bf16.mxu1 %v14535_v48 }
 0xcac   : > { %10070 = vmatmul.mubr.f32.vlgmr.msra.gmra.mrb[20].mxu1 %v13404_v0  ;;  %v11119_v0 = vpack.c.bf16 %v5746_v35, %v5739_v4  ;;  %v14562_v35 = vld [vmem:[#allocation17_spill] sm:$0xff] }
 0xcad   : > { %11111 = vmatpush3.bf16.msra.mxu1 %v11110_v8  ;;  %10088 = vmatprep.mubr.msk.f32.mxu1 %vm11816_vm0, %v14534_v38  ;;  %v14559_v8 = vld [vmem:[#allocation14_spill] sm:$0xff] }
 0xcae   : > { %11112 = vmatprep.subr.bf16.mxu1 %v14535_v48 }
 0xcb1   : > { %11114 = vmatpush3.bf16.msra.mxu1 %v11113_v54 }
 0xcb2   : > { %11115 = vmatprep.subr.bf16.mxu1 %v14535_v48 }
 0xcb5   : > { %11117 = vmatpush3.bf16.msra.mxu1 %v11116_v16 }
 0xcb6   : > { %11118 = vmatprep.subr.bf16.mxu1 %v14535_v48 }
 0xcb9   : > { %11120 = vmatpush3.bf16.msra.mxu1 %v11119_v0 }
 0xcba   : > { %11121 = vmatprep.subr.bf16.mxu1 %v14535_v48 }
 0xcbc   : > { %10089 = vmatmul.mubr.f32.vlgmr.msra.gmra.mrb[20].mxu1 %v13394_v15 }
 0xcbd   : > { %11123 = vmatpush3.bf16.msra.mxu1 %v11122_v29  ;;  %10107 = vmatprep.mubr.msk.f32.mxu1 %vm11816_vm0, %v14534_v38 }
 0xcbe   : > { %11124 = vmatprep.subr.bf16.mxu1 %v14535_v48 }
 0xcc1   : > { %11126 = vmatpush3.bf16.msra.mxu1 %v11125_v53 }
 0xcc2   : > { %11127 = vmatprep.subr.bf16.mxu1 %v14535_v48 }
 0xcc5   : > { %11129 = vmatpush3.bf16.msra.mxu1 %v11128_v17 }
 0xcc6   : > { %11130 = vmatprep.subr.bf16.mxu1 %v14535_v48 }
 0xcc9   : > { %11132 = vmatpush3.bf16.msra.mxu1 %v11131_v14 }
 0xcca   : > { %11133 = vmatprep.subr.bf16.mxu1 %v14535_v48 }
 0xccc   : > { %10108 = vmatmul.mubr.f32.vlgmr.msra.gmra.mrb[20].mxu1 %v13397_v19  ;;  %v11146_v19 = vpack.c.bf16 %v5702_v27, %v5695_v26  ;;  %v14555_v27 = vmov 1  }
 0xccd   : > { %11135 = vmatpush3.bf16.msra.mxu1 %v13467_v44  ;;  %10126 = vmatprep.mubr.msk.f32.mxu1 %vm11816_vm0, %v14534_v38 }
 0xcce   : > { %11136 = vmatprep.subr.bf16.mxu1 %v14535_v48 }
 0xcd1   : > { %11138 = vmatpush3.bf16.msra.mxu1 %v13490_v18 }
 0xcd2   : > { %11139 = vmatprep.subr.bf16.mxu1 %v14535_v48 }
 0xcd5   : > { %11141 = vmatpush3.bf16.msra.mxu1 %v13504_v46 }
 0xcd6   : > { %11142 = vmatprep.subr.bf16.mxu1 %v14535_v48 }
 0xcd9   : > { %11144 = vmatpush3.bf16.msra.mxu1 %v13511_v49 }
 0xcda   : > { %11145 = vmatprep.subr.bf16.mxu1 %v14535_v48 }
 0xcdc   : > { %10127 = vmatmul.mubr.f32.vlgmr.msra.gmra.mrb[20].mxu1 %v13400_v24 }
 0xcdd   : > { %11147 = vmatpush3.bf16.msra.mxu1 %v11146_v19  ;;  %10145 = vmatprep.mubr.msk.f32.mxu1 %vm11816_vm0, %v14534_v38 }
 0xcde   : > { %11148 = vmatprep.subr.bf16.mxu1 %v14535_v48 }
 0xce1   : > { %11150 = vmatpush3.bf16.msra.mxu1 %v11149_v43 }
 0xce2   : > { %11151 = vmatprep.subr.bf16.mxu1 %v14535_v48 }
 0xce5   : > { %11153 = vmatpush3.bf16.msra.mxu1 %v11152_v62 }
 0xce6   : > { %11154 = vmatprep.subr.bf16.mxu1 %v14535_v48 }
 0xce9   : > { %11156 = vmatpush3.bf16.msra.mxu1 %v11155_v10  ;;  %v14563_v10 = vld [vmem:[#allocation18_spill] sm:$0xff] }
 0xcea   : > { %11157 = vmatprep.subr.bf16.mxu1 %v14535_v48 }
 0xcec   : > { %10146 = vmatmul.mubr.f32.vlgmr.msra.gmra.mrb[20].mxu1 %v13394_v15 }
 0xced   : > { %11159 = vmatpush3.bf16.msra.mxu1 %v13467_v44  ;;  %10164 = vmatprep.mubr.msk.f32.mxu1 %vm11816_vm0, %v14534_v38 }
 0xcee   : > { %11160 = vmatprep.subr.bf16.mxu1 %v14535_v48 }
 0xcf1   : > { %11162 = vmatpush3.bf16.msra.mxu1 %v13490_v18  ;;  %v14556_v18 = vmov 5  }
 0xcf2   : > { %11163 = vmatprep.subr.bf16.mxu1 %v14535_v48 }
 0xcf5   : > { %11165 = vmatpush3.bf16.msra.mxu1 %v13504_v46 }
 0xcf6   : > { %11166 = vmatprep.subr.bf16.mxu1 %v14535_v48 }
 0xcf9   : > { %11168 = vmatpush3.bf16.msra.mxu1 %v13511_v49 }
 0xcfa   : > { %11241 = vmatprep.subr.bf16.mxu1 %v14535_v48 }
 0xcfc   : > { %10165 = vmatmul.mubr.f32.vlgmr.msra.gmra.mrb[20].mxu1 %v13394_v15  ;;  %v14553_v15 = vmov 6  }
 0xcfd   : > { %10289 = vmatprep.mubr.msk.f32.mxu1 %vm11816_vm0, %v14534_v38 }
 0xd6f   : > { %v5588_v24 = vpop.f32.mrb[18].mxu1 }
 0xd70   : > { %v10052_v44 = vpop.f32.mrb[19].mxu1  ;;  %v11426_v45 = vadd.f32 %v8530_v7, %v5588_v24 }
 0xd72   : > { %v5593_v22 = vand.u32 2147483647, %v11426_v45  ;;  %v5592_v49 = vmax.f32 %v11426_v45, 0.0  ;;  %v13662_v45 = vld [vmem:[%s14441_s7 + $0x8] sm:$0xff] }
 0xd74   : > { %v5594_v52 = vsub.f32 0.0, %v5593_v22 }
 0xd76   : > { %v5595_v3 = vmul.f32 1.442695, %v5594_v52 }
 0xd78   : > { %11696 = vpow2.f32 %v5595_v3 }
 0xd82   : > { %v11697_v42 = vpop.eup %11696 }
 0xd83   : > { %v5597_v41 = vadd.f32 1.0, %v11697_v42 }
 0xd85   : > { %11698 = vlog2.f32 %v5597_v41  ;;  %v14564_v41 = vld [vmem:[#allocation19_spill] sm:$0xff] }
 0xd8f   : > { %v11699_v36 = vpop.eup %11698 }
 0xd90   : > { %v5599_v2 = vmul.f32 0.6931472, %v11699_v36 }
 0xd92   : > { %v5600_v57 = vadd.f32 %v5599_v2, %v5592_v49 }
 0xd94   : > { %v6217_v9 = vrot.slane %v5600_v57, %v12313_v12  ;;  %v6270_v5 = vrot.slane %v5600_v57, %v14558_v11  ;;  %v6318_v50 = vrot.slane %v5600_v57, %v14559_v8  ;;  %v13625_v6 = vrot.slane %v5600_v57, %v14560_v56 }
 0xd95   : > { %v13629_v33 = vrot.slane %v5600_v57, %v14561_v51  ;;  %v13632_v32 = vmul.f32 %v5600_v57, %v13390_v13  ;;  %v13636_v0 = vrot.slane %v5600_v57, %v14562_v35  ;;  %v13649_v24 = vrot.slane %v5600_v57, %v14563_v10 }
 0xd96   : > { %v6218_v59 = vmul.f32 %v11748_v47, %v6217_v9  ;;  %v6271_v1 = vmul.f32 %v11748_v47, %v6270_v5  ;;  %v6319_v37 = vmul.f32 %v11748_v47, %v6318_v50  ;;  %v6367_v54 = vmul.f32 %v11748_v47, %v13625_v6 }
 0xd97   : > { %v6415_v4 = vmul.f32 %v11748_v47, %v13629_v33  ;;  %v13640_v29 = vrot.slane %v13632_v32, %v12313_v12  ;;  %v13644_v53 = vrot.slane %v13632_v32, %v14558_v11  ;;  %v6219_v22 = vmul.f32 %v13662_v45, %v6217_v9 }
 0xd98   : > { %v6220_v20 = vmul.f32 1.442695, %v6218_v59  ;;  %v6273_v31 = vmul.f32 1.442695, %v6271_v1  ;;  %v6321_v25 = vmul.f32 1.442695, %v6319_v37  ;;  %v6511_v52 = vmul.f32 %v11748_v47, %v13649_v24 }
 0xd99   : > { %v6369_v16 = vmul.f32 1.442695, %v6367_v54  ;;  %v6417_v44 = vmul.f32 1.442695, %v6415_v4  ;;  %v13675_v59 = vrot.slane %v13632_v32, %v14561_v51  ;;  %v6222_v11 = vmul.f32 1.442695, %v6219_v22 }
 0xd9a   : > { %11700 = vpow2.f32 %v6220_v20  ;;  %v6513_v1 = vmul.f32 1.442695, %v6511_v52  ;;  %v6522_v52 = vrot.slane %v13632_v32, %v14563_v10 }
 0xd9b   : > { %11702 = vpow2.f32 %v6273_v31 }
 0xd9c   : > { %11704 = vpow2.f32 %v6321_v25  ;;  %v6272_v25 = vmul.f32 %v13662_v45, %v6270_v5 }
 0xd9d   : > { %11706 = vpow2.f32 %v6369_v16  ;;  %v13690_v16 = vrot.slane %v13632_v32, %v14562_v35 }
 0xd9e   : > { %11708 = vpow2.f32 %v6417_v44  ;;  %v6275_v4 = vmul.f32 1.442695, %v6272_v25  ;;  %v6368_v44 = vmul.f32 %v13662_v45, %v13625_v6 }
 0xda4   : > { %v11701_v40 = vpop.eup %11700 }
 0xda5   : > { %v6224_v19 = vmul.f32 0.0, %v11701_v40 }
 0xdcf   : > { %v6142_v28 = vpop.f32.mrb[20].mxu1 }
 0xdd0   : > { %6146 = vxpose.xlu0.b32.start.end [1/1] (short) (narrow) %v6142_v28, 16  ;;  %6179 = vrot.lane.b32.xlu1 %v6142_v28, %s14549_s25  ;;  %v10166_v21 = vpop.f32.mrb[21].mxu1  ;;  %v6463_v28 = vmul.f32 %v11748_v47, %v13636_v0  ;;  %s11751_s25 = scalar_lea.vmem %s14393_s20, 128 }
 0xdd1   : > { %v11703_v21 = vpop.eup %11702  ;;  %p11752_p11 = scmp.ne.s32.totalorder %s14393_s20, %s11751_s25  ;;  %p11759_p1 = scmp.lt.s32.totalorder %s11757_s27, %s11751_s25 }
 0xdd2   : > { %v6465_v42 = vmul.f32 1.442695, %v6463_v28  ;;  %v11705_v2 = vpop.eup %11704 }
 0xdd3   : > { %v11707_v54 = vpop.eup %11706  ;;  %p11753_p12 = pnand %p11752_p11, %p11963_p5  ;;  %p11760_p2 = por %p11759_p1, %p11758_p0 }
 0xdd4   : > { %11710 = vpow2.f32 %v6465_v42  ;;  %v6371_v42 = vmul.f32 1.442695, %v6368_v44 }
 0xdd5   : > { %11712 = vpow2.f32 %v6222_v11  ;;  %p11754_p13 = pneg %p11753_p12 }
 0xdd6   : > { %11714 = vpow2.f32 %v6513_v1 }
 0xdd7   : > { %p11761_p3 = pnand %p11760_p2, %p11754_p13 }
 0xdf9   : > { %11610 = vset.pattern.permute.xlu0 %v14550_v60 }
 0xe42   : > { %v6180_v46 = vpop.permute.xlu1 %6179 }
 0xe50   : > { %v6162_v34 = vpop.trf.xlu0 }
 0xe51   : > { %6233 = vperm.xlu0 %11610, %v6162_v34   ;;  %6284 = vperm.xlu1 %11611, %v6162_v34  }
 0xe54   : > { %v6163_v26 = vpop.trf.xlu0 }
 0xe55   : > { %11613 = vset.pattern.permute.xlu0 %v14551_v63  ;;  %11612 = vset.pattern.permute.xlu1 %v14552_v30 }
 0xe56   : > { %6380 = vperm.xlu0 %11613, %v6162_v34   ;;  %6332 = vperm.xlu1 %11612, %v6162_v34  }
 0xe5a   : > { %11616 = vset.pattern.permute.xlu0 %v14553_v15  ;;  %11614 = vset.pattern.permute.xlu1 %v14554_v39 }
 0xe5b   : > { %6524 = vperm.xlu0 %11616, %v6162_v34   ;;  %6428 = vperm.xlu1 %11614, %v6162_v34  }
 0xe5f   : > { %11619 = vset.pattern.permute.xlu0 %v14555_v27  ;;  %11615 = vset.pattern.permute.xlu1 %v14556_v18 }
 0xe60   : > { %6288 = vperm.xlu0 %11619, %v6163_v26   ;;  %6476 = vperm.xlu1 %11615, %v6162_v34  }
 0xe64   : > { %11622 = vset.pattern.permute.xlu0 %v14554_v39  ;;  %11617 = vset.pattern.permute.xlu1 %v14557_v23 }
 0xe65   : > { %6432 = vperm.xlu0 %11622, %v6163_v26   ;;  %6572 = vperm.xlu1 %11617, %v6162_v34   ;;  %v13656_v34 = vrot.slane %v13632_v32, %v14559_v8 }
 0xe69   : > { %11625 = vset.pattern.permute.xlu0 %v14557_v23  ;;  %11618 = vset.pattern.permute.xlu1 %v14550_v60 }
 0xe6a   : > { %6576 = vperm.xlu0 %11625, %v6163_v26   ;;  %6238 = vperm.xlu1 %11618, %v6163_v26  }
 0xe6e   : > { %11620 = vset.pattern.permute.xlu1 %v14552_v30  ;;  %11627 = vset.pattern.permute.xlu0 %v14555_v27 }
 0xe6f   : > { %6336 = vperm.xlu1 %11620, %v6163_v26  }
 0xe73   : > { %11621 = vset.pattern.permute.xlu1 %v14551_v63 }
 0xe74   : > { %6384 = vperm.xlu1 %11621, %v6163_v26  }
 0xe78   : > { %11623 = vset.pattern.permute.xlu1 %v14556_v18 }
 0xe79   : > { %6480 = vperm.xlu1 %11623, %v6163_v26  }
 0xe7d   : > { %11624 = vset.pattern.permute.xlu1 %v14553_v15 }
 0xe7e   : > { %6528 = vperm.xlu1 %11624, %v6163_v26  }
 0xea7   : > { %6182 = vxpose.xlu1.b32.start.end [1/1] (short) (narrow) %v6180_v46, 16  ;;  %v13668_v46 = vrot.slane %v5600_v57, %v14564_v41  ;;  %v13680_v57 = vrot.slane %v13632_v32, %v14560_v56 }
 0xea9   : > { %v6559_v8 = vmul.f32 %v11748_v47, %v13668_v46  ;;  %v6560_v44 = vmul.f32 %v13662_v45, %v13668_v46 }
 0xeab   : > { %v6561_v47 = vmul.f32 1.442695, %v6559_v8 }
 0xead   : > { %11716 = vpow2.f32 %v6561_v47 }
 0xeae   : > { %11718 = vpow2.f32 %v6275_v4 }
 0xec5   : > { %11626 = vset.pattern.permute.xlu1 %v14550_v60 }
 0xed0   : > { %v6234_v17 = vpop.permute.xlu0 %6233  ;;  %v6285_v14 = vpop.permute.xlu1 %6284 }
 0xed1   : > { %v6241_v43 = vmul.f32 %v6234_v17, %v13640_v29  ;;  %v6291_v62 = vmul.f32 %v6285_v14, %v13644_v53  ;;  %v6320_v17 = vmul.f32 %v13662_v45, %v6318_v50 }
 0xed3   : > { %v13652_v12 = vadd.f32 %v6241_v43, %v6224_v19  ;;  %v11709_v19 = vpop.eup %11708  ;;  %v6323_v35 = vmul.f32 1.442695, %v6320_v17 }
 0xed4   : > { %v11711_v50 = vpop.eup %11710 }
 0xed5   : > { %v6277_v26 = vmul.f32 %v11703_v21, %v13652_v12  ;;  %v6333_v7 = vpop.permute.xlu1 %6332  ;;  %v6381_v9 = vpop.permute.xlu0 %6380  ;;  %11720 = vpow2.f32 %v6323_v35 }
 0xed6   : > { %v6339_v3 = vmul.f32 %v6333_v7, %v13656_v34  ;;  %v6387_v51 = vmul.f32 %v6381_v9, %v13680_v57  ;;  %11722 = vpow2.f32 %v6371_v42 }
 0xed7   : > { %v13670_v36 = vadd.f32 %v6291_v62, %v6277_v26  ;;  %v13699_v62 = vrot.slane %v13632_v32, %v14564_v41  ;;  %v6416_v41 = vmul.f32 %v13662_v45, %v13629_v33  ;;  %v6464_v32 = vmul.f32 %v13662_v45, %v13636_v0 }
 0xed9   : > { %v6325_v49 = vmul.f32 %v11705_v2, %v13670_v36  ;;  %v6467_v0 = vmul.f32 1.442695, %v6464_v32 }
 0xeda   : > { %v6429_v20 = vpop.permute.xlu1 %6428  ;;  %v6525_v26 = vpop.permute.xlu0 %6524 }
 0xedb   : > { %v13682_v31 = vadd.f32 %v6339_v3, %v6325_v49  ;;  %v6435_v37 = vmul.f32 %v6429_v20, %v13675_v59  ;;  %v11713_v3 = vpop.eup %11712  ;;  %v6531_v49 = vmul.f32 %v6525_v26, %v6522_v52 }
 0xedc   : > { %v11715_v6 = vpop.eup %11714  ;;  %v6225_v20 = vmul.f32 0.0, %v11713_v3 }
 0xedd   : > { %v6373_v40 = vmul.f32 %v11707_v54, %v13682_v31  ;;  %v11717_v25 = vpop.eup %11716 }
 0xede   : > { %v11719_v54 = vpop.eup %11718 }
 0xedf   : > { %v6477_v56 = vpop.permute.xlu1 %6476  ;;  %v13693_v14 = vadd.f32 %v6387_v51, %v6373_v40  ;;  %v6289_v8 = vpop.permute.xlu0 %6288 }
 0xee0   : > { %v6483_v5 = vmul.f32 %v6477_v56, %v13690_v16  ;;  %v6292_v40 = vmul.f32 %v6289_v8, %v13644_v53 }
 0xee1   : > { %v6421_v43 = vmul.f32 %v11709_v19, %v13693_v14 }
 0xee3   : > { %v13703_v28 = vadd.f32 %v6435_v37, %v6421_v43  ;;  %v6419_v37 = vmul.f32 1.442695, %v6416_v41 }
 0xee4   : > { %v6573_v21 = vpop.permute.xlu1 %6572  ;;  %v6433_v26 = vpop.permute.xlu0 %6432 }
 0xee5   : > { %v6579_v7 = vmul.f32 %v6573_v21, %v13699_v62  ;;  %v6469_v22 = vmul.f32 %v11711_v50, %v13703_v28  ;;  %11724 = vpow2.f32 %v6419_v37 }
 0xee6   : > { %11726 = vpow2.f32 %v6467_v0 }
 0xee7   : > { %v13711_v2 = vadd.f32 %v6483_v5, %v6469_v22  ;;  %v11721_v5 = vpop.eup %11720 }
 0xee9   : > { %v6239_v11 = vpop.permute.xlu1 %6238  ;;  %v6517_v9 = vmul.f32 %v11715_v6, %v13711_v2  ;;  %v6436_v6 = vmul.f32 %v6433_v26, %v13675_v59  ;;  %v6577_v37 = vpop.permute.xlu0 %6576 }
 0xeea   : > { %v6242_v1 = vmul.f32 %v6239_v11, %v13640_v29  ;;  %v6512_v29 = vmul.f32 %v13662_v45, %v13649_v24  ;;  %v6580_v59 = vmul.f32 %v6577_v37, %v13699_v62 }
 0xeeb   : > { %v13717_v10 = vadd.f32 %v6531_v49, %v6517_v9 }
 0xeec   : > { %v13719_v33 = vadd.f32 %v6242_v1, %v6225_v20  ;;  %v6515_v53 = vmul.f32 1.442695, %v6512_v29  ;;  %v6621_v29 = vld [vmem:[%s14443_s9 + $0x28] sm:$0xff] }
 0xeed   : > { %v6565_v51 = vmul.f32 %v11717_v25, %v13717_v10 }
 0xeee   : > { %v6278_v47 = vmul.f32 %v11719_v54, %v13719_v33  ;;  %v6337_v56 = vpop.permute.xlu1 %6336  ;;  %11728 = vpow2.f32 %v6515_v53 }
 0xeef   : > { %v6340_v4 = vmul.f32 %v6337_v56, %v13656_v34  ;;  %v13727_v17 = vadd.f32 %v6579_v7, %v6565_v51  ;;  %v11723_v34 = vpop.eup %11722  ;;  %v6563_v7 = vmul.f32 1.442695, %v6560_v44  ;;  %v6620_v56 = vld [vmem:[%s14443_s9 + $0x20] sm:$0xff] }
 0xef0   : > { %v13729_v19 = vadd.f32 %v6292_v40, %v6278_v47  ;;  %v11725_v42 = vpop.eup %11724  ;;  %v6640_v0 = vand.u32 4294901760, %v6620_v56 }
 0xef1   : > { %11730 = vpow2.f32 %v6563_v7 }
 0xef2   : > { %v6326_v43 = vmul.f32 %v11721_v5, %v13729_v19  ;;  %v6643_v5 = vand.u32 4294901760, %v6621_v29  ;;  %v13806_v26 = vsub.f32 %v6620_v56, %v6640_v0 }
 0xef3   : > { %v6385_v35 = vpop.permute.xlu1 %6384 }
 0xef4   : > { %v13734_v50 = vadd.f32 %v6340_v4, %v6326_v43  ;;  %v6388_v24 = vmul.f32 %v6385_v35, %v13680_v57  ;;  %v11727_v57 = vpop.eup %11726  ;;  %v6622_v43 = vld [vmem:[%s14443_s9 + $0x30] sm:$0xff]  ;;  %v6623_v35 = vld [vmem:[%s14443_s9 + $0x38] sm:$0xff]  ;;  %v13825_v37 = vpack.c.bf16 %v6643_v5, %v6640_v0 }
 0xef6   : > { %v6374_v21 = vmul.f32 %v11723_v34, %v13734_v50 }
 0xef8   : > { %v13738_v22 = vadd.f32 %v6388_v24, %v6374_v21  ;;  %v6481_v3 = vpop.permute.xlu1 %6480  ;;  %v11729_v1 = vpop.eup %11728 }
 0xef9   : > { %v6484_v41 = vmul.f32 %v6481_v3, %v13690_v16  ;;  %v13811_v3 = vsub.f32 %v6621_v29, %v6643_v5 }
 0xefa   : > { %v6422_v45 = vmul.f32 %v11725_v42, %v13738_v22  ;;  %v6646_v42 = vand.u32 4294901760, %v6622_v43 }
 0xefb   : > { %v11731_v16 = vpop.eup %11730 }
 0xefc   : > { %v13743_v46 = vadd.f32 %v6436_v6, %v6422_v45 }
 0xefd   : > { %v6529_v49 = vpop.permute.xlu1 %6528 }
 0xefe   : > { %v6532_v11 = vmul.f32 %v6529_v49, %v6522_v52  ;;  %v6470_v9 = vmul.f32 %v11727_v57, %v13743_v46  ;;  %v13816_v57 = vsub.f32 %v6622_v43, %v6646_v42 }
 0xf00   : > { %v13746_v20 = vadd.f32 %v6484_v41, %v6470_v9  ;;  %v6649_v41 = vand.u32 4294901760, %v6623_v35 }
 0xf02   : > { %v6518_v8 = vmul.f32 %v11729_v1, %v13746_v20  ;;  %v13818_v49 = vsub.f32 %v6623_v35, %v6649_v41 }
 0xf04   : > { %v13749_v32 = vadd.f32 %v6532_v11, %v6518_v8 }
 0xf06   : > { %v6566_v25 = vmul.f32 %v11731_v16, %v13749_v32 }
 0xf08   : > { %v13753_v54 = vadd.f32 %v6580_v59, %v6566_v25 }
 0xf27   : > { %v6198_v51 = vpop.trf.xlu1 }
 0xf28   : > { %6296 = vperm.xlu0 %11627, %v6198_v51   ;;  %6247 = vperm.xlu1 %11626, %v6198_v51  }
 0xf2b   : > { %v6199_v52 = vpop.trf.xlu1 }
 0xf2c   : > { %11630 = vset.pattern.permute.xlu0 %v14554_v39  ;;  %11628 = vset.pattern.permute.xlu1 %v14552_v30 }
 0xf2d   : > { %6440 = vperm.xlu0 %11630, %v6198_v51   ;;  %6344 = vperm.xlu1 %11628, %v6198_v51  }
 0xf31   : > { %11635 = vset.pattern.permute.xlu0 %v14552_v30  ;;  %11629 = vset.pattern.permute.xlu1 %v14551_v63  ;;  %v6606_v30 = vmul.f32 0.5, %v13379_v61 }
 0xf32   : > { %6392 = vperm.xlu1 %11629, %v6198_v51   ;;  %6348 = vperm.xlu0 %11635, %v6199_v52  }
 0xf33   : > { %11732 = vtanh.f32 %v6606_v30 }
 0xf36   : > { %11631 = vset.pattern.permute.xlu1 %v14556_v18  ;;  %11638 = vset.pattern.permute.xlu0 %v14556_v18 }
 0xf37   : > { %6488 = vperm.xlu1 %11631, %v6198_v51   ;;  %6492 = vperm.xlu0 %11638, %v6199_v52  }
 0xf3b   : > { %11632 = vset.pattern.permute.xlu1 %v14553_v15  ;;  %11639 = vset.pattern.permute.xlu0 %v14557_v23 }
 0xf3c   : > { %6536 = vperm.xlu1 %11632, %v6198_v51   ;;  %6584 = vperm.xlu0 %11639, %v6198_v51  }
 0xf3d   : > { %v11733_v18 = vpop.eup %11732 }
 0xf3e   : > { %v6608_v62 = vadd.f32 1.0, %v11733_v18 }
 0xf40   : > { %11633 = vset.pattern.permute.xlu1 %v14550_v60  ;;  %v6609_v40 = vmul.f32 0.5, %v6608_v62  ;;  %v6741_v62 = vand.u32 4294901760, %v13806_v26 }
 0xf41   : > { %6252 = vperm.xlu1 %11633, %v6199_v52  }
 0xf42   : > { %v6610_v60 = vmul.f32 %v6609_v40, %v13379_v61  ;;  %v6619_v61 = vld [vmem:[%s14443_s9 + $0x18] sm:$0xff]  ;;  %v13834_v40 = vpack.c.bf16 %v6649_v41, %v6646_v42 }
 0xf43   : > { %v6637_v4 = vand.u32 4294901760, %v6619_v61 }
 0xf45   : > { %11634 = vset.pattern.permute.xlu1 %v14555_v27  ;;  %v13804_v21 = vsub.f32 %v6619_v61, %v6637_v4  ;;  %v6762_v61 = vand.u32 4294901760, %v13818_v49 }
 0xf46   : > { %6300 = vperm.xlu1 %11634, %v6199_v52  }
 0xf47   : > { %v6734_v8 = vand.u32 4294901760, %v13804_v21  ;;  %v6763_v29 = vsub.f32 %v13818_v49, %v6762_v61 }
 0xf49   : > { %v6735_v51 = vsub.f32 %v13804_v21, %v6734_v8  ;;  %v6764_v5 = vand.u32 4294901760, %v6763_v29 }
 0xf4a   : > { %11636 = vset.pattern.permute.xlu1 %v14551_v63  ;;  %v6616_v63 = vld [vmem:[%s14443_s9] sm:$0xff] }
 0xf4b   : > { %6396 = vperm.xlu1 %11636, %v6199_v52   ;;  %v6628_v27 = vand.u32 4294901760, %v6616_v63  ;;  %v6736_v18 = vand.u32 4294901760, %v6735_v51 }
 0xf4d   : > { %v13798_v44 = vsub.f32 %v6616_v63, %v6628_v27 }
 0xf4f   : > { %11637 = vset.pattern.permute.xlu1 %v14554_v39  ;;  %v6617_v39 = vld [vmem:[%s14443_s9 + $0x8] sm:$0xff]  ;;  %v6713_v6 = vand.u32 4294901760, %v13798_v44 }
 0xf50   : > { %6444 = vperm.xlu1 %11637, %v6199_v52   ;;  %v6631_v47 = vand.u32 4294901760, %v6617_v39 }
 0xf51   : > { %v6714_v11 = vsub.f32 %v13798_v44, %v6713_v6 }
 0xf52   : > { %v13796_v53 = vpack.c.bf16 %v6631_v47, %v6628_v27  ;;  %v13800_v24 = vsub.f32 %v6617_v39, %v6631_v47  ;;  %v6742_v39 = vsub.f32 %v13806_v26, %v6741_v62  ;;  %v6755_v47 = vand.u32 4294901760, %v13816_v57 }
 0xf53   : > { %v6715_v16 = vand.u32 4294901760, %v6714_v11 }
 0xf54   : > { %11640 = vset.pattern.permute.xlu1 %v14553_v15  ;;  %v6618_v15 = vld [vmem:[%s14443_s9 + $0x10] sm:$0xff]  ;;  %11171 = vmatpush3.bf16.msra.mxu0 %v13796_v53  ;;  %v6720_v45 = vand.u32 4294901760, %v13800_v24  ;;  %v6743_v27 = vand.u32 4294901760, %v6742_v39  ;;  %v6756_v56 = vsub.f32 %v13816_v57, %v6755_v47  ;;  %v11194_v35 = vpack.c.bf16 %v13800_v24, %v13798_v44 }
 0xf55   : > { %6540 = vperm.xlu1 %11640, %v6199_v52   ;;  %11172 = vmatprep.subr.bf16.mxu0 %v14535_v48  ;;  %v14567_v44 = vpack.c.bf16 %v13818_v49, %v13816_v57 }
 0xf56   : > { %v6721_v9 = vsub.f32 %v13800_v24, %v6720_v45  ;;  %v6757_v0 = vand.u32 4294901760, %v6756_v56 }
 0xf58   : > { %v6722_v59 = vand.u32 4294901760, %v6721_v9  ;;  %v13850_v43 = vpack.c.bf16 %v6764_v5, %v6757_v0 }
 0xf59   : > { %11641 = vset.pattern.permute.xlu1 %v14557_v23  ;;  %v6634_v23 = vand.u32 4294901760, %v6618_v15 }
 0xf5a   : > { %6588 = vperm.xlu1 %11641, %v6199_v52   ;;  %v13830_v52 = vpack.c.bf16 %v6722_v59, %v6715_v16 }
 0xf5b   : > { %v13802_v34 = vsub.f32 %v6618_v15, %v6634_v23  ;;  %v13809_v7 = vpack.c.bf16 %v6637_v4, %v6634_v23 }
 0xf5d   : > { %v6727_v1 = vand.u32 4294901760, %v13802_v34  ;;  %11174 = vmatpush3.bf16.msra.mxu0 %v13809_v7  ;;  %v11197_v42 = vpack.c.bf16 %v13804_v21, %v13802_v34 }
 0xf5e   : > { %6612 = vrot.lane.b32.xlu1 %v6610_v60, %s14565_s22  ;;  %11175 = vmatprep.subr.bf16.mxu0 %v14535_v48  ;;  %v6748_v60 = vand.u32 4294901760, %v13811_v3 }
 0xf5f   : > { %v6728_v25 = vsub.f32 %v13802_v34, %v6727_v1  ;;  %v13866_v56 = vpack.c.bf16 %v6734_v8, %v6727_v1  ;;  %v13874_v8 = vpack.c.bf16 %v6762_v61, %v6755_v47 }
 0xf60   : > { %v6749_v15 = vsub.f32 %v13811_v3, %v6748_v60 }
 0xf61   : > { %v6729_v30 = vand.u32 4294901760, %v6728_v25  ;;  %11177 = vmatpush3.bf16.msra.mxu0 %v13825_v37 }
 0xf62   : > { %11178 = vmatprep.subr.bf16.mxu0 %v14535_v48  ;;  %v6750_v23 = vand.u32 4294901760, %v6749_v15  ;;  %v13862_v15 = vpack.c.bf16 %v6720_v45, %v6713_v6 }
 0xf63   : > { %v13838_v63 = vpack.c.bf16 %v6736_v18, %v6729_v30 }
 0xf64   : > { %v13848_v4 = vpack.c.bf16 %v6750_v23, %v6743_v27 }
 0xf65   : > { %11180 = vmatpush3.bf16.msra.mxu0 %v13834_v40 }
 0xf66   : > { %11181 = vmatprep.subr.bf16.mxu0 %v14535_v48 }
 0xfa7   : > { %v6297_v9 = vpop.permute.xlu0 %6296  ;;  %v6248_v16 = vpop.permute.xlu1 %6247 }
 0xfa8   : > { %v6303_v47 = vmul.f32 %v6297_v9, %v13670_v36 }
 0xfac   : > { %v6441_v59 = vpop.permute.xlu0 %6440  ;;  %v6345_v25 = vpop.permute.xlu1 %6344 }
 0xfad   : > { %v6351_v51 = vmul.f32 %v6345_v25, %v13682_v31  ;;  %v13870_v25 = vpack.c.bf16 %v6748_v60, %v6741_v62 }
 0xfaf   : > { %v6353_v27 = vsel %vm1072_vm3, %v6351_v51, 0.0 }
 0xfb1   : > { %v6349_v30 = vpop.permute.xlu0 %6348  ;;  %v6393_v18 = vpop.permute.xlu1 %6392 }
 0xfb2   : > { %v6352_v39 = vmul.f32 %v6349_v30, %v13734_v50 }
 0xfb4   : > { %v6354_v23 = vsel %vm1072_vm3, %v6352_v39, 0.0 }
 0xfb5   : > { %v6355_v29 = vadd.f32 %v6354_v23, %v6353_v27  ;;  %v6255_v23 = vmul.f32 %v6248_v16, %v13652_v12 }
 0xfb6   : > { %v6493_v0 = vpop.permute.xlu0 %6492  ;;  %v6489_v5 = vpop.permute.xlu1 %6488 }
 0xfb7   : > { %v6356_v58 = vrot.slane %v6355_v29, 4  ;;  %v6496_v11 = vmul.f32 %v6493_v0, %v13746_v20  ;;  %v6495_v31 = vmul.f32 %v6489_v5, %v13711_v2 }
 0xfb9   : > { %v6357_v41 = vadd.f32 %v6356_v58, %v6355_v29  ;;  %v6498_v50 = vsel %vm1072_vm3, %v6496_v11, 0.0  ;;  %v6497_v6 = vsel %vm1072_vm3, %v6495_v31, 0.0  ;;  %v6257_v11 = vsel %vm1072_vm3, %v6255_v23, 0.0 }
 0xfba   : > { %v6499_v45 = vadd.f32 %v6498_v50, %v6497_v6  ;;  %v6305_v50 = vsel %vm1072_vm3, %v6303_v47, 0.0 }
 0xfbb   : > { %v6358_v51 = vrot.slane %v6357_v41, 2  ;;  %v6537_v30 = vpop.permute.xlu1 %6536 }
 0xfbc   : > { %v6500_v1 = vrot.slane %v6499_v45, 4 }
 0xfbd   : > { %v6359_v39 = vadd.f32 %v6358_v51, %v6357_v41 }
 0xfbe   : > { %v6501_v27 = vadd.f32 %v6500_v1, %v6499_v45  ;;  %v6399_v45 = vmul.f32 %v6393_v18, %v13693_v14 }
 0xfbf   : > { %v6360_v20 = vrot.slane %v6359_v39, 1 }
 0xfc0   : > { %v6502_v0 = vrot.slane %v6501_v27, 2  ;;  %v6253_v2 = vpop.permute.xlu1 %6252  ;;  %v6401_v23 = vsel %vm1072_vm3, %v6399_v45, 0.0 }
 0xfc1   : > { %v6361_v62 = vadd.f32 %v6360_v20, %v6359_v39  ;;  %v6256_v58 = vmul.f32 %v6253_v2, %v13719_v33 }
 0xfc2   : > { %v6503_v60 = vadd.f32 %v6502_v0, %v6501_v27  ;;  %v6447_v0 = vmul.f32 %v6441_v59, %v13703_v28 }
 0xfc3   : > { %6362 = vst.msk [vmem:[#allocation3 + $0x2] sm:$0x1] %vm2343_vm4, %v6361_v62  ;;  %v6258_v29 = vsel %vm1072_vm3, %v6256_v58, 0.0 }
 0xfc4   : > { %v6504_v61 = vrot.slane %v6503_v60, 1  ;;  %v6259_v41 = vadd.f32 %v6258_v29, %v6257_v11  ;;  %v6449_v47 = vsel %vm1072_vm3, %v6447_v0, 0.0 }
 0xfc5   : > { %v6301_v5 = vpop.permute.xlu1 %6300 }
 0xfc6   : > { %v6505_v31 = vadd.f32 %v6504_v61, %v6503_v60  ;;  %v6260_v12 = vrot.slane %v6259_v41, 4  ;;  %v6304_v16 = vmul.f32 %v6301_v5, %v13729_v19 }
 0xfc8   : > { %6506 = vst.msk [vmem:[#allocation3 + $0x5] sm:$0x1] %vm2343_vm4, %v6505_v31  ;;  %v6261_v33 = vadd.f32 %v6260_v12, %v6259_v41  ;;  %v6306_v6 = vsel %vm1072_vm3, %v6304_v16, 0.0  ;;  %v6543_v41 = vmul.f32 %v6537_v30, %v13717_v10  ;;  %v6585_v12 = vpop.permute.xlu0 %6584 }
 0xfc9   : > { %v6307_v51 = vadd.f32 %v6306_v6, %v6305_v50 }
 0xfca   : > { %v6262_v1 = vrot.slane %v6261_v33, 2  ;;  %v6397_v39 = vpop.permute.xlu1 %6396  ;;  %v6545_v6 = vsel %vm1072_vm3, %v6543_v41, 0.0  ;;  %v11750_v41 = vld [vmem:[%s14442_s8] ss:$0 sm:$0xff] }
 0xfcb   : > { %v6308_v36 = vrot.slane %v6307_v51, 4  ;;  %v6400_v9 = vmul.f32 %v6397_v39, %v13738_v22 }
 0xfcc   : > { %v6263_v27 = vadd.f32 %v6262_v1, %v6261_v33  ;;  %v6591_v1 = vmul.f32 %v6585_v12, %v13727_v17 }
 0xfcd   : > { %v6309_v20 = vadd.f32 %v6308_v36, %v6307_v51  ;;  %v6402_v19 = vsel %vm1072_vm3, %v6400_v9, 0.0 }
 0xfce   : > { %v6264_v2 = vrot.slane %v6263_v27, 1  ;;  %v6403_v62 = vadd.f32 %v6402_v19, %v6401_v23 }
 0xfcf   : > { %v6310_v58 = vrot.slane %v6309_v20, 2  ;;  %v6445_v60 = vpop.permute.xlu1 %6444 }
 0xfd0   : > { %v6265_v11 = vadd.f32 %v6264_v2, %v6263_v27  ;;  %v6404_v14 = vrot.slane %v6403_v62, 4  ;;  %v6448_v18 = vmul.f32 %v6445_v60, %v13743_v46 }
 0xfd1   : > { %v6311_v29 = vadd.f32 %v6310_v58, %v6309_v20 }
 0xfd2   : > { %6266 = vst.msk [vmem:[#allocation3] sm:$0x1] %vm2343_vm4, %v6265_v11  ;;  %v6405_v22 = vadd.f32 %v6404_v14, %v6403_v62  ;;  %v6450_v61 = vsel %vm1072_vm3, %v6448_v18, 0.0 }
 0xfd3   : > { %v6312_v5 = vrot.slane %v6311_v29, 1  ;;  %v6451_v28 = vadd.f32 %v6450_v61, %v6449_v47 }
 0xfd4   : > { %v6406_v59 = vrot.slane %v6405_v22, 2  ;;  %v6541_v31 = vpop.permute.xlu1 %6540 }
 0xfd5   : > { %v6313_v16 = vadd.f32 %v6312_v5, %v6311_v29  ;;  %v6452_v50 = vrot.slane %v6451_v28, 4  ;;  %v6544_v33 = vmul.f32 %v6541_v31, %v13749_v32  ;;  %v6593_v32 = vsel %vm1072_vm3, %v6591_v1, 0.0 }
 0xfd6   : > { %v6407_v46 = vadd.f32 %v6406_v59, %v6405_v22  ;;  %v6604_v5 = vmul.f32 %v11750_v41, %v13390_v13  ;;  %v14566_v13 = vpack.c.bf16 %v13811_v3, %v13806_v26 }
 0xfd7   : > { %6314 = vst.msk [vmem:[#allocation3 + $0x1] sm:$0x1] %vm2343_vm4, %v6313_v16  ;;  %v6453_v45 = vadd.f32 %v6452_v50, %v6451_v28  ;;  %v6546_v51 = vsel %vm1072_vm3, %v6544_v33, 0.0 }
 0xfd8   : > { %v6408_v10 = vrot.slane %v6407_v46, 1  ;;  %v6547_v30 = vadd.f32 %v6546_v51, %v6545_v6 }
 0xfd9   : > { %v6454_v39 = vrot.slane %v6453_v45, 2  ;;  %v6589_v36 = vpop.permute.xlu1 %6588 }
 0xfda   : > { %v6409_v9 = vadd.f32 %v6408_v10, %v6407_v46  ;;  %v6548_v27 = vrot.slane %v6547_v30, 4  ;;  %v6592_v23 = vmul.f32 %v6589_v36, %v13753_v54 }
 0xfdb   : > { %v6455_v20 = vadd.f32 %v6454_v39, %v6453_v45  ;;  %v7195_v39 = vld [vmem:[%s14444_s10 + $0x8] sm:$0xff] }
 0xfdc   : > { %6410 = vst.msk [vmem:[#allocation3 + $0x3] sm:$0x1] %vm2343_vm4, %v6409_v9  ;;  %v6549_v19 = vadd.f32 %v6548_v27, %v6547_v30  ;;  %v6594_v0 = vsel %vm1072_vm3, %v6592_v23, 0.0  ;;  %v7194_v30 = vld [vmem:[%s14444_s10] sm:$0xff]  ;;  %v7212_v9 = vand.u32 4294901760, %v7195_v39  ;;  %v7197_v27 = vld [vmem:[%s14444_s10 + $0x18] sm:$0xff] }
 0xfdd   : > { %v6456_v2 = vrot.slane %v6455_v20, 1  ;;  %v6595_v62 = vadd.f32 %v6594_v0, %v6593_v32  ;;  %v6613_v31 = vpop.permute.xlu1 %6612  ;;  %v7209_v36 = vand.u32 4294901760, %v7194_v30 }
 0xfde   : > { %v6550_v58 = vrot.slane %v6549_v19, 2  ;;  %v7296_v0 = vsub.f32 %v7195_v39, %v7212_v9  ;;  %v7727_v39 = vld [vmem:[%s14446_s12 + $0x38] sm:$0xff] }
 0xfdf   : > { %v6457_v17 = vadd.f32 %v6456_v2, %v6455_v20  ;;  %v6596_v60 = vrot.slane %v6595_v62, 4  ;;  %v7218_v20 = vand.u32 4294901760, %v7197_v27  ;;  %v13988_v32 = vpack.c.bf16 %v7212_v9, %v7209_v36 }
 0xfe0   : > { %v6551_v11 = vadd.f32 %v6550_v58, %v6549_v19  ;;  %v7289_v19 = vsub.f32 %v7194_v30, %v7209_v36  ;;  %v7726_v30 = vld [vmem:[%s14446_s12 + $0x30] sm:$0xff]  ;;  %v7765_v36 = vand.u32 4294901760, %v7727_v39 }
 0xfe1   : > { %6458 = vst.msk [vmem:[#allocation3 + $0x4] sm:$0x1] %vm2343_vm4, %v6457_v17  ;;  %v6597_v14 = vadd.f32 %v6596_v60, %v6595_v62  ;;  %v7310_v62 = vsub.f32 %v7197_v27, %v7218_v20  ;;  %11243 = vmatpush3.bf16.msra.mxu1 %v13988_v32  ;;  %v7297_v60 = vand.u32 4294901760, %v7296_v0 }
 0xfe2   : > { %v6552_v18 = vrot.slane %v6551_v11, 1  ;;  %11244 = vmatprep.subr.bf16.mxu1 %v14535_v48  ;;  %v7290_v17 = vand.u32 4294901760, %v7289_v19 }
 0xfe3   : > { %v6598_v29 = vrot.slane %v6597_v14, 2 }
 0xfe4   : > { %v6553_v54 = vadd.f32 %v6552_v18, %v6551_v11  ;;  %v7291_v11 = vsub.f32 %v7289_v19, %v7290_v17 }
 0xfe5   : > { %v6599_v47 = vadd.f32 %v6598_v29, %v6597_v14  ;;  %v7298_v14 = vsub.f32 %v7296_v0, %v7297_v60  ;;  %v7311_v29 = vand.u32 4294901760, %v7310_v62 }
 0xfe6   : > { %6554 = vst.msk [vmem:[#allocation3 + $0x6] sm:$0x1] %vm2343_vm4, %v6553_v54  ;;  %v7292_v54 = vand.u32 4294901760, %v7291_v11  ;;  %v7732_v11 = vld [vmem:[%s14446_s12 + $0x60] sm:$0xff] }
 0xfe7   : > { %v6600_v22 = vrot.slane %v6599_v47, 1 }
 0xfe9   : > { %v6601_v61 = vadd.f32 %v6600_v22, %v6599_v47  ;;  %v7299_v47 = vand.u32 4294901760, %v7298_v14  ;;  %v7733_v14 = vld [vmem:[%s14446_s12 + $0x68] sm:$0xff] }
 0xfeb   : > { %6602 = vst.msk [vmem:[#allocation3 + $0x7] sm:$0x1] %vm2343_vm4, %v6601_v61  ;;  %v7312_v61 = vsub.f32 %v7310_v62, %v7311_v29  ;;  %v11248_v41 = vpack.c.bf16 %v7299_v47, %v7292_v54 }
 0xff2   : > { %v6603_v28 = vld [vmem:[#allocation3] sm:$0xff] }
 0xff3   : > { %v6605_v59 = vadd.f32 %v6604_v5, %v6603_v28  ;;  %v7313_v28 = vand.u32 4294901760, %v7312_v61 }
 0xff5   : > { %v6615_v12 = vmul.f32 %v6613_v31, %v6605_v59  ;;  %v11254_v31 = vpack.c.bf16 %v7296_v0, %v7289_v19  ;;  %v7729_v19 = vld [vmem:[%s14446_s12 + $0x48] sm:$0xff]  ;;  %v7730_v0 = vld [vmem:[%s14446_s12 + $0x50] sm:$0xff] }
 0xff6   : > { %v7771_v54 = vand.u32 4294901760, %v7729_v19  ;;  %v7774_v47 = vand.u32 4294901760, %v7730_v0 }
 0xff7   : > { %v6625_v16 = vsel %vm1072_vm3, %v6615_v12, 0 }
 0xff8   : > { %v6700_v50 = vand.u32 4294901760, %v6625_v16 }
 0xffa   : > { %v6701_v33 = vsub.f32 %v6625_v16, %v6700_v50  ;;  %v11266_v16 = vpack.c.bf16 %v7297_v60, %v7290_v17  ;;  %v7731_v60 = vld [vmem:[%s14446_s12 + $0x58] sm:$0xff] }
 0xffb   : > { %v7777_v61 = vand.u32 4294901760, %v7731_v60 }
 0xffc   : > { %v6702_v46 = vand.u32 4294901760, %v6701_v33 }
 0xffe   : > { %v6703_v6 = vsub.f32 %v6701_v33, %v6702_v46 }
0x1000   : > { %v6704_v45 = vand.u32 4294901760, %v6703_v6 }
0x1002   : > { %10184 = vmatmul.mubr.f32.vlgmr.msra.gmra.mrb[10].mxu0 %v6704_v45 }
0x1003   : > { %11183 = vmatpush3.bf16.msra.mxu0 %v13830_v52  ;;  %10202 = vmatprep.mubr.msk.f32.mxu0 %vm11816_vm0, %v14534_v38 }
0x1004   : > { %11184 = vmatprep.subr.bf16.mxu0 %v14535_v48 }
0x1007   : > { %11186 = vmatpush3.bf16.msra.mxu0 %v13838_v63 }
0x1008   : > { %11187 = vmatprep.subr.bf16.mxu0 %v14535_v48 }
0x100b   : > { %11189 = vmatpush3.bf16.msra.mxu0 %v13848_v4 }
0x100c   : > { %11190 = vmatprep.subr.bf16.mxu0 %v14535_v48 }
0x100f   : > { %11192 = vmatpush3.bf16.msra.mxu0 %v13850_v43 }
0x1010   : > { %11193 = vmatprep.subr.bf16.mxu0 %v14535_v48 }
0x1012   : > { %10203 = vmatmul.mubr.f32.vlgmr.msra.gmra.mrb[12].mxu0 %v6700_v50 }
0x1013   : > { %11195 = vmatpush3.bf16.msra.mxu0 %v11194_v35  ;;  %10221 = vmatprep.mubr.msk.f32.mxu0 %vm11816_vm0, %v14534_v38 }
0x1014   : > { %11196 = vmatprep.subr.bf16.mxu0 %v14535_v48 }
0x1017   : > { %11198 = vmatpush3.bf16.msra.mxu0 %v11197_v42 }
0x1018   : > { %11199 = vmatprep.subr.bf16.mxu0 %v14535_v48 }
0x101b   : > { %11201 = vmatpush3.bf16.msra.mxu0 %v14566_v13  ;;  %v8531_v13 = vld [vmem:[%s14448_s14] ss:$0 sm:$0xff] }
0x101c   : > { %11202 = vmatprep.subr.bf16.mxu0 %v14535_v48 }
0x101f   : > { %11204 = vmatpush3.bf16.msra.mxu0 %v14567_v44 }
0x1020   : > { %11205 = vmatprep.subr.bf16.mxu0 %v14535_v48 }
0x1022   : > { %10222 = vmatmul.mubr.f32.vlgmr.msra.gmra.mrb[14].mxu0 %v6701_v33 }
0x1023   : > { %11207 = vmatpush3.bf16.msra.mxu0 %v13796_v53  ;;  %10240 = vmatprep.mubr.msk.f32.mxu0 %vm11816_vm0, %v14534_v38 }
0x1024   : > { %11208 = vmatprep.subr.bf16.mxu0 %v14535_v48 }
0x1027   : > { %11210 = vmatpush3.bf16.msra.mxu0 %v13809_v7 }
0x1028   : > { %11211 = vmatprep.subr.bf16.mxu0 %v14535_v48 }
0x102b   : > { %11213 = vmatpush3.bf16.msra.mxu0 %v13825_v37 }
0x102c   : > { %11214 = vmatprep.subr.bf16.mxu0 %v14535_v48 }
0x102f   : > { %11216 = vmatpush3.bf16.msra.mxu0 %v13834_v40 }
0x1030   : > { %11217 = vmatprep.subr.bf16.mxu0 %v14535_v48 }
0x1032   : > { %10241 = vmatmul.mubr.f32.vlgmr.msra.gmra.mrb[16].mxu0 %v6702_v46 }
0x1033   : > { %11219 = vmatpush3.bf16.msra.mxu0 %v13862_v15  ;;  %10259 = vmatprep.mubr.msk.f32.mxu0 %vm11816_vm0, %v14534_v38 }
0x1034   : > { %11220 = vmatprep.subr.bf16.mxu0 %v14535_v48 }
0x1037   : > { %11222 = vmatpush3.bf16.msra.mxu0 %v13866_v56 }
0x1038   : > { %11223 = vmatprep.subr.bf16.mxu0 %v14535_v48 }
0x103b   : > { %11225 = vmatpush3.bf16.msra.mxu0 %v13870_v25 }
0x103c   : > { %11226 = vmatprep.subr.bf16.mxu0 %v14535_v48 }
0x103f   : > { %11228 = vmatpush3.bf16.msra.mxu0 %v13874_v8 }
0x1040   : > { %11229 = vmatprep.subr.bf16.mxu0 %v14535_v48 }
0x1042   : > { %10260 = vmatmul.mubr.f32.vlgmr.msra.gmra.mrb[18].mxu0 %v6700_v50 }
0x1043   : > { %11231 = vmatpush3.bf16.msra.mxu0 %v13796_v53  ;;  %10278 = vmatprep.mubr.msk.f32.mxu0 %vm11816_vm0, %v14534_v38 }
0x1044   : > { %11232 = vmatprep.subr.bf16.mxu0 %v14535_v48 }
0x1047   : > { %11234 = vmatpush3.bf16.msra.mxu0 %v13809_v7 }
0x1048   : > { %11235 = vmatprep.subr.bf16.mxu0 %v14535_v48 }
0x104b   : > { %11237 = vmatpush3.bf16.msra.mxu0 %v13825_v37 }
0x104c   : > { %11238 = vmatprep.subr.bf16.mxu0 %v14535_v48 }
0x104f   : > { %11240 = vmatpush3.bf16.msra.mxu0 %v13834_v40 }
0x1050   : > { %11277 = vmatprep.subr.bf16.mxu0 %v14535_v48 }
0x1052   : > { %10279 = vmatmul.mubr.f32.vlgmr.msra.gmra.mrb[20].mxu0 %v6700_v50 }
0x1053   : > { %10379 = vmatprep.mubr.msk.f32.mxu0 %vm11816_vm0, %v14534_v38 }
0x10d5   : > { %v6706_v53 = vpop.f32.mrb[10].mxu0 }
0x10d6   : > { %v10185_v24 = vpop.f32.mrb[11].mxu0 }
0x10e5   : > { %v6817_v34 = vpop.f32.mrb[12].mxu0 }
0x10e6   : > { %v6818_v21 = vadd.f32 %v6817_v34, %v6706_v53  ;;  %v10204_v26 = vpop.f32.mrb[13].mxu0  ;;  %v8532_v53 = vld [vmem:[%s14449_s15] ss:$0 sm:$0xff] }
0x10f5   : > { %v6905_v7 = vpop.f32.mrb[14].mxu0 }
0x10f6   : > { %v6906_v3 = vadd.f32 %v6905_v7, %v6818_v21  ;;  %v10223_v57 = vpop.f32.mrb[15].mxu0 }
0x1105   : > { %v6986_v49 = vpop.f32.mrb[16].mxu0 }
0x1106   : > { %v6987_v37 = vadd.f32 %v6986_v49, %v6906_v3  ;;  %v10242_v52 = vpop.f32.mrb[17].mxu0 }
0x1107   : > { %v7721_v52 = vld [vmem:[%s14446_s12 + $0x8] sm:$0xff] }
0x1115   : > { %v7081_v63 = vpop.f32.mrb[18].mxu0 }
0x1116   : > { %v7082_v4 = vadd.f32 %v7081_v63, %v6987_v37  ;;  %v10261_v40 = vpop.f32.mrb[19].mxu0  ;;  %v7720_v37 = vld [vmem:[%s14446_s12] sm:$0xff] }
0x1117   : > { %v7744_v63 = vand.u32 4294901760, %v7720_v37 }
0x1119   : > { %v14065_v9 = vsub.f32 %v7720_v37, %v7744_v63 }
0x1125   : > { %v7160_v43 = vpop.f32.mrb[20].mxu0 }
0x1126   : > { %v7161_v35 = vadd.f32 %v7160_v43, %v7082_v4  ;;  %v10280_v42 = vpop.f32.mrb[21].mxu0  ;;  %v7747_v4 = vand.u32 4294901760, %v7721_v52  ;;  %v7722_v43 = vld [vmem:[%s14446_s12 + $0x10] sm:$0xff] }
0x1127   : > { %v7750_v42 = vand.u32 4294901760, %v7722_v43 }
0x1128   : > { %v7164_v15 = vadd.f32 %v7161_v35, %v13263_v55  ;;  %v7196_v55 = vld [vmem:[%s14444_s10 + $0x10] sm:$0xff]  ;;  %v14035_v40 = vpack.c.bf16 %v7747_v4, %v7744_v63  ;;  %v7723_v35 = vld [vmem:[%s14446_s12 + $0x18] sm:$0xff]  ;;  %v14067_v27 = vsub.f32 %v7721_v52, %v7747_v4 }
0x1129   : > { %v7215_v23 = vand.u32 4294901760, %v7196_v55 }
0x112a   : > { %v7167_v56 = vsel %vm583_vm2, %v7164_v15, 0.0  ;;  %11279 = vmatpush3.bf16.msra.mxu0 %v14035_v40 }
0x112b   : > { %7168 = vadd.xlane.f32.xlu0 %v7167_v56  ;;  %v7303_v2 = vsub.f32 %v7196_v55, %v7215_v23  ;;  %v13991_v58 = vpack.c.bf16 %v7218_v20, %v7215_v23  ;;  %11280 = vmatprep.subr.bf16.mxu0 %v14535_v48  ;;  %v7762_v55 = vand.u32 4294901760, %v7726_v30  ;;  %v14069_v23 = vsub.f32 %v7722_v43, %v7750_v42 }
0x112d   : > { %11246 = vmatpush3.bf16.msra.mxu1 %v13991_v58  ;;  %v7304_v18 = vand.u32 4294901760, %v7303_v2  ;;  %v11257_v12 = vpack.c.bf16 %v7310_v62, %v7303_v2  ;;  %v14088_v17 = vsub.f32 %v7726_v30, %v7762_v55 }
0x112e   : > { %11247 = vmatprep.subr.bf16.mxu1 %v14535_v48 }
0x112f   : > { %v7305_v22 = vsub.f32 %v7303_v2, %v7304_v18  ;;  %v11269_v50 = vpack.c.bf16 %v7311_v29, %v7304_v18  ;;  %v14099_v18 = vsub.f32 %v7727_v39, %v7765_v36 }
0x1131   : > { %v7306_v5 = vand.u32 4294901760, %v7305_v22  ;;  %v7734_v22 = vld [vmem:[%s14446_s12 + $0x70] sm:$0xff] }
0x1133   : > { %v11251_v59 = vpack.c.bf16 %v7313_v28, %v7306_v5  ;;  %v7783_v5 = vand.u32 4294901760, %v7733_v14  ;;  %v7735_v28 = vld [vmem:[%s14446_s12 + $0x78] sm:$0xff] }
0x11b8   : > { %v7169_v25 = vpop.xlane.xlu0 %7168 }
0x11b9   : > { %v7170_v8 = vmul.f32 0.03125, %v7169_v25  ;;  %v7724_v25 = vld [vmem:[%s14446_s12 + $0x20] sm:$0xff] }
0x11bb   : > { %v7171_v51 = vsub.f32 %v7164_v15, %v7170_v8  ;;  %v7753_v15 = vand.u32 4294901760, %v7723_v35  ;;  %v7725_v8 = vld [vmem:[%s14446_s12 + $0x28] sm:$0xff] }
0x11bd   : > { %v7172_v1 = vmul.f32 %v7171_v51, %v7171_v51  ;;  %v14045_v56 = vpack.c.bf16 %v7753_v15, %v7750_v42  ;;  %v14071_v20 = vsub.f32 %v7723_v35, %v7753_v15 }
0x11bf   : > { %v7173_v10 = vsel %vm583_vm2, %v7172_v1, 0.0  ;;  %11282 = vmatpush3.bf16.msra.mxu0 %v14045_v56  ;;  %v7759_v1 = vand.u32 4294901760, %v7725_v8 }
0x11c0   : > { %7174 = vadd.xlane.f32.xlu1 %v7173_v10  ;;  %11283 = vmatprep.subr.bf16.mxu0 %v14535_v48 }
0x11c1   : > { %v14084_v62 = vsub.f32 %v7725_v8, %v7759_v1 }
0x11c3   : > { %v14508_v8 = vand.u32 4294901760, %v14084_v62 }
0x11c5   : > { %v7873_v30 = vsub.f32 %v14084_v62, %v14508_v8 }
0x124d   : > { %v7175_v33 = vpop.xlane.xlu1 %7174 }
0x124e   : > { %v7176_v46 = vmul.f32 0.03125, %v7175_v33  ;;  %v14117_v33 = vsub.f32 %v7731_v60, %v7777_v61 }
0x1250   : > { %v7177_v6 = vadd.f32 1e-05, %v7176_v46 }
0x1252   : > { %11734 = vrsqrt.f32 %v7177_v6  ;;  %v14121_v6 = vsub.f32 %v7733_v14, %v7783_v5 }
0x125c   : > { %v11735_v45 = vpop.eup %11734 }
0x125d   : > { %v7179_v44 = vmul.f32 %v11735_v45, %v7171_v51  ;;  %v7756_v51 = vand.u32 4294901760, %v7724_v25  ;;  %v7789_v45 = vand.u32 4294901760, %v7735_v28 }
0x125f   : > { %v7186_v24 = vmul.f32 %v8531_v13, %v7179_v44  ;;  %v14055_v10 = vpack.c.bf16 %v7759_v1, %v7756_v51  ;;  %v14082_v2 = vsub.f32 %v7724_v25, %v7756_v51  ;;  %v14126_v44 = vpack.c.bf16 %v7777_v61, %v7774_v47 }
0x1261   : > { %v14002_v34 = vadd.f32 %v8532_v53, %v7186_v24  ;;  %11285 = vmatpush3.bf16.msra.mxu0 %v14055_v10  ;;  %v14129_v53 = vsub.f32 %v7735_v28, %v7789_v45  ;;  %v14513_v24 = vand.u32 4294901760, %v14065_v9  ;;  %v14509_v15 = vand.u32 4294901760, %v14082_v2 }
0x1262   : > { %11286 = vmatprep.subr.bf16.mxu0 %v14535_v48 }
0x1263   : > { %v7206_v21 = vsel %vm583_vm2, %v14002_v34, 0  ;;  %v7866_v1 = vsub.f32 %v14082_v2, %v14509_v15 }
0x1264   : > { %v7277_v26 = vand.u32 4294901760, %v7206_v21 }
0x1265   : > { %v7867_v39 = vand.u32 4294901760, %v7866_v1 }
0x1266   : > { %v7278_v7 = vsub.f32 %v7206_v21, %v7277_v26  ;;  %v14512_v21 = vand.u32 4294901760, %v14067_v27 }
0x1268   : > { %v7279_v3 = vand.u32 4294901760, %v7278_v7 }
0x126a   : > { %v7280_v57 = vsub.f32 %v7278_v7, %v7279_v3 }
0x126c   : > { %v7281_v49 = vand.u32 4294901760, %v7280_v57  ;;  %v14510_v57 = vand.u32 4294901760, %v14071_v20 }
0x126e   : > { %10290 = vmatmul.mubr.f32.vlgmr.msra.gmra.mrb[22].mxu1 %v7281_v49  ;;  %v7859_v4 = vsub.f32 %v14071_v20, %v14510_v57 }
0x126f   : > { %11249 = vmatpush3.bf16.msra.mxu1 %v11248_v41  ;;  %10300 = vmatprep.mubr.msk.f32.mxu1 %vm11816_vm0, %v14534_v38  ;;  %v7780_v41 = vand.u32 4294901760, %v7732_v11 }
0x1270   : > { %11250 = vmatprep.subr.bf16.mxu1 %v14535_v48  ;;  %v7860_v42 = vand.u32 4294901760, %v7859_v4  ;;  %v14500_v4 = vand.u32 4294901760, %v14121_v6 }
0x1271   : > { %v14119_v46 = vsub.f32 %v7732_v11, %v7780_v41  ;;  %v14142_v49 = vpack.c.bf16 %v7783_v5, %v7780_v41 }
0x1272   : > { %v7929_v1 = vsub.f32 %v14121_v6, %v14500_v4 }
0x1273   : > { %11252 = vmatpush3.bf16.msra.mxu1 %v11251_v59  ;;  %v7786_v59 = vand.u32 4294901760, %v7734_v22 }
0x1274   : > { %11253 = vmatprep.subr.bf16.mxu1 %v14535_v48 }
0x1275   : > { %v14123_v13 = vsub.f32 %v7734_v22, %v7786_v59  ;;  %v14155_v25 = vpack.c.bf16 %v7789_v45, %v7786_v59  ;;  %v14502_v59 = vand.u32 4294901760, %v14117_v33 }
0x1276   : > { %10301 = vmatmul.mubr.f32.vlgmr.msra.gmra.mrb[22].mxu1 %v7277_v26 }
0x1277   : > { %11255 = vmatpush3.bf16.msra.mxu1 %v11254_v31  ;;  %10311 = vmatprep.mubr.msk.f32.mxu1 %vm11816_vm0, %v14534_v38 }
0x1278   : > { %11256 = vmatprep.subr.bf16.mxu1 %v14535_v48 }
0x127b   : > { %11258 = vmatpush3.bf16.msra.mxu1 %v11257_v12 }
0x127c   : > { %11259 = vmatprep.subr.bf16.mxu1 %v14535_v48 }
0x127e   : > { %10312 = vmatmul.mubr.f32.vlgmr.msra.gmra.mrb[22].mxu1 %v7278_v7  ;;  %v7845_v7 = vsub.f32 %v14067_v27, %v14512_v21 }
0x127f   : > { %11261 = vmatpush3.bf16.msra.mxu1 %v13988_v32  ;;  %10322 = vmatprep.mubr.msk.f32.mxu1 %vm11816_vm0, %v14534_v38 }
0x1280   : > { %11262 = vmatprep.subr.bf16.mxu1 %v14535_v48  ;;  %v7846_v52 = vand.u32 4294901760, %v7845_v7  ;;  %v7915_v7 = vsub.f32 %v14117_v33, %v14502_v59 }
0x1283   : > { %11264 = vmatpush3.bf16.msra.mxu1 %v13991_v58 }
0x1284   : > { %11265 = vmatprep.subr.bf16.mxu1 %v14535_v48 }
0x1286   : > { %10323 = vmatmul.mubr.f32.vlgmr.msra.gmra.mrb[22].mxu1 %v7279_v3  ;;  %v14511_v3 = vand.u32 4294901760, %v14069_v23 }
0x1287   : > { %11267 = vmatpush3.bf16.msra.mxu1 %v11266_v16  ;;  %10333 = vmatprep.mubr.msk.f32.mxu1 %vm11816_vm0, %v14534_v38  ;;  %v14113_v16 = vsub.f32 %v7729_v19, %v7771_v54 }
0x1288   : > { %11268 = vmatprep.subr.bf16.mxu1 %v14535_v48  ;;  %v7852_v63 = vsub.f32 %v14069_v23, %v14511_v3 }
0x128a   : > { %v7853_v35 = vand.u32 4294901760, %v7852_v63  ;;  %v14501_v63 = vand.u32 4294901760, %v14119_v46 }
0x128b   : > { %11270 = vmatpush3.bf16.msra.mxu1 %v11269_v50  ;;  %v14115_v50 = vsub.f32 %v7730_v0, %v7774_v47 }
0x128c   : > { %11271 = vmatprep.subr.bf16.mxu1 %v14535_v48  ;;  %v14159_v51 = vpack.c.bf16 %v7860_v42, %v7853_v35  ;;  %v7922_v42 = vsub.f32 %v14119_v46, %v14501_v63 }
0x128d   : > { %v14503_v28 = vand.u32 4294901760, %v14115_v50 }
0x128e   : > { %10334 = vmatmul.mubr.f32.vlgmr.msra.gmra.mrb[22].mxu1 %v7277_v26 }
0x128f   : > { %11273 = vmatpush3.bf16.msra.mxu1 %v13988_v32  ;;  %10344 = vmatprep.mubr.msk.f32.mxu1 %vm11816_vm0, %v14534_v38  ;;  %v7728_v32 = vld [vmem:[%s14446_s12 + $0x40] sm:$0xff] }
0x1290   : > { %11274 = vmatprep.subr.bf16.mxu1 %v14535_v48  ;;  %v7768_v29 = vand.u32 4294901760, %v7728_v32 }
0x1292   : > { %v14109_v31 = vpack.c.bf16 %v7771_v54, %v7768_v29  ;;  %v14111_v12 = vsub.f32 %v7728_v32, %v7768_v29  ;;  %v7874_v32 = vand.u32 4294901760, %v7873_v30  ;;  %v14504_v54 = vand.u32 4294901760, %v14113_v16 }
0x1293   : > { %11276 = vmatpush3.bf16.msra.mxu1 %v13991_v58  ;;  %v14086_v58 = vpack.c.bf16 %v7765_v36, %v7762_v55  ;;  %v14507_v55 = vand.u32 4294901760, %v14088_v17  ;;  %v14506_v36 = vand.u32 4294901760, %v14099_v18  ;;  %v7923_v30 = vand.u32 4294901760, %v7922_v42 }
0x1294   : > { %v14177_v60 = vpack.c.bf16 %v7874_v32, %v7867_v39  ;;  %v14505_v29 = vand.u32 4294901760, %v14111_v12  ;;  %v7901_v61 = vsub.f32 %v14113_v16, %v14504_v54  ;;  %v7930_v39 = vand.u32 4294901760, %v7929_v1 }
0x1295   : > { %11288 = vmatpush3.bf16.msra.mxu0 %v14086_v58  ;;  %v7880_v19 = vsub.f32 %v14088_v17, %v14507_v55  ;;  %v7887_v0 = vsub.f32 %v14099_v18, %v14506_v36  ;;  %v14499_v32 = vand.u32 4294901760, %v14123_v13  ;;  %v11341_v42 = vpack.c.bf16 %v14117_v33, %v14115_v50 }
0x1296   : > { %10345 = vmatmul.mubr.f32.vlgmr.msra.gmra.mrb[22].mxu1 %v7277_v26  ;;  %11289 = vmatprep.subr.bf16.mxu0 %v14535_v48  ;;  %v7838_v26 = vsub.f32 %v14065_v9, %v14513_v24  ;;  %v7894_v22 = vsub.f32 %v14111_v12, %v14505_v29  ;;  %v7902_v5 = vand.u32 4294901760, %v7901_v61 }
0x1297   : > { %v7881_v11 = vand.u32 4294901760, %v7880_v19  ;;  %v7888_v14 = vand.u32 4294901760, %v7887_v0  ;;  %v14498_v19 = vand.u32 4294901760, %v14129_v53  ;;  %v14211_v0 = vpack.c.bf16 %v7930_v39, %v7923_v30  ;;  %v8533_v39 = vld [vmem:[%s14445_s11] ss:$0 sm:$0xff] }
0x1298   : > { %v7839_v37 = vand.u32 4294901760, %v7838_v26  ;;  %v7895_v41 = vand.u32 4294901760, %v7894_v22  ;;  %v7908_v26 = vsub.f32 %v14115_v50, %v14503_v28 }
0x1299   : > { %11291 = vmatpush3.bf16.msra.mxu0 %v14109_v31  ;;  %v14181_v47 = vpack.c.bf16 %v7888_v14, %v7881_v11  ;;  %v7936_v11 = vsub.f32 %v14123_v13, %v14499_v32  ;;  %v7943_v14 = vsub.f32 %v14129_v53, %v14498_v19 }
0x129a   : > { %11292 = vmatprep.subr.bf16.mxu0 %v14535_v48  ;;  %v14151_v43 = vpack.c.bf16 %v7846_v52, %v7839_v37  ;;  %v14191_v45 = vpack.c.bf16 %v7902_v5, %v7895_v41  ;;  %v7909_v37 = vand.u32 4294901760, %v7908_v26  ;;  %v7916_v52 = vand.u32 4294901760, %v7915_v7 }
0x129b   : > { %v7937_v22 = vand.u32 4294901760, %v7936_v11  ;;  %v7944_v61 = vand.u32 4294901760, %v7943_v14  ;;  %v11326_v5 = vpack.c.bf16 %v14067_v27, %v14065_v9  ;;  %v11329_v26 = vpack.c.bf16 %v14071_v20, %v14069_v23 }
0x129c   : > { %v14201_v35 = vpack.c.bf16 %v7916_v52, %v7909_v37  ;;  %v11332_v7 = vpack.c.bf16 %v14084_v62, %v14082_v2  ;;  %v11335_v37 = vpack.c.bf16 %v14099_v18, %v14088_v17  ;;  %v11338_v52 = vpack.c.bf16 %v14113_v16, %v14111_v12 }
0x129d   : > { %11294 = vmatpush3.bf16.msra.mxu0 %v14126_v44  ;;  %v11323_v41 = vpack.c.bf16 %v7944_v61, %v7937_v22 }
0x129e   : > { %11295 = vmatprep.subr.bf16.mxu0 %v14535_v48 }
0x12a1   : > { %11297 = vmatpush3.bf16.msra.mxu0 %v14142_v49 }
0x12a2   : > { %11298 = vmatprep.subr.bf16.mxu0 %v14535_v48 }
0x12a5   : > { %11300 = vmatpush3.bf16.msra.mxu0 %v14155_v25 }
0x12a6   : > { %11301 = vmatprep.subr.bf16.mxu0 %v14535_v48 }
0x1369   : > { %v7689_v11 = vpop.f32.mrb[22].mxu1 }
0x136a   : > { %v11427_v14 = vadd.f32 %v8533_v39, %v7689_v11  ;;  %v10346_v22 = vpop.f32.mrb[23].mxu1 }
0x136c   : > { %v7694_v61 = vmul.f32 0.70710677, %v11427_v14  ;;  %v7693_v1 = vmul.f32 0.5, %v11427_v14 }
0x136e   : > { %v7697_v19 = vand.u32 2147483647, %v7694_v61  ;;  %vm7695_vm7 = vcmp.ge.f32.partialorder %v7694_v61, 0.0 }
0x1370   : > { %v7698_v32 = vmul.f32 0.3275911, %v7697_v19  ;;  %v7711_v63 = vsub.f32 0.0, %v7697_v19 }
0x1372   : > { %v7699_v4 = vadd.f32 1.0, %v7698_v32  ;;  %v7712_v28 = vmul.f32 %v7711_v63, %v7697_v19  ;;  %v14568_v32 = vmov -1.0  }
0x1374   : > { %11736 = vrcp.f32 %v7699_v4  ;;  %v7713_v36 = vmul.f32 1.442695, %v7712_v28  ;;  %v7696_v4 = vsel %vm7695_vm7, 1.0, %v14568_v32  ;;  %v14577_v28 = vand.u32 4294901760, %v14088_v17 }
0x1375   : > { %v14583_v17 = vand.u32 4294901760, %v14119_v46 }
0x1376   : > { %11738 = vpow2.f32 %v7713_v36 }
0x137e   : > { %v11737_v59 = vpop.eup %11736 }
0x137f   : > { %v7702_v54 = vmul.f32 1.0614054, %v11737_v59 }
0x1380   : > { %v11739_v11 = vpop.eup %11738 }
0x1381   : > { %v7703_v29 = vadd.f32 -1.4531521, %v7702_v54 }
0x1383   : > { %v7704_v55 = vmul.f32 %v11737_v59, %v7703_v29 }
0x1385   : > { %v7705_v8 = vadd.f32 1.4214138, %v7704_v55 }
0x1387   : > { %v7706_v15 = vmul.f32 %v11737_v59, %v7705_v8 }
0x1389   : > { %v7707_v57 = vadd.f32 -0.28449672, %v7706_v15 }
0x138b   : > { %v7708_v3 = vmul.f32 %v11737_v59, %v7707_v57  ;;  %v14572_v57 = vand.u32 4294901760, %v14067_v27  ;;  %v14576_v27 = vand.u32 4294901760, %v14084_v62  ;;  %v14582_v62 = vand.u32 4294901760, %v14117_v33 }
0x138d   : > { %v7709_v21 = vadd.f32 0.2548296, %v7708_v3  ;;  %v14571_v3 = vand.u32 4294901760, %v14065_v9  ;;  %v14575_v9 = vand.u32 4294901760, %v14082_v2  ;;  %v14581_v2 = vand.u32 4294901760, %v14115_v50 }
0x138f   : > { %v7710_v39 = vmul.f32 %v11737_v59, %v7709_v21  ;;  %v14570_v21 = vpack.c.bf16 %v14129_v53, %v14123_v13  ;;  %v14579_v59 = vand.u32 4294901760, %v14111_v12  ;;  %v14585_v12 = vand.u32 4294901760, %v14123_v13 }
0x1391   : > { %v7715_v22 = vmul.f32 %v11739_v11, %v7710_v39 }
0x1393   : > { %v7716_v24 = vsub.f32 1.0, %v7715_v22 }
0x1395   : > { %v7717_v30 = vmul.f32 %v7716_v24, %v7696_v4  ;;  %v14569_v24 = vpack.c.bf16 %v14121_v6, %v14119_v46 }
0x1397   : > { %v7718_v63 = vadd.f32 1.0, %v7717_v30 }
0x1399   : > { %v7719_v19 = vmul.f32 %v7718_v63, %v7693_v1 }
0x139b   : > { %v14239_v54 = vand.u32 4294901760, %v7719_v19 }
0x139d   : > { %v7825_v55 = vsub.f32 %v7719_v19, %v14239_v54 }
0x139f   : > { %v7826_v36 = vand.u32 4294901760, %v7825_v55 }
0x13a1   : > { %v7827_v8 = vsub.f32 %v7825_v55, %v7826_v36 }
0x13a3   : > { %v7828_v15 = vand.u32 4294901760, %v7827_v8 }
0x13a5   : > { %10380 = vmatmul.mubr.f32.vlgmr.msra.gmra.mrb[22].mxu0 %v7828_v15 }
0x13a6   : > { %11303 = vmatpush3.bf16.msra.mxu0 %v14151_v43  ;;  %10414 = vmatprep.mubr.msk.f32.mxu0 %vm11816_vm0, %v14534_v38  ;;  %v11374_v43 = vpack.c.bf16 %v14572_v57, %v14571_v3 }
0x13a7   : > { %11304 = vmatprep.subr.bf16.mxu0 %v14535_v48 }
0x13aa   : > { %11306 = vmatpush3.bf16.msra.mxu0 %v14159_v51  ;;  %v14573_v51 = vand.u32 4294901760, %v14069_v23  ;;  %v14578_v23 = vand.u32 4294901760, %v14099_v18  ;;  %v14584_v18 = vand.u32 4294901760, %v14121_v6 }
0x13ab   : > { %11307 = vmatprep.subr.bf16.mxu0 %v14535_v48 }
0x13ae   : > { %11309 = vmatpush3.bf16.msra.mxu0 %v14177_v60  ;;  %v14574_v60 = vand.u32 4294901760, %v14071_v20  ;;  %v11383_v20 = vpack.c.bf16 %v14578_v23, %v14577_v28 }
0x13af   : > { %11310 = vmatprep.subr.bf16.mxu0 %v14535_v48 }
0x13b0   : > { %v11377_v29 = vpack.c.bf16 %v14574_v60, %v14573_v51 }
0x13b2   : > { %11312 = vmatpush3.bf16.msra.mxu0 %v14181_v47  ;;  %v11380_v47 = vpack.c.bf16 %v14576_v27, %v14575_v9 }
0x13b3   : > { %11313 = vmatprep.subr.bf16.mxu0 %v14535_v48 }
0x13b6   : > { %11315 = vmatpush3.bf16.msra.mxu0 %v14191_v45  ;;  %v14580_v45 = vand.u32 4294901760, %v14113_v16  ;;  %v14586_v16 = vand.u32 4294901760, %v14129_v53 }
0x13b7   : > { %11316 = vmatprep.subr.bf16.mxu0 %v14535_v48 }
0x13ba   : > { %11318 = vmatpush3.bf16.msra.mxu0 %v14201_v35  ;;  %v11386_v35 = vpack.c.bf16 %v14580_v45, %v14579_v59 }
0x13bb   : > { %11319 = vmatprep.subr.bf16.mxu0 %v14535_v48 }
0x13be   : > { %11321 = vmatpush3.bf16.msra.mxu0 %v14211_v0  ;;  %v11389_v0 = vpack.c.bf16 %v14582_v62, %v14581_v2 }
0x13bf   : > { %11322 = vmatprep.subr.bf16.mxu0 %v14535_v48 }
0x13c2   : > { %11324 = vmatpush3.bf16.msra.mxu0 %v11323_v41  ;;  %v11392_v41 = vpack.c.bf16 %v14584_v18, %v14583_v17 }
0x13c3   : > { %11325 = vmatprep.subr.bf16.mxu0 %v14535_v48 }
0x13c5   : > { %10415 = vmatmul.mubr.f32.vlgmr.msra.gmra.mrb[22].mxu0 %v14239_v54 }
0x13c6   : > { %11327 = vmatpush3.bf16.msra.mxu0 %v11326_v5  ;;  %10449 = vmatprep.mubr.msk.f32.mxu0 %vm11816_vm0, %v14534_v38  ;;  %v11395_v5 = vpack.c.bf16 %v14586_v16, %v14585_v12 }
0x13c7   : > { %11328 = vmatprep.subr.bf16.mxu0 %v14535_v48 }
0x13ca   : > { %11330 = vmatpush3.bf16.msra.mxu0 %v11329_v26 }
0x13cb   : > { %11331 = vmatprep.subr.bf16.mxu0 %v14535_v48 }
0x13ce   : > { %11333 = vmatpush3.bf16.msra.mxu0 %v11332_v7 }
0x13cf   : > { %11334 = vmatprep.subr.bf16.mxu0 %v14535_v48 }
0x13d2   : > { %11336 = vmatpush3.bf16.msra.mxu0 %v11335_v37 }
0x13d3   : > { %11337 = vmatprep.subr.bf16.mxu0 %v14535_v48 }
0x13d6   : > { %11339 = vmatpush3.bf16.msra.mxu0 %v11338_v52 }
0x13d7   : > { %11340 = vmatprep.subr.bf16.mxu0 %v14535_v48 }
0x13da   : > { %11342 = vmatpush3.bf16.msra.mxu0 %v11341_v42 }
0x13db   : > { %11343 = vmatprep.subr.bf16.mxu0 %v14535_v48 }
0x13de   : > { %11345 = vmatpush3.bf16.msra.mxu0 %v14569_v24 }
0x13df   : > { %11346 = vmatprep.subr.bf16.mxu0 %v14535_v48 }
0x13e2   : > { %11348 = vmatpush3.bf16.msra.mxu0 %v14570_v21 }
0x13e3   : > { %11349 = vmatprep.subr.bf16.mxu0 %v14535_v48 }
0x13e5   : > { %10450 = vmatmul.mubr.f32.vlgmr.msra.gmra.mrb[22].mxu0 %v7825_v55 }
0x13e6   : > { %11351 = vmatpush3.bf16.msra.mxu0 %v14035_v40  ;;  %10484 = vmatprep.mubr.msk.f32.mxu0 %vm11816_vm0, %v14534_v38 }
0x13e7   : > { %11352 = vmatprep.subr.bf16.mxu0 %v14535_v48 }
0x13ea   : > { %11354 = vmatpush3.bf16.msra.mxu0 %v14045_v56 }
0x13eb   : > { %11355 = vmatprep.subr.bf16.mxu0 %v14535_v48 }
0x13ee   : > { %11357 = vmatpush3.bf16.msra.mxu0 %v14055_v10 }
0x13ef   : > { %11358 = vmatprep.subr.bf16.mxu0 %v14535_v48 }
0x13f2   : > { %11360 = vmatpush3.bf16.msra.mxu0 %v14086_v58 }
0x13f3   : > { %11361 = vmatprep.subr.bf16.mxu0 %v14535_v48 }
0x13f6   : > { %11363 = vmatpush3.bf16.msra.mxu0 %v14109_v31 }
0x13f7   : > { %11364 = vmatprep.subr.bf16.mxu0 %v14535_v48 }
0x13fa   : > { %11366 = vmatpush3.bf16.msra.mxu0 %v14126_v44 }
0x13fb   : > { %11367 = vmatprep.subr.bf16.mxu0 %v14535_v48 }
0x13fe   : > { %11369 = vmatpush3.bf16.msra.mxu0 %v14142_v49 }
0x13ff   : > { %11370 = vmatprep.subr.bf16.mxu0 %v14535_v48 }
0x1402   : > { %11372 = vmatpush3.bf16.msra.mxu0 %v14155_v25 }
0x1403   : > { %11373 = vmatprep.subr.bf16.mxu0 %v14535_v48 }
0x1405   : > { %10485 = vmatmul.mubr.f32.vlgmr.msra.gmra.mrb[22].mxu0 %v7826_v36 }
0x1406   : > { %11375 = vmatpush3.bf16.msra.mxu0 %v11374_v43  ;;  %10519 = vmatprep.mubr.msk.f32.mxu0 %vm11816_vm0, %v14534_v38  ;;  %v8536_v43 = vld [vmem:[%s14451_s17] ss:$0 sm:$0xff] }
0x1407   : > { %11376 = vmatprep.subr.bf16.mxu0 %v14535_v48 }
0x140a   : > { %11378 = vmatpush3.bf16.msra.mxu0 %v11377_v29 }
0x140b   : > { %11379 = vmatprep.subr.bf16.mxu0 %v14535_v48 }
0x140e   : > { %11381 = vmatpush3.bf16.msra.mxu0 %v11380_v47 }
0x140f   : > { %11382 = vmatprep.subr.bf16.mxu0 %v14535_v48 }
0x1412   : > { %11384 = vmatpush3.bf16.msra.mxu0 %v11383_v20 }
0x1413   : > { %11385 = vmatprep.subr.bf16.mxu0 %v14535_v48 }
0x1416   : > { %11387 = vmatpush3.bf16.msra.mxu0 %v11386_v35 }
0x1417   : > { %11388 = vmatprep.subr.bf16.mxu0 %v14535_v48 }
0x141a   : > { %11390 = vmatpush3.bf16.msra.mxu0 %v11389_v0 }
0x141b   : > { %11391 = vmatprep.subr.bf16.mxu0 %v14535_v48 }
0x141e   : > { %11393 = vmatpush3.bf16.msra.mxu0 %v11392_v41 }
0x141f   : > { %11394 = vmatprep.subr.bf16.mxu0 %v14535_v48 }
0x1422   : > { %11396 = vmatpush3.bf16.msra.mxu0 %v11395_v5 }
0x1423   : > { %11397 = vmatprep.subr.bf16.mxu0 %v14535_v48 }
0x1425   : > { %10520 = vmatmul.mubr.f32.vlgmr.msra.gmra.mrb[22].mxu0 %v14239_v54 }
0x1426   : > { %11399 = vmatpush3.bf16.msra.mxu0 %v14035_v40  ;;  %10554 = vmatprep.mubr.msk.f32.mxu0 %vm11816_vm0, %v14534_v38  ;;  %v8534_v38 = vld [vmem:[%s14447_s13] ss:$0 sm:$0xff] }
0x1427   : > { %11400 = vmatprep.subr.bf16.mxu0 %v14535_v48 }
0x142a   : > { %11402 = vmatpush3.bf16.msra.mxu0 %v14045_v56 }
0x142b   : > { %11403 = vmatprep.subr.bf16.mxu0 %v14535_v48 }
0x142e   : > { %11405 = vmatpush3.bf16.msra.mxu0 %v14055_v10 }
0x142f   : > { %11406 = vmatprep.subr.bf16.mxu0 %v14535_v48 }
0x1432   : > { %11408 = vmatpush3.bf16.msra.mxu0 %v14086_v58 }
0x1433   : > { %11409 = vmatprep.subr.bf16.mxu0 %v14535_v48 }
0x1436   : > { %11411 = vmatpush3.bf16.msra.mxu0 %v14109_v31 }
0x1437   : > { %11412 = vmatprep.subr.bf16.mxu0 %v14535_v48 }
0x143a   : > { %11414 = vmatpush3.bf16.msra.mxu0 %v14126_v44 }
0x143b   : > { %11415 = vmatprep.subr.bf16.mxu0 %v14535_v48 }
0x143e   : > { %11417 = vmatpush3.bf16.msra.mxu0 %v14142_v49 }
0x143f   : > { %11418 = vmatprep.subr.bf16.mxu0 %v14535_v48 }
0x1442   : > { %11420 = vmatpush3.bf16.msra.mxu0 %v14155_v25 }
0x1445   : > { %10555 = vmatmul.mubr.f32.vlgmr.msra.gmra.mrb[22].mxu0 %v14239_v54 }
0x1518   : > { %v8380_v40 = vpop.f32.mrb[22].mxu0 }
0x1519   : > { %v11428_v56 = vadd.f32 %v8534_v38, %v8380_v40  ;;  %v10556_v10 = vpop.f32.mrb[23].mxu0 }
0x151b   : > { %v8385_v58 = vmul.f32 0.70710677, %v11428_v56  ;;  %v8384_v11 = vmul.f32 0.5, %v11428_v56 }
0x151d   : > { %v8388_v31 = vand.u32 2147483647, %v8385_v58  ;;  %vm8386_vm8 = vcmp.ge.f32.partialorder %v8385_v58, 0.0 }
0x151e   : > { %v8387_v61 = vsel %vm8386_vm8, 1.0, %v14568_v32 }
0x151f   : > { %v8389_v50 = vmul.f32 0.3275911, %v8388_v31  ;;  %v8402_v46 = vsub.f32 0.0, %v8388_v31 }
0x1521   : > { %v8390_v33 = vadd.f32 1.0, %v8389_v50  ;;  %v8403_v13 = vmul.f32 %v8402_v46, %v8388_v31 }
0x1523   : > { %11740 = vrcp.f32 %v8390_v33  ;;  %v8404_v53 = vmul.f32 1.442695, %v8403_v13 }
0x1525   : > { %11742 = vpow2.f32 %v8404_v53 }
0x152d   : > { %v11741_v6 = vpop.eup %11740 }
0x152e   : > { %v8393_v48 = vmul.f32 1.0614054, %v11741_v6 }
0x152f   : > { %v11743_v1 = vpop.eup %11742 }
0x1530   : > { %v8394_v44 = vadd.f32 -1.4531521, %v8393_v48 }
0x1532   : > { %v8395_v49 = vmul.f32 %v11741_v6, %v8394_v44 }
0x1534   : > { %v8396_v25 = vadd.f32 1.4214138, %v8395_v49 }
0x1536   : > { %v8397_v26 = vmul.f32 %v11741_v6, %v8396_v25 }
0x1538   : > { %v8398_v7 = vadd.f32 -0.28449672, %v8397_v26 }
0x153a   : > { %v8399_v37 = vmul.f32 %v11741_v6, %v8398_v7 }
0x153c   : > { %v8400_v52 = vadd.f32 0.2548296, %v8399_v37 }
0x153e   : > { %v8401_v42 = vmul.f32 %v11741_v6, %v8400_v52 }
0x1540   : > { %v8406_v30 = vmul.f32 %v11743_v1, %v8401_v42 }
0x1542   : > { %v8407_v14 = vsub.f32 1.0, %v8406_v30 }
0x1544   : > { %v8408_v39 = vmul.f32 %v8407_v14, %v8387_v61 }
0x1546   : > { %v8409_v22 = vadd.f32 1.0, %v8408_v39 }
0x1548   : > { %v8410_v4 = vmul.f32 %v8409_v22, %v8384_v11 }
0x154a   : > { %v8411_v63 = vadd.f32 %v8410_v4, %v14002_v34  ;;  %v8535_v34 = vld [vmem:[%s14450_s16] ss:$0 sm:$0xff] }
0x154c   : > { %v8414_v19 = vsel %vm583_vm2, %v8411_v63, 0.0 }
0x154d   : > { %8415 = vadd.xlane.f32.xlu0 %v8414_v19 }
0x15da   : > { %v8416_v54 = vpop.xlane.xlu0 %8415 }
0x15db   : > { %v8417_v55 = vmul.f32 0.03125, %v8416_v54 }
0x15dd   : > { %v8418_v36 = vsub.f32 %v8411_v63, %v8417_v55 }
0x15df   : > { %v8419_v8 = vmul.f32 %v8418_v36, %v8418_v36 }
0x15e1   : > { %v8420_v15 = vsel %vm583_vm2, %v8419_v8, 0.0 }
0x15e2   : > { %8421 = vadd.xlane.f32.xlu0 %v8420_v15 }
0x166f   : > { %v8422_v24 = vpop.xlane.xlu0 %8421 }
0x1670   : > { %v8423_v32 = vmul.f32 0.03125, %v8422_v24 }
0x1672   : > { %v8424_v21 = vadd.f32 1e-05, %v8423_v32 }
0x1674   : > { %11744 = vrsqrt.f32 %v8424_v21 }
0x167e   : > { %v11745_v3 = vpop.eup %11744 }
0x167f   : > { %v8426_v57 = vmul.f32 %v11745_v3, %v8418_v36 }
0x1681   : > { %v8433_v51 = vmul.f32 %v8535_v34, %v8426_v57 }
0x1683   : > { %v8440_v60 = vadd.f32 %v8536_v43, %v8433_v51 }
0x1685   : > { %8441 = vst.msk [vmem:[%s566_s1] sm:$0xff] %vm583_vm2, %v8440_v60 }
0x1686   : > { %11764 = shalt.err (!%p11761_p3)
}
0x1687   : > { %s11765_s24 = scalar_lea.hbm %s14391_s3, 128  ;;  %s11769_s1 = scalar_lea.hbm %s14452_s18, 256 }
0x1688   : > { %p11766_p4 = scmp.ne.s32.totalorder %s14391_s3, %s11765_s24  ;;  %p11770_p9 = scmp.lt.u32.totalorder %s14391_s3, %s14452_s18 }
0x1689   : > { %p11771_p10 = scmp.lt.u32.totalorder %s11769_s1, %s11765_s24  ;;  %p11773_p12 = scmp.lt.u32.totalorder %s11765_s24, %s14391_s3 }
0x168a   : > { %p11767_p7 = pnand %p11766_p4, %p11963_p5 }
0x168b   : > { %p11772_p11 = por %p11771_p10, %p11770_p9 }
0x168c   : > { %p11768_p8 = pneg %p11767_p7 }
0x168d   : > { %p11774_p13 = por %p11773_p12, %p11772_p11 }
0x168f   : > { %p11775_p0 = pnand %p11774_p13, %p11768_p8 }
0x1691   : > { %11778 = shalt.err (!%p11775_p0)
}
0x1692   : > { %11525 = dma.vmem_to_hbm [thread:$0]  (%p11963_p5), %s14393_s20, 128, %s14391_s3, %s8443_s29  }
0x1693 PF: > { %s14587_s25 = sld [smem:[#allocation9_spill]]  ;;  %s14588_s0 = sld [smem:[#allocation7_spill]] }
0x1699   : > { %p11531_p1 = scmp.ge.s32.totalorder %s14587_s25, 2  ;;  %s8468_s27 = sand.u32 1, %s14588_s0  }
0x169a   : > { %s8469_s23 = scalar_lea.sflag [#allocation5], %s8468_s27 }
0x169b   : > { %p11528_p2 = pnand %p11531_p1, %p11967_p6 }
0x169d   : > { %11796 = dma.done.wait (!%p11528_p2), %s8469_s23, 128  }
0x169e   : > { %11798 = vsyncadd (!%p11528_p2), %s8469_s23, 4294967168  ;;  %s14590_s30 = sld [smem:[#allocation10_spill]]  ;;  %s14591_s24 = sld [smem:[#allocation8_spill]] }
0x169f   : > { %s14592_s29 = sld [smem:[#allocation11_spill]]  ;;  %s14593_s27 = smov %s11805_s28 }
0x16a4   : > { %p28_p3 = scmp.ge.s32.totalorder %s14590_s30, 4   ;;  %s14594_s28 = smov %s14591_s24 }
0x16a6   :  { %30 = sbr.rel (!%p28_p3) target bundleno = 8 (0x8), region = 127 }
0x16ad   :  { %8474 = vsyncpa [#allocation5], 1 }
0x16ae   :  { %8476 = vsyncpa [#allocation5 + $0x1], 1 }

</bundles_post_ra>
